<compile_context>
chip_gen: v7x
topology: tpu7x:2x2x1
jax: 0.10.0
libtpu: 0.0.40
codegen_flags: <defaults>
</compile_context>

<pallas_src>
import functools

import jax
import jax.numpy as jnp
from jax.experimental import pallas as pl
from jax.experimental.pallas import tpu as pltpu

# ----------------- config (small, consistent with the module's forward) ------------
VOCAB = 128       # model.model.shared.weight -> (VOCAB, D_MODEL); final_logits_bias -> (VOCAB,)
D_MODEL = 32
N_HEADS = 4
HEAD_DIM = D_MODEL // N_HEADS
FFN = 64
N_LAYERS = 2
MAX_LEN = 8       # max_length (decoder length == causal-mask size)
ENC_LEN = 8
BATCH = 2

NEG_INF = -1e9    # finite large negative: same softmax result, no NaN risk


# ================================ fused Pallas kernel ================================

def _matmul_t(a, b):
    # a: (M, K), b: (N, K)  ->  a @ b.T on the MXU (no materialized transpose).
    return jax.lax.dot_general(
        a, b, (((1,), (1,)), ((), ())), preferred_element_type=jnp.float32)


def _layer_norm(x, g, b):
    mu = jnp.mean(x, axis=-1, keepdims=True)
    var = jnp.mean(jnp.square(x - mu), axis=-1, keepdims=True)
    return (x - mu) * jax.lax.rsqrt(var + 1e-5) * g + b


def _attend(q, k, v, mask, scale):
    # q: (Rq, D) rows = batch*seq ; k, v: (Rk, D) ; mask: (Rq, Rk) additive AND
    # block-diagonal over batch -> all batches handled at once, heads are lane slices.
    ctx = []
    for h in range(N_HEADS):
        sl = slice(h * HEAD_DIM, (h + 1) * HEAD_DIM)
        s = _matmul_t(q[:, sl], k[:, sl]) * scale + mask
        s = s - jnp.max(s, axis=-1, keepdims=True)
        p = jnp.exp(s)
        p = p / jnp.sum(p, axis=-1, keepdims=True)
        ctx.append(jnp.dot(p, v[:, sl], preferred_element_type=jnp.float32))
    return jnp.concatenate(ctx, axis=-1)


def _decoder_kernel(idx_ref, ids_ref, enc_ref, smask_ref, cmask_ref,
                    emb_ref, lmb_ref, pos_ref, lneg_ref, lneb_ref,
                    sa_qkv_w, sa_qkv_b, sa_o_w, sa_o_b,
                    ca_q_w, ca_q_b, ca_kv_w, ca_kv_b, ca_o_w, ca_o_b,
                    ln1_g, ln1_b, ln2_g, ln2_b, ln3_g, ln3_b,
                    fc1_w, fc1_b, fc2_w, fc2_b,
                    out_ref):
    BL = ids_ref.shape[0]          # BATCH * MAX_LEN
    V, D = emb_ref.shape
    scale = 1.0 / (HEAD_DIM ** 0.5)

    # ---- token embedding as a one-hot matmul (gather fused onto the MXU) ----------
    ids = ids_ref[...]                                            # (BL, 1) int32
    col = jax.lax.broadcasted_iota(jnp.int32, (BL, V), 1)
    onehot = (col == ids).astype(jnp.float32)                     # (BL, V)
    x = jnp.dot(onehot, emb_ref[...], preferred_element_type=jnp.float32)
    x = x * (D_MODEL ** 0.5) + pos_ref[...]
    x = _layer_norm(x, lneg_ref[...], lneb_ref[...])

    enc = enc_ref[...]                                            # (B*T, D)
    smask = smask_ref[...]                                        # (BL, BL)
    cmask = cmask_ref[...]                                        # (BL, B*T)

    for l in range(N_LAYERS):
        # self-attention (causal, block-diagonal over batch) + residual + post-LN
        qkv = jnp.dot(x, sa_qkv_w[l], preferred_element_type=jnp.float32) + sa_qkv_b[l]
        h = _attend(qkv[:, :D], qkv[:, D:2 * D], qkv[:, 2 * D:], smask, scale)
        h = jnp.dot(h, sa_o_w[l], preferred_element_type=jnp.float32) + sa_o_b[l]
        x = _layer_norm(x + h, ln1_g[l], ln1_b[l])

        # cross-attention over encoder outputs + residual + post-LN
        q = jnp.dot(x, ca_q_w[l], preferred_element_type=jnp.float32) + ca_q_b[l]
        kv = jnp.dot(enc, ca_kv_w[l], preferred_element_type=jnp.float32) + ca_kv_b[l]
        h = _attend(q, kv[:, :D], kv[:, D:], cmask, scale)
        h = jnp.dot(h, ca_o_w[l], preferred_element_type=jnp.float32) + ca_o_b[l]
        x = _layer_norm(x + h, ln2_g[l], ln2_b[l])

        # feed-forward (GELU) + residual + post-LN
        h = jax.nn.gelu(jnp.dot(x, fc1_w[l], preferred_element_type=jnp.float32) + fc1_b[l])
        h = jnp.dot(h, fc2_w[l], preferred_element_type=jnp.float32) + fc2_b[l]
        x = _layer_norm(x + h, ln3_g[l], ln3_b[l])

    # ---- reduce(hidden, index) fused with the final LM head ------------------------
    idx = idx_ref[0]
    row_pos = jax.lax.broadcasted_iota(jnp.int32, (BL, D), 0) % MAX_LEN
    masked = x * (row_pos == idx).astype(jnp.float32)             # (BL, D)
    rows = [jnp.sum(masked[b * MAX_LEN:(b + 1) * MAX_LEN, :], axis=0, keepdims=True)
            for b in range(BATCH)]
    summed = jnp.concatenate(rows, axis=0)                        # (B, D)
    logits = _matmul_t(summed, emb_ref[...]) + lmb_ref[...]       # (B, V), V = 128 lanes
    out_ref[...] = logits.astype(out_ref.dtype)


# ================================ wrapper (glue) =====================================

@jax.jit
def neuron_decoder_forward(params, input_ids, attention_mask, encoder_outputs, index):
    B, L = input_ids.shape
    T = encoder_outputs.shape[1]
    D = D_MODEL
    BL, BT = B * L, B * T

    # causal mask exactly as in NeuronDecoder.forward (triu(ones,1) masked), made
    # block-diagonal over batch so the fused kernel needs no (B, H) grid.
    r = jnp.arange(BL)
    same_b = (r[:, None] // L) == (r[None, :] // L)
    causal_ok = (r[:, None] % L) >= (r[None, :] % L)
    self_mask = jnp.where(same_b & causal_ok, 0.0, NEG_INF).astype(jnp.float32)

    ce = jnp.arange(BT)
    same_be = (r[:, None] // L) == (ce[None, :] // T)
    enc_ok = (attention_mask.reshape(-1) != 0)[None, :]
    cross_mask = jnp.where(same_be & enc_ok, 0.0, NEG_INF).astype(jnp.float32)

    ids = input_ids.reshape(BL, 1).astype(jnp.int32)
    enc2d = encoder_outputs.reshape(BT, D).astype(jnp.float32)
    pos2d = jnp.tile(params["pos_emb"][:L], (B, 1))
    idx = jnp.asarray(index, jnp.int32).reshape(1)

    inputs = (
        idx, ids, enc2d, self_mask, cross_mask,
        params["shared_weight"], params["final_logits_bias"], pos2d,
        params["ln_emb_g"], params["ln_emb_b"],
        params["sa_qkv_w"], params["sa_qkv_b"], params["sa_o_w"], params["sa_o_b"],
        params["ca_q_w"], params["ca_q_b"], params["ca_kv_w"], params["ca_kv_b"],
        params["ca_o_w"], params["ca_o_b"],
        params["ln1_g"], params["ln1_b"], params["ln2_g"], params["ln2_b"],
        params["ln3_g"], params["ln3_b"],
        params["fc1_w"], params["fc1_b"], params["fc2_w"], params["fc2_b"],
    )
    vmem = pl.BlockSpec(memory_space=pltpu.MemorySpace.VMEM)
    smem = pl.BlockSpec(memory_space=pltpu.MemorySpace.SMEM)

    logits = pl.pallas_call(
        _decoder_kernel,
        out_shape=jax.ShapeDtypeStruct((B, VOCAB), jnp.float32),
        in_specs=[smem] + [vmem] * (len(inputs) - 1),
        out_specs=vmem,
    )(*inputs)
    return logits[:, None, :]       # torch.unsqueeze(summed, 1) path -> (B, 1, VOCAB)


def init_params(key):
    ks = iter(jax.random.split(key, 16))

    def w(shape, scale=0.02):
        return scale * jax.random.normal(next(ks), shape, dtype=jnp.float32)

    ones = lambda s: jnp.ones(s, jnp.float32)
    zeros = lambda s: jnp.zeros(s, jnp.float32)
    NL, D = N_LAYERS, D_MODEL
    return {
        "shared_weight": w((VOCAB, D)),            # model.model.shared.weight
        "final_logits_bias": zeros((1, VOCAB)),    # model.final_logits_bias
        "pos_emb": w((MAX_LEN, D)),
        "ln_emb_g": ones((1, D)), "ln_emb_b": zeros((1, D)),
        # per-layer params stacked along a leading N_LAYERS axis; QKV / KV weights fused
        "sa_qkv_w": w((NL, D, 3 * D)), "sa_qkv_b": zeros((NL, 1, 3 * D)),
        "sa_o_w": w((NL, D, D)),       "sa_o_b": zeros((NL, 1, D)),
        "ca_q_w": w((NL, D, D)),       "ca_q_b": zeros((NL, 1, D)),
        "ca_kv_w": w((NL, D, 2 * D)),  "ca_kv_b": zeros((NL, 1, 2 * D)),
        "ca_o_w": w((NL, D, D)),       "ca_o_b": zeros((NL, 1, D)),
        "ln1_g": ones((NL, 1, D)), "ln1_b": zeros((NL, 1, D)),
        "ln2_g": ones((NL, 1, D)), "ln2_b": zeros((NL, 1, D)),
        "ln3_g": ones((NL, 1, D)), "ln3_b": zeros((NL, 1, D)),
        "fc1_w": w((NL, D, FFN)), "fc1_b": zeros((NL, 1, FFN)),
        "fc2_w": w((NL, FFN, D)), "fc2_b": zeros((NL, 1, D)),
    }


if __name__ == "__main__":
    root = jax.random.PRNGKey(0)
    k_params, k_ids, k_enc = jax.random.split(root, 3)

    params = init_params(k_params)
    input_ids = jax.random.randint(k_ids, (BATCH, MAX_LEN), 0, VOCAB, dtype=jnp.int32)
    attention_mask = jnp.ones((BATCH, ENC_LEN), jnp.int32).at[:, ENC_LEN - 2:].set(0)
    encoder_outputs = jax.random.normal(k_enc, (BATCH, ENC_LEN, D_MODEL), dtype=jnp.float32)
    index = jnp.int32(3)

    logits = neuron_decoder_forward(params, input_ids, attention_mask, encoder_outputs, index)
    logits = jax.block_until_ready(logits)

    assert logits.shape == (BATCH, 1, VOCAB), logits.shape
    assert bool(jnp.all(jnp.isfinite(logits)))
    print("KERNEL_OK")
</pallas_src>

<mosaic_0001>
module attributes {stable_mosaic.version = 11 : i64} {
  func.func @_decoder_kernel(%arg0: memref<1xi32, #tpu.memory_space<smem>>, %arg1: memref<16x1xi32, #tpu.memory_space<vmem>>, %arg2: memref<16x32xf32, #tpu.memory_space<vmem>>, %arg3: memref<16x16xf32, #tpu.memory_space<vmem>>, %arg4: memref<16x16xf32, #tpu.memory_space<vmem>>, %arg5: memref<128x32xf32, #tpu.memory_space<vmem>>, %arg6: memref<1x128xf32, #tpu.memory_space<vmem>>, %arg7: memref<16x32xf32, #tpu.memory_space<vmem>>, %arg8: memref<1x32xf32, #tpu.memory_space<vmem>>, %arg9: memref<1x32xf32, #tpu.memory_space<vmem>>, %arg10: memref<2x32x96xf32, #tpu.memory_space<vmem>>, %arg11: memref<2x1x96xf32, #tpu.memory_space<vmem>>, %arg12: memref<2x32x32xf32, #tpu.memory_space<vmem>>, %arg13: memref<2x1x32xf32, #tpu.memory_space<vmem>>, %arg14: memref<2x32x32xf32, #tpu.memory_space<vmem>>, %arg15: memref<2x1x32xf32, #tpu.memory_space<vmem>>, %arg16: memref<2x32x64xf32, #tpu.memory_space<vmem>>, %arg17: memref<2x1x64xf32, #tpu.memory_space<vmem>>, %arg18: memref<2x32x32xf32, #tpu.memory_space<vmem>>, %arg19: memref<2x1x32xf32, #tpu.memory_space<vmem>>, %arg20: memref<2x1x32xf32, #tpu.memory_space<vmem>>, %arg21: memref<2x1x32xf32, #tpu.memory_space<vmem>>, %arg22: memref<2x1x32xf32, #tpu.memory_space<vmem>>, %arg23: memref<2x1x32xf32, #tpu.memory_space<vmem>>, %arg24: memref<2x1x32xf32, #tpu.memory_space<vmem>>, %arg25: memref<2x1x32xf32, #tpu.memory_space<vmem>>, %arg26: memref<2x32x64xf32, #tpu.memory_space<vmem>>, %arg27: memref<2x1x64xf32, #tpu.memory_space<vmem>>, %arg28: memref<2x64x32xf32, #tpu.memory_space<vmem>>, %arg29: memref<2x1x32xf32, #tpu.memory_space<vmem>>, %arg30: memref<2x128xf32, #tpu.memory_space<vmem>>) attributes {dimension_semantics = [], scalar_prefetch = 0 : i64, scratch_operands = 0 : i64, tpu.core_type = #tpu.core_type<tc>} {
    %c0 = arith.constant 0 : index
    %c0_0 = arith.constant 0 : index
    %0 = vector.load %arg1[%c0, %c0_0] : memref<16x1xi32, #tpu.memory_space<vmem>>, vector<16x1xi32>
    %1 = tpu.iota {dimensions = array<i32: 1>} : vector<16x128xi32>
    %2 = vector.broadcast %0 : vector<16x1xi32> to vector<16x128xi32>
    %3 = arith.cmpi eq, %1, %2 : vector<16x128xi32>
    %4 = arith.extui %3 : vector<16x128xi1> to vector<16x128xi32>
    %5 = arith.sitofp %4 : vector<16x128xi32> to vector<16x128xf32>
    %c0_1 = arith.constant 0 : index
    %c0_2 = arith.constant 0 : index
    %6 = vector.load %arg5[%c0_1, %c0_2] : memref<128x32xf32, #tpu.memory_space<vmem>>, vector<128x32xf32>
    %cst = arith.constant dense<0.000000e+00> : vector<16x32xf32>
    %7 = tpu.matmul %5, %6, %cst {dimension_numbers = #tpu.dot_dimension_numbers<[1], [0], [0], [1], [0, 0, 1, 1], [], []>} : vector<16x128xf32>, vector<128x32xf32>, vector<16x32xf32> -> vector<16x32xf32>
    %cst_3 = arith.constant 5.65685415 : f32
    %8 = vector.broadcast %cst_3 : f32 to vector<16x32xf32>
    %9 = arith.mulf %7, %8 : vector<16x32xf32>
    %c0_4 = arith.constant 0 : index
    %c0_5 = arith.constant 0 : index
    %10 = vector.load %arg7[%c0_4, %c0_5] : memref<16x32xf32, #tpu.memory_space<vmem>>, vector<16x32xf32>
    %11 = arith.addf %9, %10 : vector<16x32xf32>
    %c0_6 = arith.constant 0 : index
    %c0_7 = arith.constant 0 : index
    %12 = vector.load %arg8[%c0_6, %c0_7] : memref<1x32xf32, #tpu.memory_space<vmem>>, vector<1x32xf32>
    %c0_8 = arith.constant 0 : index
    %c0_9 = arith.constant 0 : index
    %13 = vector.load %arg9[%c0_8, %c0_9] : memref<1x32xf32, #tpu.memory_space<vmem>>, vector<1x32xf32>
    %cst_10 = arith.constant dense<0.000000e+00> : vector<16xf32>
    %14 = vector.multi_reduction <add>, %11, %cst_10 [1] : vector<16x32xf32> to vector<16xf32>
    %15 = vector.shape_cast %14 : vector<16xf32> to vector<16x1xf32>
    %cst_11 = arith.constant 3.200000e+01 : f32
    %16 = vector.broadcast %cst_11 : f32 to vector<16x1xf32>
    %17 = arith.divf %15, %16 : vector<16x1xf32>
    %18 = vector.broadcast %17 : vector<16x1xf32> to vector<16x32xf32>
    %19 = arith.subf %11, %18 : vector<16x32xf32>
    %20 = arith.mulf %19, %19 : vector<16x32xf32>
    %cst_12 = arith.constant dense<0.000000e+00> : vector<16xf32>
    %21 = vector.multi_reduction <add>, %20, %cst_12 [1] : vector<16x32xf32> to vector<16xf32>
    %22 = vector.shape_cast %21 : vector<16xf32> to vector<16x1xf32>
    %cst_13 = arith.constant 3.200000e+01 : f32
    %23 = vector.broadcast %cst_13 : f32 to vector<16x1xf32>
    %24 = arith.divf %22, %23 : vector<16x1xf32>
    %25 = vector.broadcast %17 : vector<16x1xf32> to vector<16x32xf32>
    %26 = arith.subf %11, %25 : vector<16x32xf32>
    %cst_14 = arith.constant 9.99999974E-6 : f32
    %27 = vector.broadcast %cst_14 : f32 to vector<16x1xf32>
    %28 = arith.addf %24, %27 : vector<16x1xf32>
    %29 = math.rsqrt %28 : vector<16x1xf32>
    %30 = vector.broadcast %29 : vector<16x1xf32> to vector<16x32xf32>
    %31 = arith.mulf %26, %30 : vector<16x32xf32>
    %32 = vector.broadcast %12 : vector<1x32xf32> to vector<16x32xf32>
    %33 = arith.mulf %31, %32 : vector<16x32xf32>
    %34 = vector.broadcast %13 : vector<1x32xf32> to vector<16x32xf32>
    %35 = arith.addf %33, %34 : vector<16x32xf32>
    %c0_15 = arith.constant 0 : index
    %c0_16 = arith.constant 0 : index
    %36 = vector.load %arg2[%c0_15, %c0_16] : memref<16x32xf32, #tpu.memory_space<vmem>>, vector<16x32xf32>
    %c0_17 = arith.constant 0 : index
    %c0_18 = arith.constant 0 : index
    %37 = vector.load %arg3[%c0_17, %c0_18] : memref<16x16xf32, #tpu.memory_space<vmem>>, vector<16x16xf32>
    %c0_19 = arith.constant 0 : index
    %c0_20 = arith.constant 0 : index
    %38 = vector.load %arg4[%c0_19, %c0_20] : memref<16x16xf32, #tpu.memory_space<vmem>>, vector<16x16xf32>
    %c0_21 = arith.constant 0 : index
    %c0_22 = arith.constant 0 : index
    %c0_23 = arith.constant 0 : index
    %39 = vector.load %arg10[%c0_21, %c0_22, %c0_23] : memref<2x32x96xf32, #tpu.memory_space<vmem>>, vector<1x32x96xf32>
    %40 = vector.shape_cast %39 : vector<1x32x96xf32> to vector<32x96xf32>
    %cst_24 = arith.constant dense<0.000000e+00> : vector<16x96xf32>
    %41 = tpu.matmul %35, %40, %cst_24 {dimension_numbers = #tpu.dot_dimension_numbers<[1], [0], [0], [1], [0, 0, 1, 1], [], []>} : vector<16x32xf32>, vector<32x96xf32>, vector<16x96xf32> -> vector<16x96xf32>
    %c0_25 = arith.constant 0 : index
    %c0_26 = arith.constant 0 : index
    %c0_27 = arith.constant 0 : index
    %42 = vector.load %arg11[%c0_25, %c0_26, %c0_27] : memref<2x1x96xf32, #tpu.memory_space<vmem>>, vector<1x1x96xf32>
    %43 = vector.shape_cast %42 : vector<1x1x96xf32> to vector<1x96xf32>
    %44 = vector.broadcast %43 : vector<1x96xf32> to vector<16x96xf32>
    %45 = arith.addf %41, %44 : vector<16x96xf32>
    %46 = vector.extract_strided_slice %45 {offsets = [0, 0], sizes = [16, 32], strides = [1, 1]} : vector<16x96xf32> to vector<16x32xf32>
    %47 = vector.extract_strided_slice %45 {offsets = [0, 32], sizes = [16, 32], strides = [1, 1]} : vector<16x96xf32> to vector<16x32xf32>
    %48 = vector.extract_strided_slice %45 {offsets = [0, 64], sizes = [16, 32], strides = [1, 1]} : vector<16x96xf32> to vector<16x32xf32>
    %49 = vector.extract_strided_slice %46 {offsets = [0, 0], sizes = [16, 8], strides = [1, 1]} : vector<16x32xf32> to vector<16x8xf32>
    %50 = vector.extract_strided_slice %47 {offsets = [0, 0], sizes = [16, 8], strides = [1, 1]} : vector<16x32xf32> to vector<16x8xf32>
    %cst_28 = arith.constant dense<0.000000e+00> : vector<16x16xf32>
    %51 = tpu.matmul %49, %50, %cst_28 {dimension_numbers = #tpu.dot_dimension_numbers<[1], [1], [0], [0], [0, 0, 1, 0], [], []>} : vector<16x8xf32>, vector<16x8xf32>, vector<16x16xf32> -> vector<16x16xf32>
    %cst_29 = arith.constant 0.353553385 : f32
    %52 = vector.broadcast %cst_29 : f32 to vector<16x16xf32>
    %53 = arith.mulf %51, %52 : vector<16x16xf32>
    %54 = arith.addf %53, %37 : vector<16x16xf32>
    %cst_30 = arith.constant dense<0xFF800000> : vector<16xf32>
    %55 = vector.multi_reduction <maximumf>, %54, %cst_30 [1] : vector<16x16xf32> to vector<16xf32>
    %56 = vector.shape_cast %55 : vector<16xf32> to vector<16x1xf32>
    %57 = vector.broadcast %56 : vector<16x1xf32> to vector<16x16xf32>
    %58 = arith.subf %54, %57 : vector<16x16xf32>
    %59 = math.exp %58 : vector<16x16xf32>
    %cst_31 = arith.constant dense<0.000000e+00> : vector<16xf32>
    %60 = vector.multi_reduction <add>, %59, %cst_31 [1] : vector<16x16xf32> to vector<16xf32>
    %61 = vector.shape_cast %60 : vector<16xf32> to vector<16x1xf32>
    %62 = vector.broadcast %61 : vector<16x1xf32> to vector<16x16xf32>
    %63 = arith.divf %59, %62 : vector<16x16xf32>
    %64 = vector.extract_strided_slice %48 {offsets = [0, 0], sizes = [16, 8], strides = [1, 1]} : vector<16x32xf32> to vector<16x8xf32>
    %cst_32 = arith.constant dense<0.000000e+00> : vector<16x8xf32>
    %65 = tpu.matmul %63, %64, %cst_32 {dimension_numbers = #tpu.dot_dimension_numbers<[1], [0], [0], [1], [0, 0, 1, 1], [], []>} : vector<16x16xf32>, vector<16x8xf32>, vector<16x8xf32> -> vector<16x8xf32>
    %66 = vector.extract_strided_slice %46 {offsets = [0, 8], sizes = [16, 8], strides = [1, 1]} : vector<16x32xf32> to vector<16x8xf32>
    %67 = vector.extract_strided_slice %47 {offsets = [0, 8], sizes = [16, 8], strides = [1, 1]} : vector<16x32xf32> to vector<16x8xf32>
    %cst_33 = arith.constant dense<0.000000e+00> : vector<16x16xf32>
    %68 = tpu.matmul %66, %67, %cst_33 {dimension_numbers = #tpu.dot_dimension_numbers<[1], [1], [0], [0], [0, 0, 1, 0], [], []>} : vector<16x8xf32>, vector<16x8xf32>, vector<16x16xf32> -> vector<16x16xf32>
    %cst_34 = arith.constant 0.353553385 : f32
    %69 = vector.broadcast %cst_34 : f32 to vector<16x16xf32>
    %70 = arith.mulf %68, %69 : vector<16x16xf32>
    %71 = arith.addf %70, %37 : vector<16x16xf32>
    %cst_35 = arith.constant dense<0xFF800000> : vector<16xf32>
    %72 = vector.multi_reduction <maximumf>, %71, %cst_35 [1] : vector<16x16xf32> to vector<16xf32>
    %73 = vector.shape_cast %72 : vector<16xf32> to vector<16x1xf32>
    %74 = vector.broadcast %73 : vector<16x1xf32> to vector<16x16xf32>
    %75 = arith.subf %71, %74 : vector<16x16xf32>
    %76 = math.exp %75 : vector<16x16xf32>
    %cst_36 = arith.constant dense<0.000000e+00> : vector<16xf32>
    %77 = vector.multi_reduction <add>, %76, %cst_36 [1] : vector<16x16xf32> to vector<16xf32>
    %78 = vector.shape_cast %77 : vector<16xf32> to vector<16x1xf32>
    %79 = vector.broadcast %78 : vector<16x1xf32> to vector<16x16xf32>
    %80 = arith.divf %76, %79 : vector<16x16xf32>
    %81 = vector.extract_strided_slice %48 {offsets = [0, 8], sizes = [16, 8], strides = [1, 1]} : vector<16x32xf32> to vector<16x8xf32>
    %cst_37 = arith.constant dense<0.000000e+00> : vector<16x8xf32>
    %82 = tpu.matmul %80, %81, %cst_37 {dimension_numbers = #tpu.dot_dimension_numbers<[1], [0], [0], [1], [0, 0, 1, 1], [], []>} : vector<16x16xf32>, vector<16x8xf32>, vector<16x8xf32> -> vector<16x8xf32>
    %83 = vector.extract_strided_slice %46 {offsets = [0, 16], sizes = [16, 8], strides = [1, 1]} : vector<16x32xf32> to vector<16x8xf32>
    %84 = vector.extract_strided_slice %47 {offsets = [0, 16], sizes = [16, 8], strides = [1, 1]} : vector<16x32xf32> to vector<16x8xf32>
    %cst_38 = arith.constant dense<0.000000e+00> : vector<16x16xf32>
    %85 = tpu.matmul %83, %84, %cst_38 {dimension_numbers = #tpu.dot_dimension_numbers<[1], [1], [0], [0], [0, 0, 1, 0], [], []>} : vector<16x8xf32>, vector<16x8xf32>, vector<16x16xf32> -> vector<16x16xf32>
    %cst_39 = arith.constant 0.353553385 : f32
    %86 = vector.broadcast %cst_39 : f32 to vector<16x16xf32>
    %87 = arith.mulf %85, %86 : vector<16x16xf32>
    %88 = arith.addf %87, %37 : vector<16x16xf32>
    %cst_40 = arith.constant dense<0xFF800000> : vector<16xf32>
    %89 = vector.multi_reduction <maximumf>, %88, %cst_40 [1] : vector<16x16xf32> to vector<16xf32>
    %90 = vector.shape_cast %89 : vector<16xf32> to vector<16x1xf32>
    %91 = vector.broadcast %90 : vector<16x1xf32> to vector<16x16xf32>
    %92 = arith.subf %88, %91 : vector<16x16xf32>
    %93 = math.exp %92 : vector<16x16xf32>
    %cst_41 = arith.constant dense<0.000000e+00> : vector<16xf32>
    %94 = vector.multi_reduction <add>, %93, %cst_41 [1] : vector<16x16xf32> to vector<16xf32>
    %95 = vector.shape_cast %94 : vector<16xf32> to vector<16x1xf32>
    %96 = vector.broadcast %95 : vector<16x1xf32> to vector<16x16xf32>
    %97 = arith.divf %93, %96 : vector<16x16xf32>
    %98 = vector.extract_strided_slice %48 {offsets = [0, 16], sizes = [16, 8], strides = [1, 1]} : vector<16x32xf32> to vector<16x8xf32>
    %cst_42 = arith.constant dense<0.000000e+00> : vector<16x8xf32>
    %99 = tpu.matmul %97, %98, %cst_42 {dimension_numbers = #tpu.dot_dimension_numbers<[1], [0], [0], [1], [0, 0, 1, 1], [], []>} : vector<16x16xf32>, vector<16x8xf32>, vector<16x8xf32> -> vector<16x8xf32>
    %100 = vector.extract_strided_slice %46 {offsets = [0, 24], sizes = [16, 8], strides = [1, 1]} : vector<16x32xf32> to vector<16x8xf32>
    %101 = vector.extract_strided_slice %47 {offsets = [0, 24], sizes = [16, 8], strides = [1, 1]} : vector<16x32xf32> to vector<16x8xf32>
    %cst_43 = arith.constant dense<0.000000e+00> : vector<16x16xf32>
    %102 = tpu.matmul %100, %101, %cst_43 {dimension_numbers = #tpu.dot_dimension_numbers<[1], [1], [0], [0], [0, 0, 1, 0], [], []>} : vector<16x8xf32>, vector<16x8xf32>, vector<16x16xf32> -> vector<16x16xf32>
    %cst_44 = arith.constant 0.353553385 : f32
    %103 = vector.broadcast %cst_44 : f32 to vector<16x16xf32>
    %104 = arith.mulf %102, %103 : vector<16x16xf32>
    %105 = arith.addf %104, %37 : vector<16x16xf32>
    %cst_45 = arith.constant dense<0xFF800000> : vector<16xf32>
    %106 = vector.multi_reduction <maximumf>, %105, %cst_45 [1] : vector<16x16xf32> to vector<16xf32>
    %107 = vector.shape_cast %106 : vector<16xf32> to vector<16x1xf32>
    %108 = vector.broadcast %107 : vector<16x1xf32> to vector<16x16xf32>
    %109 = arith.subf %105, %108 : vector<16x16xf32>
    %110 = math.exp %109 : vector<16x16xf32>
    %cst_46 = arith.constant dense<0.000000e+00> : vector<16xf32>
    %111 = vector.multi_reduction <add>, %110, %cst_46 [1] : vector<16x16xf32> to vector<16xf32>
    %112 = vector.shape_cast %111 : vector<16xf32> to vector<16x1xf32>
    %113 = vector.broadcast %112 : vector<16x1xf32> to vector<16x16xf32>
    %114 = arith.divf %110, %113 : vector<16x16xf32>
    %115 = vector.extract_strided_slice %48 {offsets = [0, 24], sizes = [16, 8], strides = [1, 1]} : vector<16x32xf32> to vector<16x8xf32>
    %cst_47 = arith.constant dense<0.000000e+00> : vector<16x8xf32>
    %116 = tpu.matmul %114, %115, %cst_47 {dimension_numbers = #tpu.dot_dimension_numbers<[1], [0], [0], [1], [0, 0, 1, 1], [], []>} : vector<16x16xf32>, vector<16x8xf32>, vector<16x8xf32> -> vector<16x8xf32>
    %117 = tpu.concatenate %65, %82, %99, %116 in 1 : vector<16x8xf32>, vector<16x8xf32>, vector<16x8xf32>, vector<16x8xf32> -> vector<16x32xf32>
    %c0_48 = arith.constant 0 : index
    %c0_49 = arith.constant 0 : index
    %c0_50 = arith.constant 0 : index
    %118 = vector.load %arg12[%c0_48, %c0_49, %c0_50] : memref<2x32x32xf32, #tpu.memory_space<vmem>>, vector<1x32x32xf32>
    %119 = vector.shape_cast %118 : vector<1x32x32xf32> to vector<32x32xf32>
    %cst_51 = arith.constant dense<0.000000e+00> : vector<16x32xf32>
    %120 = tpu.matmul %117, %119, %cst_51 {dimension_numbers = #tpu.dot_dimension_numbers<[1], [0], [0], [1], [0, 0, 1, 1], [], []>} : vector<16x32xf32>, vector<32x32xf32>, vector<16x32xf32> -> vector<16x32xf32>
    %c0_52 = arith.constant 0 : index
    %c0_53 = arith.constant 0 : index
    %c0_54 = arith.constant 0 : index
    %121 = vector.load %arg13[%c0_52, %c0_53, %c0_54] : memref<2x1x32xf32, #tpu.memory_space<vmem>>, vector<1x1x32xf32>
    %122 = vector.shape_cast %121 : vector<1x1x32xf32> to vector<1x32xf32>
    %123 = vector.broadcast %122 : vector<1x32xf32> to vector<16x32xf32>
    %124 = arith.addf %120, %123 : vector<16x32xf32>
    %125 = arith.addf %35, %124 : vector<16x32xf32>
    %c0_55 = arith.constant 0 : index
    %c0_56 = arith.constant 0 : index
    %c0_57 = arith.constant 0 : index
    %126 = vector.load %arg20[%c0_55, %c0_56, %c0_57] : memref<2x1x32xf32, #tpu.memory_space<vmem>>, vector<1x1x32xf32>
    %127 = vector.shape_cast %126 : vector<1x1x32xf32> to vector<1x32xf32>
    %c0_58 = arith.constant 0 : index
    %c0_59 = arith.constant 0 : index
    %c0_60 = arith.constant 0 : index
    %128 = vector.load %arg21[%c0_58, %c0_59, %c0_60] : memref<2x1x32xf32, #tpu.memory_space<vmem>>, vector<1x1x32xf32>
    %129 = vector.shape_cast %128 : vector<1x1x32xf32> to vector<1x32xf32>
    %cst_61 = arith.constant dense<0.000000e+00> : vector<16xf32>
    %130 = vector.multi_reduction <add>, %125, %cst_61 [1] : vector<16x32xf32> to vector<16xf32>
    %131 = vector.shape_cast %130 : vector<16xf32> to vector<16x1xf32>
    %cst_62 = arith.constant 3.200000e+01 : f32
    %132 = vector.broadcast %cst_62 : f32 to vector<16x1xf32>
    %133 = arith.divf %131, %132 : vector<16x1xf32>
    %134 = vector.broadcast %133 : vector<16x1xf32> to vector<16x32xf32>
    %135 = arith.subf %125, %134 : vector<16x32xf32>
    %136 = arith.mulf %135, %135 : vector<16x32xf32>
    %cst_63 = arith.constant dense<0.000000e+00> : vector<16xf32>
    %137 = vector.multi_reduction <add>, %136, %cst_63 [1] : vector<16x32xf32> to vector<16xf32>
    %138 = vector.shape_cast %137 : vector<16xf32> to vector<16x1xf32>
    %cst_64 = arith.constant 3.200000e+01 : f32
    %139 = vector.broadcast %cst_64 : f32 to vector<16x1xf32>
    %140 = arith.divf %138, %139 : vector<16x1xf32>
    %141 = vector.broadcast %133 : vector<16x1xf32> to vector<16x32xf32>
    %142 = arith.subf %125, %141 : vector<16x32xf32>
    %cst_65 = arith.constant 9.99999974E-6 : f32
    %143 = vector.broadcast %cst_65 : f32 to vector<16x1xf32>
    %144 = arith.addf %140, %143 : vector<16x1xf32>
    %145 = math.rsqrt %144 : vector<16x1xf32>
    %146 = vector.broadcast %145 : vector<16x1xf32> to vector<16x32xf32>
    %147 = arith.mulf %142, %146 : vector<16x32xf32>
    %148 = vector.broadcast %127 : vector<1x32xf32> to vector<16x32xf32>
    %149 = arith.mulf %147, %148 : vector<16x32xf32>
    %150 = vector.broadcast %129 : vector<1x32xf32> to vector<16x32xf32>
    %151 = arith.addf %149, %150 : vector<16x32xf32>
    %c0_66 = arith.constant 0 : index
    %c0_67 = arith.constant 0 : index
    %c0_68 = arith.constant 0 : index
    %152 = vector.load %arg14[%c0_66, %c0_67, %c0_68] : memref<2x32x32xf32, #tpu.memory_space<vmem>>, vector<1x32x32xf32>
    %153 = vector.shape_cast %152 : vector<1x32x32xf32> to vector<32x32xf32>
    %cst_69 = arith.constant dense<0.000000e+00> : vector<16x32xf32>
    %154 = tpu.matmul %151, %153, %cst_69 {dimension_numbers = #tpu.dot_dimension_numbers<[1], [0], [0], [1], [0, 0, 1, 1], [], []>} : vector<16x32xf32>, vector<32x32xf32>, vector<16x32xf32> -> vector<16x32xf32>
    %c0_70 = arith.constant 0 : index
    %c0_71 = arith.constant 0 : index
    %c0_72 = arith.constant 0 : index
    %155 = vector.load %arg15[%c0_70, %c0_71, %c0_72] : memref<2x1x32xf32, #tpu.memory_space<vmem>>, vector<1x1x32xf32>
    %156 = vector.shape_cast %155 : vector<1x1x32xf32> to vector<1x32xf32>
    %157 = vector.broadcast %156 : vector<1x32xf32> to vector<16x32xf32>
    %158 = arith.addf %154, %157 : vector<16x32xf32>
    %c0_73 = arith.constant 0 : index
    %c0_74 = arith.constant 0 : index
    %c0_75 = arith.constant 0 : index
    %159 = vector.load %arg16[%c0_73, %c0_74, %c0_75] : memref<2x32x64xf32, #tpu.memory_space<vmem>>, vector<1x32x64xf32>
    %160 = vector.shape_cast %159 : vector<1x32x64xf32> to vector<32x64xf32>
    %cst_76 = arith.constant dense<0.000000e+00> : vector<16x64xf32>
    %161 = tpu.matmul %36, %160, %cst_76 {dimension_numbers = #tpu.dot_dimension_numbers<[1], [0], [0], [1], [0, 0, 1, 1], [], []>} : vector<16x32xf32>, vector<32x64xf32>, vector<16x64xf32> -> vector<16x64xf32>
    %c0_77 = arith.constant 0 : index
    %c0_78 = arith.constant 0 : index
    %c0_79 = arith.constant 0 : index
    %162 = vector.load %arg17[%c0_77, %c0_78, %c0_79] : memref<2x1x64xf32, #tpu.memory_space<vmem>>, vector<1x1x64xf32>
    %163 = vector.shape_cast %162 : vector<1x1x64xf32> to vector<1x64xf32>
    %164 = vector.broadcast %163 : vector<1x64xf32> to vector<16x64xf32>
    %165 = arith.addf %161, %164 : vector<16x64xf32>
    %166 = vector.extract_strided_slice %165 {offsets = [0, 0], sizes = [16, 32], strides = [1, 1]} : vector<16x64xf32> to vector<16x32xf32>
    %167 = vector.extract_strided_slice %165 {offsets = [0, 32], sizes = [16, 32], strides = [1, 1]} : vector<16x64xf32> to vector<16x32xf32>
    %168 = vector.extract_strided_slice %158 {offsets = [0, 0], sizes = [16, 8], strides = [1, 1]} : vector<16x32xf32> to vector<16x8xf32>
    %169 = vector.extract_strided_slice %166 {offsets = [0, 0], sizes = [16, 8], strides = [1, 1]} : vector<16x32xf32> to vector<16x8xf32>
    %cst_80 = arith.constant dense<0.000000e+00> : vector<16x16xf32>
    %170 = tpu.matmul %168, %169, %cst_80 {dimension_numbers = #tpu.dot_dimension_numbers<[1], [1], [0], [0], [0, 0, 1, 0], [], []>} : vector<16x8xf32>, vector<16x8xf32>, vector<16x16xf32> -> vector<16x16xf32>
    %cst_81 = arith.constant 0.353553385 : f32
    %171 = vector.broadcast %cst_81 : f32 to vector<16x16xf32>
    %172 = arith.mulf %170, %171 : vector<16x16xf32>
    %173 = arith.addf %172, %38 : vector<16x16xf32>
    %cst_82 = arith.constant dense<0xFF800000> : vector<16xf32>
    %174 = vector.multi_reduction <maximumf>, %173, %cst_82 [1] : vector<16x16xf32> to vector<16xf32>
    %175 = vector.shape_cast %174 : vector<16xf32> to vector<16x1xf32>
    %176 = vector.broadcast %175 : vector<16x1xf32> to vector<16x16xf32>
    %177 = arith.subf %173, %176 : vector<16x16xf32>
    %178 = math.exp %177 : vector<16x16xf32>
    %cst_83 = arith.constant dense<0.000000e+00> : vector<16xf32>
    %179 = vector.multi_reduction <add>, %178, %cst_83 [1] : vector<16x16xf32> to vector<16xf32>
    %180 = vector.shape_cast %179 : vector<16xf32> to vector<16x1xf32>
    %181 = vector.broadcast %180 : vector<16x1xf32> to vector<16x16xf32>
    %182 = arith.divf %178, %181 : vector<16x16xf32>
    %183 = vector.extract_strided_slice %167 {offsets = [0, 0], sizes = [16, 8], strides = [1, 1]} : vector<16x32xf32> to vector<16x8xf32>
    %cst_84 = arith.constant dense<0.000000e+00> : vector<16x8xf32>
    %184 = tpu.matmul %182, %183, %cst_84 {dimension_numbers = #tpu.dot_dimension_numbers<[1], [0], [0], [1], [0, 0, 1, 1], [], []>} : vector<16x16xf32>, vector<16x8xf32>, vector<16x8xf32> -> vector<16x8xf32>
    %185 = vector.extract_strided_slice %158 {offsets = [0, 8], sizes = [16, 8], strides = [1, 1]} : vector<16x32xf32> to vector<16x8xf32>
    %186 = vector.extract_strided_slice %166 {offsets = [0, 8], sizes = [16, 8], strides = [1, 1]} : vector<16x32xf32> to vector<16x8xf32>
    %cst_85 = arith.constant dense<0.000000e+00> : vector<16x16xf32>
    %187 = tpu.matmul %185, %186, %cst_85 {dimension_numbers = #tpu.dot_dimension_numbers<[1], [1], [0], [0], [0, 0, 1, 0], [], []>} : vector<16x8xf32>, vector<16x8xf32>, vector<16x16xf32> -> vector<16x16xf32>
    %cst_86 = arith.constant 0.353553385 : f32
    %188 = vector.broadcast %cst_86 : f32 to vector<16x16xf32>
    %189 = arith.mulf %187, %188 : vector<16x16xf32>
    %190 = arith.addf %189, %38 : vector<16x16xf32>
    %cst_87 = arith.constant dense<0xFF800000> : vector<16xf32>
    %191 = vector.multi_reduction <maximumf>, %190, %cst_87 [1] : vector<16x16xf32> to vector<16xf32>
    %192 = vector.shape_cast %191 : vector<16xf32> to vector<16x1xf32>
    %193 = vector.broadcast %192 : vector<16x1xf32> to vector<16x16xf32>
    %194 = arith.subf %190, %193 : vector<16x16xf32>
    %195 = math.exp %194 : vector<16x16xf32>
    %cst_88 = arith.constant dense<0.000000e+00> : vector<16xf32>
    %196 = vector.multi_reduction <add>, %195, %cst_88 [1] : vector<16x16xf32> to vector<16xf32>
    %197 = vector.shape_cast %196 : vector<16xf32> to vector<16x1xf32>
    %198 = vector.broadcast %197 : vector<16x1xf32> to vector<16x16xf32>
    %199 = arith.divf %195, %198 : vector<16x16xf32>
    %200 = vector.extract_strided_slice %167 {offsets = [0, 8], sizes = [16, 8], strides = [1, 1]} : vector<16x32xf32> to vector<16x8xf32>
    %cst_89 = arith.constant dense<0.000000e+00> : vector<16x8xf32>
    %201 = tpu.matmul %199, %200, %cst_89 {dimension_numbers = #tpu.dot_dimension_numbers<[1], [0], [0], [1], [0, 0, 1, 1], [], []>} : vector<16x16xf32>, vector<16x8xf32>, vector<16x8xf32> -> vector<16x8xf32>
    %202 = vector.extract_strided_slice %158 {offsets = [0, 16], sizes = [16, 8], strides = [1, 1]} : vector<16x32xf32> to vector<16x8xf32>
    %203 = vector.extract_strided_slice %166 {offsets = [0, 16], sizes = [16, 8], strides = [1, 1]} : vector<16x32xf32> to vector<16x8xf32>
    %cst_90 = arith.constant dense<0.000000e+00> : vector<16x16xf32>
    %204 = tpu.matmul %202, %203, %cst_90 {dimension_numbers = #tpu.dot_dimension_numbers<[1], [1], [0], [0], [0, 0, 1, 0], [], []>} : vector<16x8xf32>, vector<16x8xf32>, vector<16x16xf32> -> vector<16x16xf32>
    %cst_91 = arith.constant 0.353553385 : f32
    %205 = vector.broadcast %cst_91 : f32 to vector<16x16xf32>
    %206 = arith.mulf %204, %205 : vector<16x16xf32>
    %207 = arith.addf %206, %38 : vector<16x16xf32>
    %cst_92 = arith.constant dense<0xFF800000> : vector<16xf32>
    %208 = vector.multi_reduction <maximumf>, %207, %cst_92 [1] : vector<16x16xf32> to vector<16xf32>
    %209 = vector.shape_cast %208 : vector<16xf32> to vector<16x1xf32>
    %210 = vector.broadcast %209 : vector<16x1xf32> to vector<16x16xf32>
    %211 = arith.subf %207, %210 : vector<16x16xf32>
    %212 = math.exp %211 : vector<16x16xf32>
    %cst_93 = arith.constant dense<0.000000e+00> : vector<16xf32>
    %213 = vector.multi_reduction <add>, %212, %cst_93 [1] : vector<16x16xf32> to vector<16xf32>
    %214 = vector.shape_cast %213 : vector<16xf32> to vector<16x1xf32>
    %215 = vector.broadcast %214 : vector<16x1xf32> to vector<16x16xf32>
    %216 = arith.divf %212, %215 : vector<16x16xf32>
    %217 = vector.extract_strided_slice %167 {offsets = [0, 16], sizes = [16, 8], strides = [1, 1]} : vector<16x32xf32> to vector<16x8xf32>
    %cst_94 = arith.constant dense<0.000000e+00> : vector<16x8xf32>
    %218 = tpu.matmul %216, %217, %cst_94 {dimension_numbers = #tpu.dot_dimension_numbers<[1], [0], [0], [1], [0, 0, 1, 1], [], []>} : vector<16x16xf32>, vector<16x8xf32>, vector<16x8xf32> -> vector<16x8xf32>
    %219 = vector.extract_strided_slice %158 {offsets = [0, 24], sizes = [16, 8], strides = [1, 1]} : vector<16x32xf32> to vector<16x8xf32>
    %220 = vector.extract_strided_slice %166 {offsets = [0, 24], sizes = [16, 8], strides = [1, 1]} : vector<16x32xf32> to vector<16x8xf32>
    %cst_95 = arith.constant dense<0.000000e+00> : vector<16x16xf32>
    %221 = tpu.matmul %219, %220, %cst_95 {dimension_numbers = #tpu.dot_dimension_numbers<[1], [1], [0], [0], [0, 0, 1, 0], [], []>} : vector<16x8xf32>, vector<16x8xf32>, vector<16x16xf32> -> vector<16x16xf32>
    %cst_96 = arith.constant 0.353553385 : f32
    %222 = vector.broadcast %cst_96 : f32 to vector<16x16xf32>
    %223 = arith.mulf %221, %222 : vector<16x16xf32>
    %224 = arith.addf %223, %38 : vector<16x16xf32>
    %cst_97 = arith.constant dense<0xFF800000> : vector<16xf32>
    %225 = vector.multi_reduction <maximumf>, %224, %cst_97 [1] : vector<16x16xf32> to vector<16xf32>
    %226 = vector.shape_cast %225 : vector<16xf32> to vector<16x1xf32>
    %227 = vector.broadcast %226 : vector<16x1xf32> to vector<16x16xf32>
    %228 = arith.subf %224, %227 : vector<16x16xf32>
    %229 = math.exp %228 : vector<16x16xf32>
    %cst_98 = arith.constant dense<0.000000e+00> : vector<16xf32>
    %230 = vector.multi_reduction <add>, %229, %cst_98 [1] : vector<16x16xf32> to vector<16xf32>
    %231 = vector.shape_cast %230 : vector<16xf32> to vector<16x1xf32>
    %232 = vector.broadcast %231 : vector<16x1xf32> to vector<16x16xf32>
    %233 = arith.divf %229, %232 : vector<16x16xf32>
    %234 = vector.extract_strided_slice %167 {offsets = [0, 24], sizes = [16, 8], strides = [1, 1]} : vector<16x32xf32> to vector<16x8xf32>
    %cst_99 = arith.constant dense<0.000000e+00> : vector<16x8xf32>
    %235 = tpu.matmul %233, %234, %cst_99 {dimension_numbers = #tpu.dot_dimension_numbers<[1], [0], [0], [1], [0, 0, 1, 1], [], []>} : vector<16x16xf32>, vector<16x8xf32>, vector<16x8xf32> -> vector<16x8xf32>
    %236 = tpu.concatenate %184, %201, %218, %235 in 1 : vector<16x8xf32>, vector<16x8xf32>, vector<16x8xf32>, vector<16x8xf32> -> vector<16x32xf32>
    %c0_100 = arith.constant 0 : index
    %c0_101 = arith.constant 0 : index
    %c0_102 = arith.constant 0 : index
    %237 = vector.load %arg18[%c0_100, %c0_101, %c0_102] : memref<2x32x32xf32, #tpu.memory_space<vmem>>, vector<1x32x32xf32>
    %238 = vector.shape_cast %237 : vector<1x32x32xf32> to vector<32x32xf32>
    %cst_103 = arith.constant dense<0.000000e+00> : vector<16x32xf32>
    %239 = tpu.matmul %236, %238, %cst_103 {dimension_numbers = #tpu.dot_dimension_numbers<[1], [0], [0], [1], [0, 0, 1, 1], [], []>} : vector<16x32xf32>, vector<32x32xf32>, vector<16x32xf32> -> vector<16x32xf32>
    %c0_104 = arith.constant 0 : index
    %c0_105 = arith.constant 0 : index
    %c0_106 = arith.constant 0 : index
    %240 = vector.load %arg19[%c0_104, %c0_105, %c0_106] : memref<2x1x32xf32, #tpu.memory_space<vmem>>, vector<1x1x32xf32>
    %241 = vector.shape_cast %240 : vector<1x1x32xf32> to vector<1x32xf32>
    %242 = vector.broadcast %241 : vector<1x32xf32> to vector<16x32xf32>
    %243 = arith.addf %239, %242 : vector<16x32xf32>
    %244 = arith.addf %151, %243 : vector<16x32xf32>
    %c0_107 = arith.constant 0 : index
    %c0_108 = arith.constant 0 : index
    %c0_109 = arith.constant 0 : index
    %245 = vector.load %arg22[%c0_107, %c0_108, %c0_109] : memref<2x1x32xf32, #tpu.memory_space<vmem>>, vector<1x1x32xf32>
    %246 = vector.shape_cast %245 : vector<1x1x32xf32> to vector<1x32xf32>
    %c0_110 = arith.constant 0 : index
    %c0_111 = arith.constant 0 : index
    %c0_112 = arith.constant 0 : index
    %247 = vector.load %arg23[%c0_110, %c0_111, %c0_112] : memref<2x1x32xf32, #tpu.memory_space<vmem>>, vector<1x1x32xf32>
    %248 = vector.shape_cast %247 : vector<1x1x32xf32> to vector<1x32xf32>
    %cst_113 = arith.constant dense<0.000000e+00> : vector<16xf32>
    %249 = vector.multi_reduction <add>, %244, %cst_113 [1] : vector<16x32xf32> to vector<16xf32>
    %250 = vector.shape_cast %249 : vector<16xf32> to vector<16x1xf32>
    %cst_114 = arith.constant 3.200000e+01 : f32
    %251 = vector.broadcast %cst_114 : f32 to vector<16x1xf32>
    %252 = arith.divf %250, %251 : vector<16x1xf32>
    %253 = vector.broadcast %252 : vector<16x1xf32> to vector<16x32xf32>
    %254 = arith.subf %244, %253 : vector<16x32xf32>
    %255 = arith.mulf %254, %254 : vector<16x32xf32>
    %cst_115 = arith.constant dense<0.000000e+00> : vector<16xf32>
    %256 = vector.multi_reduction <add>, %255, %cst_115 [1] : vector<16x32xf32> to vector<16xf32>
    %257 = vector.shape_cast %256 : vector<16xf32> to vector<16x1xf32>
    %cst_116 = arith.constant 3.200000e+01 : f32
    %258 = vector.broadcast %cst_116 : f32 to vector<16x1xf32>
    %259 = arith.divf %257, %258 : vector<16x1xf32>
    %260 = vector.broadcast %252 : vector<16x1xf32> to vector<16x32xf32>
    %261 = arith.subf %244, %260 : vector<16x32xf32>
    %cst_117 = arith.constant 9.99999974E-6 : f32
    %262 = vector.broadcast %cst_117 : f32 to vector<16x1xf32>
    %263 = arith.addf %259, %262 : vector<16x1xf32>
    %264 = math.rsqrt %263 : vector<16x1xf32>
    %265 = vector.broadcast %264 : vector<16x1xf32> to vector<16x32xf32>
    %266 = arith.mulf %261, %265 : vector<16x32xf32>
    %267 = vector.broadcast %246 : vector<1x32xf32> to vector<16x32xf32>
    %268 = arith.mulf %266, %267 : vector<16x32xf32>
    %269 = vector.broadcast %248 : vector<1x32xf32> to vector<16x32xf32>
    %270 = arith.addf %268, %269 : vector<16x32xf32>
    %c0_118 = arith.constant 0 : index
    %c0_119 = arith.constant 0 : index
    %c0_120 = arith.constant 0 : index
    %271 = vector.load %arg26[%c0_118, %c0_119, %c0_120] : memref<2x32x64xf32, #tpu.memory_space<vmem>>, vector<1x32x64xf32>
    %272 = vector.shape_cast %271 : vector<1x32x64xf32> to vector<32x64xf32>
    %cst_121 = arith.constant dense<0.000000e+00> : vector<16x64xf32>
    %273 = tpu.matmul %270, %272, %cst_121 {dimension_numbers = #tpu.dot_dimension_numbers<[1], [0], [0], [1], [0, 0, 1, 1], [], []>} : vector<16x32xf32>, vector<32x64xf32>, vector<16x64xf32> -> vector<16x64xf32>
    %c0_122 = arith.constant 0 : index
    %c0_123 = arith.constant 0 : index
    %c0_124 = arith.constant 0 : index
    %274 = vector.load %arg27[%c0_122, %c0_123, %c0_124] : memref<2x1x64xf32, #tpu.memory_space<vmem>>, vector<1x1x64xf32>
    %275 = vector.shape_cast %274 : vector<1x1x64xf32> to vector<1x64xf32>
    %276 = vector.broadcast %275 : vector<1x64xf32> to vector<16x64xf32>
    %277 = arith.addf %273, %276 : vector<16x64xf32>
    %278 = arith.mulf %277, %277 : vector<16x64xf32>
    %279 = arith.mulf %277, %278 : vector<16x64xf32>
    %cst_125 = arith.constant 4.471500e-02 : f32
    %280 = vector.broadcast %cst_125 : f32 to vector<16x64xf32>
    %281 = arith.mulf %280, %279 : vector<16x64xf32>
    %282 = arith.addf %277, %281 : vector<16x64xf32>
    %cst_126 = arith.constant 0.797884583 : f32
    %283 = vector.broadcast %cst_126 : f32 to vector<16x64xf32>
    %284 = arith.mulf %283, %282 : vector<16x64xf32>
    %285 = math.tanh %284 : vector<16x64xf32>
    %cst_127 = arith.constant 1.000000e+00 : f32
    %286 = vector.broadcast %cst_127 : f32 to vector<16x64xf32>
    %287 = arith.addf %286, %285 : vector<16x64xf32>
    %cst_128 = arith.constant 5.000000e-01 : f32
    %288 = vector.broadcast %cst_128 : f32 to vector<16x64xf32>
    %289 = arith.mulf %288, %287 : vector<16x64xf32>
    %290 = arith.mulf %277, %289 : vector<16x64xf32>
    %c0_129 = arith.constant 0 : index
    %c0_130 = arith.constant 0 : index
    %c0_131 = arith.constant 0 : index
    %291 = vector.load %arg28[%c0_129, %c0_130, %c0_131] : memref<2x64x32xf32, #tpu.memory_space<vmem>>, vector<1x64x32xf32>
    %292 = vector.shape_cast %291 : vector<1x64x32xf32> to vector<64x32xf32>
    %cst_132 = arith.constant dense<0.000000e+00> : vector<16x32xf32>
    %293 = tpu.matmul %290, %292, %cst_132 {dimension_numbers = #tpu.dot_dimension_numbers<[1], [0], [0], [1], [0, 0, 1, 1], [], []>} : vector<16x64xf32>, vector<64x32xf32>, vector<16x32xf32> -> vector<16x32xf32>
    %c0_133 = arith.constant 0 : index
    %c0_134 = arith.constant 0 : index
    %c0_135 = arith.constant 0 : index
    %294 = vector.load %arg29[%c0_133, %c0_134, %c0_135] : memref<2x1x32xf32, #tpu.memory_space<vmem>>, vector<1x1x32xf32>
    %295 = vector.shape_cast %294 : vector<1x1x32xf32> to vector<1x32xf32>
    %296 = vector.broadcast %295 : vector<1x32xf32> to vector<16x32xf32>
    %297 = arith.addf %293, %296 : vector<16x32xf32>
    %298 = arith.addf %270, %297 : vector<16x32xf32>
    %c0_136 = arith.constant 0 : index
    %c0_137 = arith.constant 0 : index
    %c0_138 = arith.constant 0 : index
    %299 = vector.load %arg24[%c0_136, %c0_137, %c0_138] : memref<2x1x32xf32, #tpu.memory_space<vmem>>, vector<1x1x32xf32>
    %300 = vector.shape_cast %299 : vector<1x1x32xf32> to vector<1x32xf32>
    %c0_139 = arith.constant 0 : index
    %c0_140 = arith.constant 0 : index
    %c0_141 = arith.constant 0 : index
    %301 = vector.load %arg25[%c0_139, %c0_140, %c0_141] : memref<2x1x32xf32, #tpu.memory_space<vmem>>, vector<1x1x32xf32>
    %302 = vector.shape_cast %301 : vector<1x1x32xf32> to vector<1x32xf32>
    %cst_142 = arith.constant dense<0.000000e+00> : vector<16xf32>
    %303 = vector.multi_reduction <add>, %298, %cst_142 [1] : vector<16x32xf32> to vector<16xf32>
    %304 = vector.shape_cast %303 : vector<16xf32> to vector<16x1xf32>
    %cst_143 = arith.constant 3.200000e+01 : f32
    %305 = vector.broadcast %cst_143 : f32 to vector<16x1xf32>
    %306 = arith.divf %304, %305 : vector<16x1xf32>
    %307 = vector.broadcast %306 : vector<16x1xf32> to vector<16x32xf32>
    %308 = arith.subf %298, %307 : vector<16x32xf32>
    %309 = arith.mulf %308, %308 : vector<16x32xf32>
    %cst_144 = arith.constant dense<0.000000e+00> : vector<16xf32>
    %310 = vector.multi_reduction <add>, %309, %cst_144 [1] : vector<16x32xf32> to vector<16xf32>
    %311 = vector.shape_cast %310 : vector<16xf32> to vector<16x1xf32>
    %cst_145 = arith.constant 3.200000e+01 : f32
    %312 = vector.broadcast %cst_145 : f32 to vector<16x1xf32>
    %313 = arith.divf %311, %312 : vector<16x1xf32>
    %314 = vector.broadcast %306 : vector<16x1xf32> to vector<16x32xf32>
    %315 = arith.subf %298, %314 : vector<16x32xf32>
    %cst_146 = arith.constant 9.99999974E-6 : f32
    %316 = vector.broadcast %cst_146 : f32 to vector<16x1xf32>
    %317 = arith.addf %313, %316 : vector<16x1xf32>
    %318 = math.rsqrt %317 : vector<16x1xf32>
    %319 = vector.broadcast %318 : vector<16x1xf32> to vector<16x32xf32>
    %320 = arith.mulf %315, %319 : vector<16x32xf32>
    %321 = vector.broadcast %300 : vector<1x32xf32> to vector<16x32xf32>
    %322 = arith.mulf %320, %321 : vector<16x32xf32>
    %323 = vector.broadcast %302 : vector<1x32xf32> to vector<16x32xf32>
    %324 = arith.addf %322, %323 : vector<16x32xf32>
    %c1 = arith.constant 1 : index
    %c0_147 = arith.constant 0 : index
    %c0_148 = arith.constant 0 : index
    %325 = vector.load %arg10[%c1, %c0_147, %c0_148] : memref<2x32x96xf32, #tpu.memory_space<vmem>>, vector<1x32x96xf32>
    %326 = vector.shape_cast %325 : vector<1x32x96xf32> to vector<32x96xf32>
    %cst_149 = arith.constant dense<0.000000e+00> : vector<16x96xf32>
    %327 = tpu.matmul %324, %326, %cst_149 {dimension_numbers = #tpu.dot_dimension_numbers<[1], [0], [0], [1], [0, 0, 1, 1], [], []>} : vector<16x32xf32>, vector<32x96xf32>, vector<16x96xf32> -> vector<16x96xf32>
    %c1_150 = arith.constant 1 : index
    %c0_151 = arith.constant 0 : index
    %c0_152 = arith.constant 0 : index
    %328 = vector.load %arg11[%c1_150, %c0_151, %c0_152] : memref<2x1x96xf32, #tpu.memory_space<vmem>>, vector<1x1x96xf32>
    %329 = vector.shape_cast %328 : vector<1x1x96xf32> to vector<1x96xf32>
    %330 = vector.broadcast %329 : vector<1x96xf32> to vector<16x96xf32>
    %331 = arith.addf %327, %330 : vector<16x96xf32>
    %332 = vector.extract_strided_slice %331 {offsets = [0, 0], sizes = [16, 32], strides = [1, 1]} : vector<16x96xf32> to vector<16x32xf32>
    %333 = vector.extract_strided_slice %331 {offsets = [0, 32], sizes = [16, 32], strides = [1, 1]} : vector<16x96xf32> to vector<16x32xf32>
    %334 = vector.extract_strided_slice %331 {offsets = [0, 64], sizes = [16, 32], strides = [1, 1]} : vector<16x96xf32> to vector<16x32xf32>
    %335 = vector.extract_strided_slice %332 {offsets = [0, 0], sizes = [16, 8], strides = [1, 1]} : vector<16x32xf32> to vector<16x8xf32>
    %336 = vector.extract_strided_slice %333 {offsets = [0, 0], sizes = [16, 8], strides = [1, 1]} : vector<16x32xf32> to vector<16x8xf32>
    %cst_153 = arith.constant dense<0.000000e+00> : vector<16x16xf32>
    %337 = tpu.matmul %335, %336, %cst_153 {dimension_numbers = #tpu.dot_dimension_numbers<[1], [1], [0], [0], [0, 0, 1, 0], [], []>} : vector<16x8xf32>, vector<16x8xf32>, vector<16x16xf32> -> vector<16x16xf32>
    %cst_154 = arith.constant 0.353553385 : f32
    %338 = vector.broadcast %cst_154 : f32 to vector<16x16xf32>
    %339 = arith.mulf %337, %338 : vector<16x16xf32>
    %340 = arith.addf %339, %37 : vector<16x16xf32>
    %cst_155 = arith.constant dense<0xFF800000> : vector<16xf32>
    %341 = vector.multi_reduction <maximumf>, %340, %cst_155 [1] : vector<16x16xf32> to vector<16xf32>
    %342 = vector.shape_cast %341 : vector<16xf32> to vector<16x1xf32>
    %343 = vector.broadcast %342 : vector<16x1xf32> to vector<16x16xf32>
    %344 = arith.subf %340, %343 : vector<16x16xf32>
    %345 = math.exp %344 : vector<16x16xf32>
    %cst_156 = arith.constant dense<0.000000e+00> : vector<16xf32>
    %346 = vector.multi_reduction <add>, %345, %cst_156 [1] : vector<16x16xf32> to vector<16xf32>
    %347 = vector.shape_cast %346 : vector<16xf32> to vector<16x1xf32>
    %348 = vector.broadcast %347 : vector<16x1xf32> to vector<16x16xf32>
    %349 = arith.divf %345, %348 : vector<16x16xf32>
    %350 = vector.extract_strided_slice %334 {offsets = [0, 0], sizes = [16, 8], strides = [1, 1]} : vector<16x32xf32> to vector<16x8xf32>
    %cst_157 = arith.constant dense<0.000000e+00> : vector<16x8xf32>
    %351 = tpu.matmul %349, %350, %cst_157 {dimension_numbers = #tpu.dot_dimension_numbers<[1], [0], [0], [1], [0, 0, 1, 1], [], []>} : vector<16x16xf32>, vector<16x8xf32>, vector<16x8xf32> -> vector<16x8xf32>
    %352 = vector.extract_strided_slice %332 {offsets = [0, 8], sizes = [16, 8], strides = [1, 1]} : vector<16x32xf32> to vector<16x8xf32>
    %353 = vector.extract_strided_slice %333 {offsets = [0, 8], sizes = [16, 8], strides = [1, 1]} : vector<16x32xf32> to vector<16x8xf32>
    %cst_158 = arith.constant dense<0.000000e+00> : vector<16x16xf32>
    %354 = tpu.matmul %352, %353, %cst_158 {dimension_numbers = #tpu.dot_dimension_numbers<[1], [1], [0], [0], [0, 0, 1, 0], [], []>} : vector<16x8xf32>, vector<16x8xf32>, vector<16x16xf32> -> vector<16x16xf32>
    %cst_159 = arith.constant 0.353553385 : f32
    %355 = vector.broadcast %cst_159 : f32 to vector<16x16xf32>
    %356 = arith.mulf %354, %355 : vector<16x16xf32>
    %357 = arith.addf %356, %37 : vector<16x16xf32>
    %cst_160 = arith.constant dense<0xFF800000> : vector<16xf32>
    %358 = vector.multi_reduction <maximumf>, %357, %cst_160 [1] : vector<16x16xf32> to vector<16xf32>
    %359 = vector.shape_cast %358 : vector<16xf32> to vector<16x1xf32>
    %360 = vector.broadcast %359 : vector<16x1xf32> to vector<16x16xf32>
    %361 = arith.subf %357, %360 : vector<16x16xf32>
    %362 = math.exp %361 : vector<16x16xf32>
    %cst_161 = arith.constant dense<0.000000e+00> : vector<16xf32>
    %363 = vector.multi_reduction <add>, %362, %cst_161 [1] : vector<16x16xf32> to vector<16xf32>
    %364 = vector.shape_cast %363 : vector<16xf32> to vector<16x1xf32>
    %365 = vector.broadcast %364 : vector<16x1xf32> to vector<16x16xf32>
    %366 = arith.divf %362, %365 : vector<16x16xf32>
    %367 = vector.extract_strided_slice %334 {offsets = [0, 8], sizes = [16, 8], strides = [1, 1]} : vector<16x32xf32> to vector<16x8xf32>
    %cst_162 = arith.constant dense<0.000000e+00> : vector<16x8xf32>
    %368 = tpu.matmul %366, %367, %cst_162 {dimension_numbers = #tpu.dot_dimension_numbers<[1], [0], [0], [1], [0, 0, 1, 1], [], []>} : vector<16x16xf32>, vector<16x8xf32>, vector<16x8xf32> -> vector<16x8xf32>
    %369 = vector.extract_strided_slice %332 {offsets = [0, 16], sizes = [16, 8], strides = [1, 1]} : vector<16x32xf32> to vector<16x8xf32>
    %370 = vector.extract_strided_slice %333 {offsets = [0, 16], sizes = [16, 8], strides = [1, 1]} : vector<16x32xf32> to vector<16x8xf32>
    %cst_163 = arith.constant dense<0.000000e+00> : vector<16x16xf32>
    %371 = tpu.matmul %369, %370, %cst_163 {dimension_numbers = #tpu.dot_dimension_numbers<[1], [1], [0], [0], [0, 0, 1, 0], [], []>} : vector<16x8xf32>, vector<16x8xf32>, vector<16x16xf32> -> vector<16x16xf32>
    %cst_164 = arith.constant 0.353553385 : f32
    %372 = vector.broadcast %cst_164 : f32 to vector<16x16xf32>
    %373 = arith.mulf %371, %372 : vector<16x16xf32>
    %374 = arith.addf %373, %37 : vector<16x16xf32>
    %cst_165 = arith.constant dense<0xFF800000> : vector<16xf32>
    %375 = vector.multi_reduction <maximumf>, %374, %cst_165 [1] : vector<16x16xf32> to vector<16xf32>
    %376 = vector.shape_cast %375 : vector<16xf32> to vector<16x1xf32>
    %377 = vector.broadcast %376 : vector<16x1xf32> to vector<16x16xf32>
    %378 = arith.subf %374, %377 : vector<16x16xf32>
    %379 = math.exp %378 : vector<16x16xf32>
    %cst_166 = arith.constant dense<0.000000e+00> : vector<16xf32>
    %380 = vector.multi_reduction <add>, %379, %cst_166 [1] : vector<16x16xf32> to vector<16xf32>
    %381 = vector.shape_cast %380 : vector<16xf32> to vector<16x1xf32>
    %382 = vector.broadcast %381 : vector<16x1xf32> to vector<16x16xf32>
    %383 = arith.divf %379, %382 : vector<16x16xf32>
    %384 = vector.extract_strided_slice %334 {offsets = [0, 16], sizes = [16, 8], strides = [1, 1]} : vector<16x32xf32> to vector<16x8xf32>
    %cst_167 = arith.constant dense<0.000000e+00> : vector<16x8xf32>
    %385 = tpu.matmul %383, %384, %cst_167 {dimension_numbers = #tpu.dot_dimension_numbers<[1], [0], [0], [1], [0, 0, 1, 1], [], []>} : vector<16x16xf32>, vector<16x8xf32>, vector<16x8xf32> -> vector<16x8xf32>
    %386 = vector.extract_strided_slice %332 {offsets = [0, 24], sizes = [16, 8], strides = [1, 1]} : vector<16x32xf32> to vector<16x8xf32>
    %387 = vector.extract_strided_slice %333 {offsets = [0, 24], sizes = [16, 8], strides = [1, 1]} : vector<16x32xf32> to vector<16x8xf32>
    %cst_168 = arith.constant dense<0.000000e+00> : vector<16x16xf32>
    %388 = tpu.matmul %386, %387, %cst_168 {dimension_numbers = #tpu.dot_dimension_numbers<[1], [1], [0], [0], [0, 0, 1, 0], [], []>} : vector<16x8xf32>, vector<16x8xf32>, vector<16x16xf32> -> vector<16x16xf32>
    %cst_169 = arith.constant 0.353553385 : f32
    %389 = vector.broadcast %cst_169 : f32 to vector<16x16xf32>
    %390 = arith.mulf %388, %389 : vector<16x16xf32>
    %391 = arith.addf %390, %37 : vector<16x16xf32>
    %cst_170 = arith.constant dense<0xFF800000> : vector<16xf32>
    %392 = vector.multi_reduction <maximumf>, %391, %cst_170 [1] : vector<16x16xf32> to vector<16xf32>
    %393 = vector.shape_cast %392 : vector<16xf32> to vector<16x1xf32>
    %394 = vector.broadcast %393 : vector<16x1xf32> to vector<16x16xf32>
    %395 = arith.subf %391, %394 : vector<16x16xf32>
    %396 = math.exp %395 : vector<16x16xf32>
    %cst_171 = arith.constant dense<0.000000e+00> : vector<16xf32>
    %397 = vector.multi_reduction <add>, %396, %cst_171 [1] : vector<16x16xf32> to vector<16xf32>
    %398 = vector.shape_cast %397 : vector<16xf32> to vector<16x1xf32>
    %399 = vector.broadcast %398 : vector<16x1xf32> to vector<16x16xf32>
    %400 = arith.divf %396, %399 : vector<16x16xf32>
    %401 = vector.extract_strided_slice %334 {offsets = [0, 24], sizes = [16, 8], strides = [1, 1]} : vector<16x32xf32> to vector<16x8xf32>
    %cst_172 = arith.constant dense<0.000000e+00> : vector<16x8xf32>
    %402 = tpu.matmul %400, %401, %cst_172 {dimension_numbers = #tpu.dot_dimension_numbers<[1], [0], [0], [1], [0, 0, 1, 1], [], []>} : vector<16x16xf32>, vector<16x8xf32>, vector<16x8xf32> -> vector<16x8xf32>
    %403 = tpu.concatenate %351, %368, %385, %402 in 1 : vector<16x8xf32>, vector<16x8xf32>, vector<16x8xf32>, vector<16x8xf32> -> vector<16x32xf32>
    %c1_173 = arith.constant 1 : index
    %c0_174 = arith.constant 0 : index
    %c0_175 = arith.constant 0 : index
    %404 = vector.load %arg12[%c1_173, %c0_174, %c0_175] : memref<2x32x32xf32, #tpu.memory_space<vmem>>, vector<1x32x32xf32>
    %405 = vector.shape_cast %404 : vector<1x32x32xf32> to vector<32x32xf32>
    %cst_176 = arith.constant dense<0.000000e+00> : vector<16x32xf32>
    %406 = tpu.matmul %403, %405, %cst_176 {dimension_numbers = #tpu.dot_dimension_numbers<[1], [0], [0], [1], [0, 0, 1, 1], [], []>} : vector<16x32xf32>, vector<32x32xf32>, vector<16x32xf32> -> vector<16x32xf32>
    %c1_177 = arith.constant 1 : index
    %c0_178 = arith.constant 0 : index
    %c0_179 = arith.constant 0 : index
    %407 = vector.load %arg13[%c1_177, %c0_178, %c0_179] : memref<2x1x32xf32, #tpu.memory_space<vmem>>, vector<1x1x32xf32>
    %408 = vector.shape_cast %407 : vector<1x1x32xf32> to vector<1x32xf32>
    %409 = vector.broadcast %408 : vector<1x32xf32> to vector<16x32xf32>
    %410 = arith.addf %406, %409 : vector<16x32xf32>
    %411 = arith.addf %324, %410 : vector<16x32xf32>
    %c1_180 = arith.constant 1 : index
    %c0_181 = arith.constant 0 : index
    %c0_182 = arith.constant 0 : index
    %412 = vector.load %arg20[%c1_180, %c0_181, %c0_182] : memref<2x1x32xf32, #tpu.memory_space<vmem>>, vector<1x1x32xf32>
    %413 = vector.shape_cast %412 : vector<1x1x32xf32> to vector<1x32xf32>
    %c1_183 = arith.constant 1 : index
    %c0_184 = arith.constant 0 : index
    %c0_185 = arith.constant 0 : index
    %414 = vector.load %arg21[%c1_183, %c0_184, %c0_185] : memref<2x1x32xf32, #tpu.memory_space<vmem>>, vector<1x1x32xf32>
    %415 = vector.shape_cast %414 : vector<1x1x32xf32> to vector<1x32xf32>
    %cst_186 = arith.constant dense<0.000000e+00> : vector<16xf32>
    %416 = vector.multi_reduction <add>, %411, %cst_186 [1] : vector<16x32xf32> to vector<16xf32>
    %417 = vector.shape_cast %416 : vector<16xf32> to vector<16x1xf32>
    %cst_187 = arith.constant 3.200000e+01 : f32
    %418 = vector.broadcast %cst_187 : f32 to vector<16x1xf32>
    %419 = arith.divf %417, %418 : vector<16x1xf32>
    %420 = vector.broadcast %419 : vector<16x1xf32> to vector<16x32xf32>
    %421 = arith.subf %411, %420 : vector<16x32xf32>
    %422 = arith.mulf %421, %421 : vector<16x32xf32>
    %cst_188 = arith.constant dense<0.000000e+00> : vector<16xf32>
    %423 = vector.multi_reduction <add>, %422, %cst_188 [1] : vector<16x32xf32> to vector<16xf32>
    %424 = vector.shape_cast %423 : vector<16xf32> to vector<16x1xf32>
    %cst_189 = arith.constant 3.200000e+01 : f32
    %425 = vector.broadcast %cst_189 : f32 to vector<16x1xf32>
    %426 = arith.divf %424, %425 : vector<16x1xf32>
    %427 = vector.broadcast %419 : vector<16x1xf32> to vector<16x32xf32>
    %428 = arith.subf %411, %427 : vector<16x32xf32>
    %cst_190 = arith.constant 9.99999974E-6 : f32
    %429 = vector.broadcast %cst_190 : f32 to vector<16x1xf32>
    %430 = arith.addf %426, %429 : vector<16x1xf32>
    %431 = math.rsqrt %430 : vector<16x1xf32>
    %432 = vector.broadcast %431 : vector<16x1xf32> to vector<16x32xf32>
    %433 = arith.mulf %428, %432 : vector<16x32xf32>
    %434 = vector.broadcast %413 : vector<1x32xf32> to vector<16x32xf32>
    %435 = arith.mulf %433, %434 : vector<16x32xf32>
    %436 = vector.broadcast %415 : vector<1x32xf32> to vector<16x32xf32>
    %437 = arith.addf %435, %436 : vector<16x32xf32>
    %c1_191 = arith.constant 1 : index
    %c0_192 = arith.constant 0 : index
    %c0_193 = arith.constant 0 : index
    %438 = vector.load %arg14[%c1_191, %c0_192, %c0_193] : memref<2x32x32xf32, #tpu.memory_space<vmem>>, vector<1x32x32xf32>
    %439 = vector.shape_cast %438 : vector<1x32x32xf32> to vector<32x32xf32>
    %cst_194 = arith.constant dense<0.000000e+00> : vector<16x32xf32>
    %440 = tpu.matmul %437, %439, %cst_194 {dimension_numbers = #tpu.dot_dimension_numbers<[1], [0], [0], [1], [0, 0, 1, 1], [], []>} : vector<16x32xf32>, vector<32x32xf32>, vector<16x32xf32> -> vector<16x32xf32>
    %c1_195 = arith.constant 1 : index
    %c0_196 = arith.constant 0 : index
    %c0_197 = arith.constant 0 : index
    %441 = vector.load %arg15[%c1_195, %c0_196, %c0_197] : memref<2x1x32xf32, #tpu.memory_space<vmem>>, vector<1x1x32xf32>
    %442 = vector.shape_cast %441 : vector<1x1x32xf32> to vector<1x32xf32>
    %443 = vector.broadcast %442 : vector<1x32xf32> to vector<16x32xf32>
    %444 = arith.addf %440, %443 : vector<16x32xf32>
    %c1_198 = arith.constant 1 : index
    %c0_199 = arith.constant 0 : index
    %c0_200 = arith.constant 0 : index
    %445 = vector.load %arg16[%c1_198, %c0_199, %c0_200] : memref<2x32x64xf32, #tpu.memory_space<vmem>>, vector<1x32x64xf32>
    %446 = vector.shape_cast %445 : vector<1x32x64xf32> to vector<32x64xf32>
    %cst_201 = arith.constant dense<0.000000e+00> : vector<16x64xf32>
    %447 = tpu.matmul %36, %446, %cst_201 {dimension_numbers = #tpu.dot_dimension_numbers<[1], [0], [0], [1], [0, 0, 1, 1], [], []>} : vector<16x32xf32>, vector<32x64xf32>, vector<16x64xf32> -> vector<16x64xf32>
    %c1_202 = arith.constant 1 : index
    %c0_203 = arith.constant 0 : index
    %c0_204 = arith.constant 0 : index
    %448 = vector.load %arg17[%c1_202, %c0_203, %c0_204] : memref<2x1x64xf32, #tpu.memory_space<vmem>>, vector<1x1x64xf32>
    %449 = vector.shape_cast %448 : vector<1x1x64xf32> to vector<1x64xf32>
    %450 = vector.broadcast %449 : vector<1x64xf32> to vector<16x64xf32>
    %451 = arith.addf %447, %450 : vector<16x64xf32>
    %452 = vector.extract_strided_slice %451 {offsets = [0, 0], sizes = [16, 32], strides = [1, 1]} : vector<16x64xf32> to vector<16x32xf32>
    %453 = vector.extract_strided_slice %451 {offsets = [0, 32], sizes = [16, 32], strides = [1, 1]} : vector<16x64xf32> to vector<16x32xf32>
    %454 = vector.extract_strided_slice %444 {offsets = [0, 0], sizes = [16, 8], strides = [1, 1]} : vector<16x32xf32> to vector<16x8xf32>
    %455 = vector.extract_strided_slice %452 {offsets = [0, 0], sizes = [16, 8], strides = [1, 1]} : vector<16x32xf32> to vector<16x8xf32>
    %cst_205 = arith.constant dense<0.000000e+00> : vector<16x16xf32>
    %456 = tpu.matmul %454, %455, %cst_205 {dimension_numbers = #tpu.dot_dimension_numbers<[1], [1], [0], [0], [0, 0, 1, 0], [], []>} : vector<16x8xf32>, vector<16x8xf32>, vector<16x16xf32> -> vector<16x16xf32>
    %cst_206 = arith.constant 0.353553385 : f32
    %457 = vector.broadcast %cst_206 : f32 to vector<16x16xf32>
    %458 = arith.mulf %456, %457 : vector<16x16xf32>
    %459 = arith.addf %458, %38 : vector<16x16xf32>
    %cst_207 = arith.constant dense<0xFF800000> : vector<16xf32>
    %460 = vector.multi_reduction <maximumf>, %459, %cst_207 [1] : vector<16x16xf32> to vector<16xf32>
    %461 = vector.shape_cast %460 : vector<16xf32> to vector<16x1xf32>
    %462 = vector.broadcast %461 : vector<16x1xf32> to vector<16x16xf32>
    %463 = arith.subf %459, %462 : vector<16x16xf32>
    %464 = math.exp %463 : vector<16x16xf32>
    %cst_208 = arith.constant dense<0.000000e+00> : vector<16xf32>
    %465 = vector.multi_reduction <add>, %464, %cst_208 [1] : vector<16x16xf32> to vector<16xf32>
    %466 = vector.shape_cast %465 : vector<16xf32> to vector<16x1xf32>
    %467 = vector.broadcast %466 : vector<16x1xf32> to vector<16x16xf32>
    %468 = arith.divf %464, %467 : vector<16x16xf32>
    %469 = vector.extract_strided_slice %453 {offsets = [0, 0], sizes = [16, 8], strides = [1, 1]} : vector<16x32xf32> to vector<16x8xf32>
    %cst_209 = arith.constant dense<0.000000e+00> : vector<16x8xf32>
    %470 = tpu.matmul %468, %469, %cst_209 {dimension_numbers = #tpu.dot_dimension_numbers<[1], [0], [0], [1], [0, 0, 1, 1], [], []>} : vector<16x16xf32>, vector<16x8xf32>, vector<16x8xf32> -> vector<16x8xf32>
    %471 = vector.extract_strided_slice %444 {offsets = [0, 8], sizes = [16, 8], strides = [1, 1]} : vector<16x32xf32> to vector<16x8xf32>
    %472 = vector.extract_strided_slice %452 {offsets = [0, 8], sizes = [16, 8], strides = [1, 1]} : vector<16x32xf32> to vector<16x8xf32>
    %cst_210 = arith.constant dense<0.000000e+00> : vector<16x16xf32>
    %473 = tpu.matmul %471, %472, %cst_210 {dimension_numbers = #tpu.dot_dimension_numbers<[1], [1], [0], [0], [0, 0, 1, 0], [], []>} : vector<16x8xf32>, vector<16x8xf32>, vector<16x16xf32> -> vector<16x16xf32>
    %cst_211 = arith.constant 0.353553385 : f32
    %474 = vector.broadcast %cst_211 : f32 to vector<16x16xf32>
    %475 = arith.mulf %473, %474 : vector<16x16xf32>
    %476 = arith.addf %475, %38 : vector<16x16xf32>
    %cst_212 = arith.constant dense<0xFF800000> : vector<16xf32>
    %477 = vector.multi_reduction <maximumf>, %476, %cst_212 [1] : vector<16x16xf32> to vector<16xf32>
    %478 = vector.shape_cast %477 : vector<16xf32> to vector<16x1xf32>
    %479 = vector.broadcast %478 : vector<16x1xf32> to vector<16x16xf32>
    %480 = arith.subf %476, %479 : vector<16x16xf32>
    %481 = math.exp %480 : vector<16x16xf32>
    %cst_213 = arith.constant dense<0.000000e+00> : vector<16xf32>
    %482 = vector.multi_reduction <add>, %481, %cst_213 [1] : vector<16x16xf32> to vector<16xf32>
    %483 = vector.shape_cast %482 : vector<16xf32> to vector<16x1xf32>
    %484 = vector.broadcast %483 : vector<16x1xf32> to vector<16x16xf32>
    %485 = arith.divf %481, %484 : vector<16x16xf32>
    %486 = vector.extract_strided_slice %453 {offsets = [0, 8], sizes = [16, 8], strides = [1, 1]} : vector<16x32xf32> to vector<16x8xf32>
    %cst_214 = arith.constant dense<0.000000e+00> : vector<16x8xf32>
    %487 = tpu.matmul %485, %486, %cst_214 {dimension_numbers = #tpu.dot_dimension_numbers<[1], [0], [0], [1], [0, 0, 1, 1], [], []>} : vector<16x16xf32>, vector<16x8xf32>, vector<16x8xf32> -> vector<16x8xf32>
    %488 = vector.extract_strided_slice %444 {offsets = [0, 16], sizes = [16, 8], strides = [1, 1]} : vector<16x32xf32> to vector<16x8xf32>
    %489 = vector.extract_strided_slice %452 {offsets = [0, 16], sizes = [16, 8], strides = [1, 1]} : vector<16x32xf32> to vector<16x8xf32>
    %cst_215 = arith.constant dense<0.000000e+00> : vector<16x16xf32>
    %490 = tpu.matmul %488, %489, %cst_215 {dimension_numbers = #tpu.dot_dimension_numbers<[1], [1], [0], [0], [0, 0, 1, 0], [], []>} : vector<16x8xf32>, vector<16x8xf32>, vector<16x16xf32> -> vector<16x16xf32>
    %cst_216 = arith.constant 0.353553385 : f32
    %491 = vector.broadcast %cst_216 : f32 to vector<16x16xf32>
    %492 = arith.mulf %490, %491 : vector<16x16xf32>
    %493 = arith.addf %492, %38 : vector<16x16xf32>
    %cst_217 = arith.constant dense<0xFF800000> : vector<16xf32>
    %494 = vector.multi_reduction <maximumf>, %493, %cst_217 [1] : vector<16x16xf32> to vector<16xf32>
    %495 = vector.shape_cast %494 : vector<16xf32> to vector<16x1xf32>
    %496 = vector.broadcast %495 : vector<16x1xf32> to vector<16x16xf32>
    %497 = arith.subf %493, %496 : vector<16x16xf32>
    %498 = math.exp %497 : vector<16x16xf32>
    %cst_218 = arith.constant dense<0.000000e+00> : vector<16xf32>
    %499 = vector.multi_reduction <add>, %498, %cst_218 [1] : vector<16x16xf32> to vector<16xf32>
    %500 = vector.shape_cast %499 : vector<16xf32> to vector<16x1xf32>
    %501 = vector.broadcast %500 : vector<16x1xf32> to vector<16x16xf32>
    %502 = arith.divf %498, %501 : vector<16x16xf32>
    %503 = vector.extract_strided_slice %453 {offsets = [0, 16], sizes = [16, 8], strides = [1, 1]} : vector<16x32xf32> to vector<16x8xf32>
    %cst_219 = arith.constant dense<0.000000e+00> : vector<16x8xf32>
    %504 = tpu.matmul %502, %503, %cst_219 {dimension_numbers = #tpu.dot_dimension_numbers<[1], [0], [0], [1], [0, 0, 1, 1], [], []>} : vector<16x16xf32>, vector<16x8xf32>, vector<16x8xf32> -> vector<16x8xf32>
    %505 = vector.extract_strided_slice %444 {offsets = [0, 24], sizes = [16, 8], strides = [1, 1]} : vector<16x32xf32> to vector<16x8xf32>
    %506 = vector.extract_strided_slice %452 {offsets = [0, 24], sizes = [16, 8], strides = [1, 1]} : vector<16x32xf32> to vector<16x8xf32>
    %cst_220 = arith.constant dense<0.000000e+00> : vector<16x16xf32>
    %507 = tpu.matmul %505, %506, %cst_220 {dimension_numbers = #tpu.dot_dimension_numbers<[1], [1], [0], [0], [0, 0, 1, 0], [], []>} : vector<16x8xf32>, vector<16x8xf32>, vector<16x16xf32> -> vector<16x16xf32>
    %cst_221 = arith.constant 0.353553385 : f32
    %508 = vector.broadcast %cst_221 : f32 to vector<16x16xf32>
    %509 = arith.mulf %507, %508 : vector<16x16xf32>
    %510 = arith.addf %509, %38 : vector<16x16xf32>
    %cst_222 = arith.constant dense<0xFF800000> : vector<16xf32>
    %511 = vector.multi_reduction <maximumf>, %510, %cst_222 [1] : vector<16x16xf32> to vector<16xf32>
    %512 = vector.shape_cast %511 : vector<16xf32> to vector<16x1xf32>
    %513 = vector.broadcast %512 : vector<16x1xf32> to vector<16x16xf32>
    %514 = arith.subf %510, %513 : vector<16x16xf32>
    %515 = math.exp %514 : vector<16x16xf32>
    %cst_223 = arith.constant dense<0.000000e+00> : vector<16xf32>
    %516 = vector.multi_reduction <add>, %515, %cst_223 [1] : vector<16x16xf32> to vector<16xf32>
    %517 = vector.shape_cast %516 : vector<16xf32> to vector<16x1xf32>
    %518 = vector.broadcast %517 : vector<16x1xf32> to vector<16x16xf32>
    %519 = arith.divf %515, %518 : vector<16x16xf32>
    %520 = vector.extract_strided_slice %453 {offsets = [0, 24], sizes = [16, 8], strides = [1, 1]} : vector<16x32xf32> to vector<16x8xf32>
    %cst_224 = arith.constant dense<0.000000e+00> : vector<16x8xf32>
    %521 = tpu.matmul %519, %520, %cst_224 {dimension_numbers = #tpu.dot_dimension_numbers<[1], [0], [0], [1], [0, 0, 1, 1], [], []>} : vector<16x16xf32>, vector<16x8xf32>, vector<16x8xf32> -> vector<16x8xf32>
    %522 = tpu.concatenate %470, %487, %504, %521 in 1 : vector<16x8xf32>, vector<16x8xf32>, vector<16x8xf32>, vector<16x8xf32> -> vector<16x32xf32>
    %c1_225 = arith.constant 1 : index
    %c0_226 = arith.constant 0 : index
    %c0_227 = arith.constant 0 : index
    %523 = vector.load %arg18[%c1_225, %c0_226, %c0_227] : memref<2x32x32xf32, #tpu.memory_space<vmem>>, vector<1x32x32xf32>
    %524 = vector.shape_cast %523 : vector<1x32x32xf32> to vector<32x32xf32>
    %cst_228 = arith.constant dense<0.000000e+00> : vector<16x32xf32>
    %525 = tpu.matmul %522, %524, %cst_228 {dimension_numbers = #tpu.dot_dimension_numbers<[1], [0], [0], [1], [0, 0, 1, 1], [], []>} : vector<16x32xf32>, vector<32x32xf32>, vector<16x32xf32> -> vector<16x32xf32>
    %c1_229 = arith.constant 1 : index
    %c0_230 = arith.constant 0 : index
    %c0_231 = arith.constant 0 : index
    %526 = vector.load %arg19[%c1_229, %c0_230, %c0_231] : memref<2x1x32xf32, #tpu.memory_space<vmem>>, vector<1x1x32xf32>
    %527 = vector.shape_cast %526 : vector<1x1x32xf32> to vector<1x32xf32>
    %528 = vector.broadcast %527 : vector<1x32xf32> to vector<16x32xf32>
    %529 = arith.addf %525, %528 : vector<16x32xf32>
    %530 = arith.addf %437, %529 : vector<16x32xf32>
    %c1_232 = arith.constant 1 : index
    %c0_233 = arith.constant 0 : index
    %c0_234 = arith.constant 0 : index
    %531 = vector.load %arg22[%c1_232, %c0_233, %c0_234] : memref<2x1x32xf32, #tpu.memory_space<vmem>>, vector<1x1x32xf32>
    %532 = vector.shape_cast %531 : vector<1x1x32xf32> to vector<1x32xf32>
    %c1_235 = arith.constant 1 : index
    %c0_236 = arith.constant 0 : index
    %c0_237 = arith.constant 0 : index
    %533 = vector.load %arg23[%c1_235, %c0_236, %c0_237] : memref<2x1x32xf32, #tpu.memory_space<vmem>>, vector<1x1x32xf32>
    %534 = vector.shape_cast %533 : vector<1x1x32xf32> to vector<1x32xf32>
    %cst_238 = arith.constant dense<0.000000e+00> : vector<16xf32>
    %535 = vector.multi_reduction <add>, %530, %cst_238 [1] : vector<16x32xf32> to vector<16xf32>
    %536 = vector.shape_cast %535 : vector<16xf32> to vector<16x1xf32>
    %cst_239 = arith.constant 3.200000e+01 : f32
    %537 = vector.broadcast %cst_239 : f32 to vector<16x1xf32>
    %538 = arith.divf %536, %537 : vector<16x1xf32>
    %539 = vector.broadcast %538 : vector<16x1xf32> to vector<16x32xf32>
    %540 = arith.subf %530, %539 : vector<16x32xf32>
    %541 = arith.mulf %540, %540 : vector<16x32xf32>
    %cst_240 = arith.constant dense<0.000000e+00> : vector<16xf32>
    %542 = vector.multi_reduction <add>, %541, %cst_240 [1] : vector<16x32xf32> to vector<16xf32>
    %543 = vector.shape_cast %542 : vector<16xf32> to vector<16x1xf32>
    %cst_241 = arith.constant 3.200000e+01 : f32
    %544 = vector.broadcast %cst_241 : f32 to vector<16x1xf32>
    %545 = arith.divf %543, %544 : vector<16x1xf32>
    %546 = vector.broadcast %538 : vector<16x1xf32> to vector<16x32xf32>
    %547 = arith.subf %530, %546 : vector<16x32xf32>
    %cst_242 = arith.constant 9.99999974E-6 : f32
    %548 = vector.broadcast %cst_242 : f32 to vector<16x1xf32>
    %549 = arith.addf %545, %548 : vector<16x1xf32>
    %550 = math.rsqrt %549 : vector<16x1xf32>
    %551 = vector.broadcast %550 : vector<16x1xf32> to vector<16x32xf32>
    %552 = arith.mulf %547, %551 : vector<16x32xf32>
    %553 = vector.broadcast %532 : vector<1x32xf32> to vector<16x32xf32>
    %554 = arith.mulf %552, %553 : vector<16x32xf32>
    %555 = vector.broadcast %534 : vector<1x32xf32> to vector<16x32xf32>
    %556 = arith.addf %554, %555 : vector<16x32xf32>
    %c1_243 = arith.constant 1 : index
    %c0_244 = arith.constant 0 : index
    %c0_245 = arith.constant 0 : index
    %557 = vector.load %arg26[%c1_243, %c0_244, %c0_245] : memref<2x32x64xf32, #tpu.memory_space<vmem>>, vector<1x32x64xf32>
    %558 = vector.shape_cast %557 : vector<1x32x64xf32> to vector<32x64xf32>
    %cst_246 = arith.constant dense<0.000000e+00> : vector<16x64xf32>
    %559 = tpu.matmul %556, %558, %cst_246 {dimension_numbers = #tpu.dot_dimension_numbers<[1], [0], [0], [1], [0, 0, 1, 1], [], []>} : vector<16x32xf32>, vector<32x64xf32>, vector<16x64xf32> -> vector<16x64xf32>
    %c1_247 = arith.constant 1 : index
    %c0_248 = arith.constant 0 : index
    %c0_249 = arith.constant 0 : index
    %560 = vector.load %arg27[%c1_247, %c0_248, %c0_249] : memref<2x1x64xf32, #tpu.memory_space<vmem>>, vector<1x1x64xf32>
    %561 = vector.shape_cast %560 : vector<1x1x64xf32> to vector<1x64xf32>
    %562 = vector.broadcast %561 : vector<1x64xf32> to vector<16x64xf32>
    %563 = arith.addf %559, %562 : vector<16x64xf32>
    %564 = arith.mulf %563, %563 : vector<16x64xf32>
    %565 = arith.mulf %563, %564 : vector<16x64xf32>
    %cst_250 = arith.constant 4.471500e-02 : f32
    %566 = vector.broadcast %cst_250 : f32 to vector<16x64xf32>
    %567 = arith.mulf %566, %565 : vector<16x64xf32>
    %568 = arith.addf %563, %567 : vector<16x64xf32>
    %cst_251 = arith.constant 0.797884583 : f32
    %569 = vector.broadcast %cst_251 : f32 to vector<16x64xf32>
    %570 = arith.mulf %569, %568 : vector<16x64xf32>
    %571 = math.tanh %570 : vector<16x64xf32>
    %cst_252 = arith.constant 1.000000e+00 : f32
    %572 = vector.broadcast %cst_252 : f32 to vector<16x64xf32>
    %573 = arith.addf %572, %571 : vector<16x64xf32>
    %cst_253 = arith.constant 5.000000e-01 : f32
    %574 = vector.broadcast %cst_253 : f32 to vector<16x64xf32>
    %575 = arith.mulf %574, %573 : vector<16x64xf32>
    %576 = arith.mulf %563, %575 : vector<16x64xf32>
    %c1_254 = arith.constant 1 : index
    %c0_255 = arith.constant 0 : index
    %c0_256 = arith.constant 0 : index
    %577 = vector.load %arg28[%c1_254, %c0_255, %c0_256] : memref<2x64x32xf32, #tpu.memory_space<vmem>>, vector<1x64x32xf32>
    %578 = vector.shape_cast %577 : vector<1x64x32xf32> to vector<64x32xf32>
    %cst_257 = arith.constant dense<0.000000e+00> : vector<16x32xf32>
    %579 = tpu.matmul %576, %578, %cst_257 {dimension_numbers = #tpu.dot_dimension_numbers<[1], [0], [0], [1], [0, 0, 1, 1], [], []>} : vector<16x64xf32>, vector<64x32xf32>, vector<16x32xf32> -> vector<16x32xf32>
    %c1_258 = arith.constant 1 : index
    %c0_259 = arith.constant 0 : index
    %c0_260 = arith.constant 0 : index
    %580 = vector.load %arg29[%c1_258, %c0_259, %c0_260] : memref<2x1x32xf32, #tpu.memory_space<vmem>>, vector<1x1x32xf32>
    %581 = vector.shape_cast %580 : vector<1x1x32xf32> to vector<1x32xf32>
    %582 = vector.broadcast %581 : vector<1x32xf32> to vector<16x32xf32>
    %583 = arith.addf %579, %582 : vector<16x32xf32>
    %584 = arith.addf %556, %583 : vector<16x32xf32>
    %c1_261 = arith.constant 1 : index
    %c0_262 = arith.constant 0 : index
    %c0_263 = arith.constant 0 : index
    %585 = vector.load %arg24[%c1_261, %c0_262, %c0_263] : memref<2x1x32xf32, #tpu.memory_space<vmem>>, vector<1x1x32xf32>
    %586 = vector.shape_cast %585 : vector<1x1x32xf32> to vector<1x32xf32>
    %c1_264 = arith.constant 1 : index
    %c0_265 = arith.constant 0 : index
    %c0_266 = arith.constant 0 : index
    %587 = vector.load %arg25[%c1_264, %c0_265, %c0_266] : memref<2x1x32xf32, #tpu.memory_space<vmem>>, vector<1x1x32xf32>
    %588 = vector.shape_cast %587 : vector<1x1x32xf32> to vector<1x32xf32>
    %cst_267 = arith.constant dense<0.000000e+00> : vector<16xf32>
    %589 = vector.multi_reduction <add>, %584, %cst_267 [1] : vector<16x32xf32> to vector<16xf32>
    %590 = vector.shape_cast %589 : vector<16xf32> to vector<16x1xf32>
    %cst_268 = arith.constant 3.200000e+01 : f32
    %591 = vector.broadcast %cst_268 : f32 to vector<16x1xf32>
    %592 = arith.divf %590, %591 : vector<16x1xf32>
    %593 = vector.broadcast %592 : vector<16x1xf32> to vector<16x32xf32>
    %594 = arith.subf %584, %593 : vector<16x32xf32>
    %595 = arith.mulf %594, %594 : vector<16x32xf32>
    %cst_269 = arith.constant dense<0.000000e+00> : vector<16xf32>
    %596 = vector.multi_reduction <add>, %595, %cst_269 [1] : vector<16x32xf32> to vector<16xf32>
    %597 = vector.shape_cast %596 : vector<16xf32> to vector<16x1xf32>
    %cst_270 = arith.constant 3.200000e+01 : f32
    %598 = vector.broadcast %cst_270 : f32 to vector<16x1xf32>
    %599 = arith.divf %597, %598 : vector<16x1xf32>
    %600 = vector.broadcast %592 : vector<16x1xf32> to vector<16x32xf32>
    %601 = arith.subf %584, %600 : vector<16x32xf32>
    %cst_271 = arith.constant 9.99999974E-6 : f32
    %602 = vector.broadcast %cst_271 : f32 to vector<16x1xf32>
    %603 = arith.addf %599, %602 : vector<16x1xf32>
    %604 = math.rsqrt %603 : vector<16x1xf32>
    %605 = vector.broadcast %604 : vector<16x1xf32> to vector<16x32xf32>
    %606 = arith.mulf %601, %605 : vector<16x32xf32>
    %607 = vector.broadcast %586 : vector<1x32xf32> to vector<16x32xf32>
    %608 = arith.mulf %606, %607 : vector<16x32xf32>
    %609 = vector.broadcast %588 : vector<1x32xf32> to vector<16x32xf32>
    %610 = arith.addf %608, %609 : vector<16x32xf32>
    %c0_272 = arith.constant 0 : index
    %611 = memref.load %arg0[%c0_272] : memref<1xi32, #tpu.memory_space<smem>>
    %612 = tpu.iota {dimensions = array<i32: 0>} : vector<16x32xi32>
    %c8_i32 = arith.constant 8 : i32
    %c0_i32 = arith.constant 0 : i32
    %613 = arith.cmpi eq, %c8_i32, %c0_i32 : i32
    %c1_i32 = arith.constant 1 : i32
    %614 = arith.select %613, %c1_i32, %c8_i32 : i32
    %615 = vector.broadcast %614 : i32 to vector<16x32xi32>
    %616 = arith.remsi %612, %615 : vector<16x32xi32>
    %c0_i32_273 = arith.constant 0 : i32
    %617 = vector.broadcast %c0_i32_273 : i32 to vector<16x32xi32>
    %618 = arith.cmpi ne, %616, %617 : vector<16x32xi32>
    %c0_i32_274 = arith.constant 0 : i32
    %619 = vector.broadcast %c0_i32_274 : i32 to vector<16x32xi32>
    %620 = arith.cmpi slt, %616, %619 : vector<16x32xi32>
    %c0_i32_275 = arith.constant 0 : i32
    %621 = arith.cmpi slt, %614, %c0_i32_275 : i32
    %622 = vector.broadcast %621 : i1 to vector<16x32xi1>
    %623 = vector.broadcast %622 : vector<16x32xi1> to vector<16x32xi1>
    %624 = arith.xori %620, %623 : vector<16x32xi1>
    %625 = arith.andi %624, %618 : vector<16x32xi1>
    %626 = vector.broadcast %614 : i32 to vector<16x32xi32>
    %627 = arith.addi %616, %626 : vector<16x32xi32>
    %628 = arith.select %625, %627, %616 : vector<16x32xi1>, vector<16x32xi32>
    %629 = vector.broadcast %611 : i32 to vector<16x32xi32>
    %630 = arith.cmpi eq, %628, %629 : vector<16x32xi32>
    %631 = arith.extui %630 : vector<16x32xi1> to vector<16x32xi32>
    %632 = arith.sitofp %631 : vector<16x32xi32> to vector<16x32xf32>
    %633 = arith.mulf %610, %632 : vector<16x32xf32>
    %634 = vector.extract_strided_slice %633 {offsets = [0, 0], sizes = [8, 32], strides = [1, 1]} : vector<16x32xf32> to vector<8x32xf32>
    %cst_276 = arith.constant dense<0.000000e+00> : vector<32xf32>
    %635 = vector.multi_reduction <add>, %634, %cst_276 [0] : vector<8x32xf32> to vector<32xf32>
    %636 = vector.shape_cast %635 : vector<32xf32> to vector<1x32xf32>
    %637 = vector.extract_strided_slice %633 {offsets = [8, 0], sizes = [8, 32], strides = [1, 1]} : vector<16x32xf32> to vector<8x32xf32>
    %cst_277 = arith.constant dense<0.000000e+00> : vector<32xf32>
    %638 = vector.multi_reduction <add>, %637, %cst_277 [0] : vector<8x32xf32> to vector<32xf32>
    %639 = vector.shape_cast %638 : vector<32xf32> to vector<1x32xf32>
    %640 = tpu.concatenate %636, %639 in 0 : vector<1x32xf32>, vector<1x32xf32> -> vector<2x32xf32>
    %c0_278 = arith.constant 0 : index
    %c0_279 = arith.constant 0 : index
    %641 = vector.load %arg5[%c0_278, %c0_279] : memref<128x32xf32, #tpu.memory_space<vmem>>, vector<128x32xf32>
    %cst_280 = arith.constant dense<0.000000e+00> : vector<2x128xf32>
    %642 = tpu.matmul %640, %641, %cst_280 {dimension_numbers = #tpu.dot_dimension_numbers<[1], [1], [0], [0], [0, 0, 1, 0], [], []>} : vector<2x32xf32>, vector<128x32xf32>, vector<2x128xf32> -> vector<2x128xf32>
    %c0_281 = arith.constant 0 : index
    %c0_282 = arith.constant 0 : index
    %643 = vector.load %arg6[%c0_281, %c0_282] : memref<1x128xf32, #tpu.memory_space<vmem>>, vector<1x128xf32>
    %644 = vector.broadcast %643 : vector<1x128xf32> to vector<2x128xf32>
    %645 = arith.addf %642, %644 : vector<2x128xf32>
    %c0_283 = arith.constant 0 : index
    %c0_284 = arith.constant 0 : index
    %646 = vector.load %arg30[%c0_283, %c0_284] : memref<2x128xf32, #tpu.memory_space<vmem>>, vector<2x128xf32>
    tpu.vector_store %arg30[%c0_283, %c0_284], %645 {strides = array<i32>} : memref<2x128xf32, #tpu.memory_space<vmem>>, vector<2x128xf32>,
    return
  }
}

</mosaic_0001>

<bundles_post_ra>
// kernel: neuron_decoder_forward.1
= control target key start
LH: loop header
LB: loop body
LE: loop exit
PB: predicated region body
PF: predicated region fallthrough
CT: control target
= control target key end

     0   :  { %s7430_s6 = smov 1   ;;  %s7431_s10 = smov 2   ;;  %s8440_s0 = inlined_call_operand.smem [shape: u32[31], index: -1, kind: input, shape index: {}] }
   0x1   :  { %s7495_s5 = sld [smem:[%s8440_s0]]   ;;  %s7432_s14 = smov 3  }
   0x2   :  { %s7500_s9 = sld [smem:[%s8440_s0 + %s7430_s6]]   ;;  %s7433_s18 = smov 4  }
   0x3   :  { %s7505_s13 = sld [smem:[%s8440_s0 + %s7431_s10]]   ;;  %s7434_s22 = smov 5  }
   0x4   :  { %s7510_s17 = sld [smem:[%s8440_s0 + %s7432_s14]]   ;;  %s7435_s26 = smov 6  }
   0x5   :  { %s7515_s21 = sld [smem:[%s8440_s0 + %s7433_s18]]   ;;  %s7436_s30 = smov 7  }
   0x6   :  { %s7520_s25 = sld [smem:[%s8440_s0 + %s7434_s22]]   ;;  %s7437_s4 = smov 8  }
   0x7   :  { %8457 = sst [smem:[#allocation20_spill]] %s7495_s5  ;;  %s7438_s10 = smov 9  }
   0x8   :  { %s7525_s29 = sld [smem:[%s8440_s0 + %s7435_s26]]   ;;  %s7439_s15 = smov 10  }
   0x9   :  { %8458 = sst [smem:[#allocation21_spill]] %s7505_s13  ;;  %s7440_s20 = smov 11  }
   0xa   :  { %s7530_s3 = sld [smem:[%s8440_s0 + %s7436_s30]]   ;;  %s7441_s26 = smov 12  }
   0xb   :  { %8459 = sst [smem:[#allocation22_spill]] %s7515_s21  ;;  %s7442_s1 = smov 13  }
   0xc   :  { %s7535_s8 = sld [smem:[%s8440_s0 + %s7437_s4]]   ;;  %s7443_s7 = smov 14  }
   0xd   :  { %s7540_s14 = sld [smem:[%s8440_s0 + %s7438_s10]]   ;;  %s7445_s22 = smov 16  }
   0xe   :  { %s7545_s19 = sld [smem:[%s8440_s0 + %s7439_s15]]   ;;  %s7444_s15 = smov 15  }
   0xf   :  { %s7550_s24 = sld [smem:[%s8440_s0 + %s7440_s20]]   ;;  %s7446_s28 = smov 17  }
  0x10   :  { %s7555_s30 = sld [smem:[%s8440_s0 + %s7441_s26]]  }
  0x11   :  { %s7560_s6 = sld [smem:[%s8440_s0 + %s7442_s1]]  }
  0x12   :  { %s7565_s12 = sld [smem:[%s8440_s0 + %s7443_s7]]   ;;  %s7447_s7 = smov 18  }
  0x13   :  { %s7570_s20 = sld [smem:[%s8440_s0 + %s7444_s15]]   ;;  %s7448_s15 = smov 19  }
  0x14   :  { %s7575_s27 = sld [smem:[%s8440_s0 + %s7445_s22]]   ;;  %s7449_s22 = smov 20  }
  0x15   :  { %s7580_s4 = sld [smem:[%s8440_s0 + %s7446_s28]]   ;;  %s7450_s28 = smov 21  }
  0x16   :  { %s7585_s5 = sld [smem:[%s8440_s0 + %s7447_s7]]   ;;  %s7451_s7 = smov 22  }
  0x17   :  { %s7590_s21 = sld [smem:[%s8440_s0 + %s7448_s15]]   ;;  %s7452_s15 = smov 23  }
  0x18   :  { %8460 = sst [smem:[#allocation23_spill]] %s7565_s12 }
  0x19   :  { %s7595_s12 = sld [smem:[%s8440_s0 + %s7449_s22]]   ;;  %s7453_s22 = smov 24  }
  0x1a   :  { %8461 = sst [smem:[#allocation24_spill]] %s7575_s27 }
  0x1b   :  { %s7600_s13 = sld [smem:[%s8440_s0 + %s7450_s28]]   ;;  %s7454_s28 = smov 25  }
  0x1c   :  { %8462 = sst [smem:[#allocation25_spill]] %s7585_s5 }
  0x1d   :  { %s7605_s5 = sld [smem:[%s8440_s0 + %s7451_s7]]   ;;  %s7455_s7 = smov 26  }
  0x1e   :  { %s7610_s27 = sld [smem:[%s8440_s0 + %s7452_s15]]   ;;  %s7456_s15 = smov 27  }
  0x1f   :  { %8463 = sst [smem:[#allocation26_spill]] %s7595_s12 }
  0x20   :  { %s7615_s12 = sld [smem:[%s8440_s0 + %s7453_s22]]   ;;  %s7457_s22 = smov 28  }
  0x21   :  { %8464 = sst [smem:[#allocation27_spill]] %s7600_s13 }
  0x22   :  { %s7620_s13 = sld [smem:[%s8440_s0 + %s7454_s28]]   ;;  %s7458_s28 = smov 29  }
  0x23   :  { %8465 = sst [smem:[#allocation28_spill]] %s7605_s5 }
  0x24   :  { %8466 = sst [smem:[#allocation29_spill]] %s7610_s27 }
  0x25   :  { %s7625_s5 = sld [smem:[%s8440_s0 + %s7455_s7]]   ;;  %s7459_s7 = smov 30  }
  0x26   :  { %8467 = sst [smem:[#allocation30_spill]] %s7615_s12 }
  0x27   :  { %s7630_s27 = sld [smem:[%s8440_s0 + %s7456_s15]]  }
  0x28   :  { %8468 = sst [smem:[#allocation31_spill]] %s7620_s13 }
  0x29   :  { %s7635_s12 = sld [smem:[%s8440_s0 + %s7457_s22]]  }
  0x2a   :  { %s7640_s13 = sld [smem:[%s8440_s0 + %s7458_s28]]  }
  0x2b   :  { %8469 = sst [smem:[#allocation32_spill]] %s7625_s5 }
  0x2c   :  { %s7645_s5 = sld [smem:[%s8440_s0 + %s7459_s7]]  }
  0x2d   :  { %67 = vsyncpa [#allocation4], 0 }
  0x2e   :  { %68 = vsyncpa [#allocation7], 0 }
  0x2f   :  { %69 = vsyncpa [#allocation10], 0 }
  0x30   :  { %70 = vsyncpa [#allocation13], 0 }
  0x31   :  { %71 = vsyncpa [#allocation5], 0  ;;  %s7460_s15 = smov [#allocation6]   ;;  %s7266_s18 = scalar_lea.hbm %s7570_s20, 32 }
  0x32   :  { %s115_s16 = sshll.u32 %s7460_s15, 4  ;;  %p7267_p0 = scmp.ne.s32.totalorder %s7570_s20, %s7266_s18  ;;  %s116_s16 = int_to_ptr.vmem [resolvable:$true] %s115_s16 }
  0x33   :  { %p7270_p1 = scmp.lt.u32.totalorder %s7266_s18, %s7570_s20 }
  0x35   :  { %p7272_p2 = pnand %p7270_p1, %p7267_p0 }
  0x37   :  { %7275 = shalt.err (!%p7272_p2)
}
  0x38   :  { %s7276_s22 = scalar_lea.vmem %s116_s16, 32  ;;  %p7281_p4 = scmp.lt.s32.totalorder %s116_s16, %s116_s16 }
  0x39   :  { %p7277_p3 = scmp.ne.s32.totalorder %s116_s16, %s7276_s22  ;;  %p7282_p5 = scmp.lt.s32.totalorder %s7276_s22, %s7276_s22 }
  0x3b   :  { %p7283_p6 = por %p7282_p5, %p7281_p4 }
  0x3d   :  { %p7284_p7 = pnand %p7283_p6, %p7277_p3 }
  0x3f   :  { %7287 = shalt.err (!%p7284_p7)
}
  0x40   :  { %s8455_s0 = smov 16   ;;  %s7462_s23 = smov 1  }
  0x41   :  { %121 = dma.hbm_to_vmem [thread:$0]  %s7570_s20, 32, %s116_s16, [#allocation7], %s8455_s0, %s8455_s0, %s7462_s23  }
  0x42   :  { %s7463_s26 = smov [#allocation9]   ;;  %s7464_s1 = smov [#allocation3]  }
  0x43   :  { %s143_s28 = sshll.u32 %s7463_s26, 4  ;;  %s90_s2 = sshll.u32 %s7464_s1, 4  ;;  %s144_s28 = int_to_ptr.vmem [resolvable:$true] %s143_s28  ;;  %s91_s2 = int_to_ptr.vmem [resolvable:$true] %s90_s2 }
  0x44   :  { %s7288_s7 = scalar_lea.hbm %s7590_s21, 32 }
  0x45   :  { %p7289_p8 = scmp.ne.s32.totalorder %s7590_s21, %s7288_s7  ;;  %p7292_p9 = scmp.lt.u32.totalorder %s7288_s7, %s7590_s21 }
  0x47   :  { %p7294_p10 = pnand %p7292_p9, %p7289_p8 }
  0x49   :  { %7297 = shalt.err (!%p7294_p10)
}
  0x4a   :  { %s7298_s10 = scalar_lea.vmem %s144_s28, 32  ;;  %p7303_p12 = scmp.lt.s32.totalorder %s144_s28, %s144_s28 }
  0x4b   :  { %p7299_p11 = scmp.ne.s32.totalorder %s144_s28, %s7298_s10  ;;  %p7304_p13 = scmp.lt.s32.totalorder %s7298_s10, %s7298_s10 }
  0x4d   :  { %p7305_p0 = por %p7304_p13, %p7303_p12 }
  0x4f   :  { %p7306_p1 = pnand %p7305_p0, %p7299_p11 }
  0x51   :  { %7309 = shalt.err (!%p7306_p1)
}
  0x52   :  { %149 = dma.hbm_to_vmem [thread:$0]  %s7590_s21, 32, %s144_s28, [#allocation10], %s8455_s0, %s8455_s0, %s7462_s23  }
  0x53   :  { %s7310_s20 = scalar_lea.hbm %s7525_s29, 16 }
  0x54   :  { %p7311_p2 = scmp.ne.s32.totalorder %s7525_s29, %s7310_s20  ;;  %p7314_p3 = scmp.lt.u32.totalorder %s7310_s20, %s7525_s29 }
  0x56   :  { %p7316_p4 = pnand %p7314_p3, %p7311_p2 }
  0x58   :  { %7319 = shalt.err (!%p7316_p4)
}
  0x59   :  { %s7320_s11 = scalar_lea.vmem %s91_s2, 16  ;;  %s7324_s15 = scalar_lea.vmem %s91_s2, 32 }
  0x5a   :  { %p7321_p5 = scmp.ne.s32.totalorder %s91_s2, %s7320_s11  ;;  %p7325_p6 = scmp.lt.s32.totalorder %s91_s2, %s91_s2 }
  0x5b   :  { %p7326_p7 = scmp.lt.s32.totalorder %s7324_s15, %s7320_s11 }
  0x5d   :  { %p7327_p8 = por %p7326_p7, %p7325_p6 }
  0x5f   :  { %p7328_p9 = pnand %p7327_p8, %p7321_p5 }
  0x61   :  { %7331 = shalt.err (!%p7328_p9)
}
  0x62   :  { %93 = dma.hbm_to_vmem [thread:$0]  %s7525_s29, 16, %s91_s2, [#allocation4]  }
  0x63   :  { %s7465_s21 = smov [#allocation8]   ;;  %s7466_s18 = smov [#allocation11]  }
  0x64   :  { %s129_s16 = sshll.u32 %s7465_s21, 4  ;;  %s169_s22 = sshll.u32 %s7466_s18, 4  ;;  %s130_s16 = int_to_ptr.vmem [resolvable:$true] %s129_s16  ;;  %s170_s22 = int_to_ptr.vmem [resolvable:$true] %s169_s22 }
  0x65   :  { %s7332_s26 = scalar_lea.hbm %s7580_s4, 32 }
  0x66   :  { %p7333_p10 = scmp.ne.s32.totalorder %s7580_s4, %s7332_s26  ;;  %p7336_p11 = scmp.lt.u32.totalorder %s7332_s26, %s7580_s4 }
  0x68   :  { %p7338_p12 = pnand %p7336_p11, %p7333_p10 }
  0x6a   :  { %7341 = shalt.err (!%p7338_p12)
}
  0x6b   :  { %s7342_s28 = scalar_lea.vmem %s130_s16, 32  ;;  %p7347_p0 = scmp.lt.s32.totalorder %s130_s16, %s130_s16 }
  0x6c   :  { %p7343_p13 = scmp.ne.s32.totalorder %s130_s16, %s7342_s28  ;;  %p7348_p1 = scmp.lt.s32.totalorder %s7342_s28, %s7342_s28 }
  0x6e   :  { %p7349_p2 = por %p7348_p1, %p7347_p0 }
  0x70   :  { %p7350_p3 = pnand %p7349_p2, %p7343_p13 }
  0x72   :  { %7353 = shalt.err (!%p7350_p3)
}
  0x73   :  { %135 = dma.hbm_to_vmem [thread:$0]  %s7580_s4, 32, %s130_s16, [#allocation7], %s8455_s0, %s8455_s0, %s7462_s23  }
  0x74   :  { %s7354_s29 = scalar_lea.hbm %s7630_s27, 32 }
  0x75   :  { %p7355_p4 = scmp.ne.s32.totalorder %s7630_s27, %s7354_s29  ;;  %p7358_p5 = scmp.lt.u32.totalorder %s7354_s29, %s7630_s27 }
  0x77   :  { %p7360_p6 = pnand %p7358_p5, %p7355_p4 }
  0x79   :  { %7363 = shalt.err (!%p7360_p6)
}
  0x7a   :  { %s7364_s1 = scalar_lea.vmem %s170_s22, 32  ;;  %p7369_p8 = scmp.lt.s32.totalorder %s170_s22, %s170_s22 }
  0x7b   :  { %p7365_p7 = scmp.ne.s32.totalorder %s170_s22, %s7364_s1  ;;  %p7370_p9 = scmp.lt.s32.totalorder %s7364_s1, %s7364_s1 }
  0x7d   :  { %p7371_p10 = por %p7370_p9, %p7369_p8 }
  0x7f   :  { %p7372_p11 = pnand %p7371_p10, %p7365_p7 }
  0x81   :  { %7375 = shalt.err (!%p7372_p11)
}
  0x82   :  { %175 = dma.hbm_to_vmem [thread:$0]  %s7630_s27, 32, %s170_s22, [#allocation10], %s8455_s0, %s8455_s0, %s7462_s23  }
  0x83   :  { %s7467_s4 = smov [#allocation12]   ;;  %s7376_s7 = scalar_lea.hbm %s7640_s13, 32 }
  0x84   :  { %s183_s2 = sshll.u32 %s7467_s4, 4  ;;  %p7377_p12 = scmp.ne.s32.totalorder %s7640_s13, %s7376_s7  ;;  %s184_s2 = int_to_ptr.vmem [resolvable:$true] %s183_s2 }
  0x85   :  { %p7380_p13 = scmp.lt.u32.totalorder %s7376_s7, %s7640_s13 }
  0x87   :  { %p7382_p0 = pnand %p7380_p13, %p7377_p12 }
  0x89   :  { %7385 = shalt.err (!%p7382_p0)
}
  0x8a   :  { %s7386_s10 = scalar_lea.vmem %s184_s2, 32  ;;  %p7391_p2 = scmp.lt.s32.totalorder %s184_s2, %s184_s2 }
  0x8b   :  { %p7387_p1 = scmp.ne.s32.totalorder %s184_s2, %s7386_s10  ;;  %p7392_p3 = scmp.lt.s32.totalorder %s7386_s10, %s7386_s10 }
  0x8d   :  { %p7393_p4 = por %p7392_p3, %p7391_p2 }
  0x8f   :  { %p7394_p5 = pnand %p7393_p4, %p7387_p1 }
  0x91   :  { %7397 = shalt.err (!%p7394_p5)
}
  0x92   :  { %189 = dma.hbm_to_vmem [thread:$0]  %s7640_s13, 32, %s184_s2, [#allocation13], %s8455_s0, %s8455_s0, %s7462_s23  }
  0x93   :  { %7420 = dma.done.wait [#allocation4], 16  }
  0x94   :  { %7421 = vsyncadd [#allocation4], 4294967280 }
  0x95   :  { %7422 = dma.done.wait [#allocation7], 64  }
  0x96   :  { %7423 = vsyncadd [#allocation7], 4294967232 }
  0x97   :  { %7424 = dma.done.wait [#allocation10], 64  }
  0x98   :  { %7425 = vsyncadd [#allocation10], 4294967232 }
  0x99   :  { %7426 = dma.done.wait [#allocation13], 32  }
  0x9a   :  { %7427 = vsyncadd [#allocation13], 4294967264  ;;  %v7468_v0 = vmov 0   ;;  %v208_v1 = vld [vmem:[%s7500_s9] sm:$0xff]  ;;  %v225_v3 = vld [vmem:[%s7520_s25 + $0x8] sm:$0xff]  ;;  %v210_v27 = vlaneseq  ;;  %v7469_v30 = vmov 1.0  }
  0x9b   :  { %6945 = vset.pattern.permute.xlu0 %v7468_v0  ;;  %v224_v2 = vld [vmem:[%s7520_s25] sm:$0xff]  ;;  %v226_v4 = vld [vmem:[%s7520_s25 + $0x10] sm:$0xff]  ;;  %v227_v5 = vld [vmem:[%s7520_s25 + $0x18] sm:$0xff]  ;;  %vm323_vm2 = vcmask 261120   ;;  %vm471_vm3 = vcmask 64512   ;;  %s7471_s13 = smov 96  }
  0x9c   :  { %213 = vperm.xlu0 %6945, %v208_v1   ;;  %v209_v6 = vld [vmem:[%s7500_s9 + $0x8] sm:$0xff]  ;;  %v7692_v7 = vpack.c.bf16 %v225_v3, %v224_v2  ;;  %v7694_v8 = vpack.c.bf16 %v227_v5, %v226_v4  ;;  %v228_v9 = vld [vmem:[%s7520_s25 + $0x20] sm:$0xff]  ;;  %v230_v12 = vld [vmem:[%s7520_s25 + $0x30] sm:$0xff]  ;;  %v211_v28 = vand.u32 127, %v210_v27  ;;  %s7470_s9 = smov 120   ;;  %vm559_vm5 = vcmask 130048  }
  0x9d   :  { %v229_v10 = vld [vmem:[%s7520_s25 + $0x28] sm:$0xff]  ;;  %v231_v13 = vld [vmem:[%s7520_s25 + $0x38] sm:$0xff]  ;;  %v232_v15 = vld [vmem:[%s7520_s25 + $0x40] sm:$0xff]  ;;  %s7476_s27 = smov 64   ;;  %s7477_s23 = smov 48   ;;  %vm1309_vm6 = vcmask 195584  }
  0x9e   :  { %6537 = vmatprep.subr.bf16.mxu0 %v7692_v7  ;;  %v7701_v11 = vpack.c.bf16 %v229_v10, %v228_v9  ;;  %v7707_v14 = vpack.c.bf16 %v231_v13, %v230_v12  ;;  %v233_v16 = vld [vmem:[%s7520_s25 + $0x48] sm:$0xff]  ;;  %v234_v18 = vld [vmem:[%s7520_s25 + $0x50] sm:$0xff]  ;;  %v235_v19 = vld [vmem:[%s7520_s25 + $0x58] sm:$0xff]  ;;  %s7478_s20 = smov 72   ;;  %s7479_s11 = smov 104   ;;  %vm2739_vm7 = vcmask 523264  }
  0x9f   :  { %6539 = vmatpush3.bf16.msra.mxu0 %v7692_v7  ;;  %v7713_v17 = vpack.c.bf16 %v233_v16, %v232_v15  ;;  %v7719_v20 = vpack.c.bf16 %v235_v19, %v234_v18  ;;  %v236_v21 = vld [vmem:[%s7520_s25 + $0x60] sm:$0xff]  ;;  %v237_v22 = vld [vmem:[%s7520_s25 + $0x68] sm:$0xff]  ;;  %v238_v24 = vld [vmem:[%s7520_s25 + $0x70] sm:$0xff]  ;;  %s7480_s15 = smov 8   ;;  %s7481_s21 = smov 40   ;;  %vm7485_vm11 = vmmov 0  }
  0xa0   :  { %216 = vperm.xlu0 %6945, %v209_v6   ;;  %6541 = vmatprep.subr.bf16.mxu0 %v7694_v8  ;;  %v7725_v23 = vpack.c.bf16 %v237_v22, %v236_v21  ;;  %v239_v25 = vld [vmem:[%s7520_s25 + $0x78] sm:$0xff]  ;;  %v317_v34 = vld [vmem:[%s7530_s3] sm:$0xff]  ;;  %v318_v37 = vld [vmem:[%s7530_s3 + $0x8] sm:$0xff]  ;;  %s7472_s25 = smov 88   ;;  %s7473_s3 = smov 80   ;;  %vm5422_vm12 = vcmask 1040384  }
  0xa1   :  { %v7731_v26 = vpack.c.bf16 %v239_v25, %v238_v24  ;;  %v373_v52 = vld [vmem:[%s7545_s19] sm:$0xff]  ;;  %v374_v53 = vld [vmem:[%s7545_s19 + $0x8] sm:$0xff]  ;;  %v375_v54 = vld [vmem:[%s7545_s19 + $0x10] sm:$0xff]  ;;  %s8453_s16 = smov 24   ;;  %s8472_s18 = sld [smem:[#allocation24_spill]] }
  0xa2   :  { %v6568_v55 = vpack.c.bf16 %v374_v53, %v373_v52  ;;  %v376_v56 = vld [vmem:[%s7545_s19 + $0x18] sm:$0xff]  ;;  %v5605_v1 = vld [vmem:[%s7535_s8] ss:$0 sm:$0xff]  ;;  %s7474_s8 = smov 112   ;;  %vm7784_vm4 = vmpackc.low %vm471_vm3, %vm471_vm3  ;;  %s8473_s22 = sld [smem:[#allocation21_spill]] }
  0xa3   :  { %6543 = vmatpush3.bf16.msra.mxu0 %v7694_v8  ;;  %v6572_v57 = vpack.c.bf16 %v376_v56, %v375_v54  ;;  %v5606_v3 = vld [vmem:[%s7540_s14] ss:$0 sm:$0xff]  ;;  %s7475_s14 = smov 56   ;;  %s8474_s26 = sld [smem:[#allocation23_spill]]  ;;  %vm8399_vm8 = vmpackc.low %vm323_vm2, %vm323_vm2 }
  0xa4   :  { %6545 = vmatprep.subr.bf16.mxu0 %v7701_v11  ;;  %v5607_v13 = vld [vmem:[%s7550_s24] ss:$0 sm:$0xff]  ;;  %s8475_s28 = sld [smem:[#allocation26_spill]]  ;;  %s8476_s29 = sld [smem:[#allocation27_spill]] }
  0xa5   :  { %s8477_s1 = sld [smem:[#allocation22_spill]]  ;;  %s8478_s4 = sld [smem:[#allocation25_spill]] }
  0xa6   :  { %s8479_s2 = sld [smem:[#allocation32_spill]]  ;;  %s8480_s7 = sld [smem:[#allocation28_spill]] }
  0xa7   :  { %6547 = vmatpush3.bf16.msra.mxu0 %v7701_v11  ;;  %s8481_s10 = sld [smem:[#allocation29_spill]] }
  0xa8   :  { %6549 = vmatprep.subr.bf16.mxu0 %v7707_v14 }
  0xab   :  { %6551 = vmatpush3.bf16.msra.mxu0 %v7707_v14 }
  0xac   :  { %6553 = vmatprep.subr.bf16.mxu0 %v7713_v17 }
  0xaf   :  { %6555 = vmatpush3.bf16.msra.mxu0 %v7713_v17 }
  0xb0   :  { %6557 = vmatprep.subr.bf16.mxu0 %v7719_v20 }
  0xb3   :  { %6559 = vmatpush3.bf16.msra.mxu0 %v7719_v20 }
  0xb4   :  { %6561 = vmatprep.subr.bf16.mxu0 %v7725_v23 }
  0xb7   :  { %6563 = vmatpush3.bf16.msra.mxu0 %v7725_v23 }
  0xb8   :  { %6565 = vmatprep.subr.bf16.mxu0 %v7731_v26 }
  0xbb   :  { %6567 = vmatpush3.bf16.msra.mxu0 %v7731_v26 }
  0xbc   :  { %6569 = vmatprep.subr.bf16.mxu0 %v6568_v55 }
 0x11b   :  { %v214_v29 = vpop.permute.xlu0 %213 }
 0x11c   :  { %vm218_vm0 = vcmp.eq.s32.totalorder %v211_v28, %v214_v29 }
 0x11d   :  { %6104 = vmatprep.mubr.msk.f32.mxu0 %vm218_vm0, %v7469_v30 }
 0x11f   :  { %v217_v31 = vpop.permute.xlu0 %216 }
 0x120   :  { %vm219_vm1 = vcmp.eq.s32.totalorder %v211_v28, %v217_v31 }
 0x121   :  { %6105 = vmatmul.mubr.msk.f32.vlgmr.msra.gmra.mrb[0].mxu0 %vm219_vm1, %v7469_v30 }
 0x122   :  { %6571 = vmatpush3.bf16.msra.mxu0 %v6568_v55 }
 0x123   :  { %6573 = vmatprep.subr.bf16.mxu0 %v6572_v57 }
 0x126   :  { %6575 = vmatpush3.bf16.msra.mxu0 %v6572_v57 }
 0x1f4   :  { %v6106_v32 = vpop.f32.mrb[0].mxu0 }
 0x1f5   :  { %v306_v33 = vpop.f32.mrb[1].mxu0  ;;  %v316_v35 = vmul.f32 5.656854, %v6106_v32 }
 0x1f6   :  { %v315_v36 = vmul.f32 5.656854, %v306_v33 }
 0x1f7   :  { %v320_v40 = vadd.f32 %v318_v37, %v316_v35 }
 0x1f8   :  { %v319_v38 = vadd.f32 %v317_v34, %v315_v36 }
 0x1f9   :  { %v327_v41 = vsel %vm323_vm2, %v320_v40, 0.0 }
 0x1fa   :  { %v324_v39 = vsel %vm323_vm2, %v319_v38, 0.0 }
 0x1fb   :  { %325 = vadd.xlane.f32.xlu1 %v324_v39 }
 0x1ff   :  { %328 = vadd.xlane.f32.xlu1 %v327_v41 }
 0x288   :  { %v326_v42 = vpop.xlane.xlu1 %325 }
 0x289   :  { %v331_v43 = vmul.f32 0.03125, %v326_v42 }
 0x28b   :  { %v333_v44 = vsub.f32 %v319_v38, %v331_v43  ;;  %v7807_v43 = vld [vmem:[%s7510_s17 + $0x8] sm:$0xff] }
 0x28c   :  { %v329_v45 = vpop.xlane.xlu1 %328 }
 0x28d   :  { %v332_v46 = vmul.f32 0.03125, %v329_v45  ;;  %v335_v47 = vmul.f32 %v333_v44, %v333_v44 }
 0x28f   :  { %v334_v48 = vsub.f32 %v320_v40, %v332_v46  ;;  %v337_v49 = vsel %vm323_vm2, %v335_v47, 0.0  ;;  %v7810_v46 = vld [vmem:[%s7510_s17] sm:$0xff] }
 0x290   :  { %338 = vadd.xlane.f32.xlu0 %v337_v49 }
 0x291   :  { %v336_v50 = vmul.f32 %v334_v48, %v334_v48 }
 0x293   :  { %v340_v51 = vsel %vm323_vm2, %v336_v50, 0.0 }
 0x294   :  { %341 = vadd.xlane.f32.xlu1 %v340_v51 }
 0x31d   :  { %v339_v58 = vpop.xlane.xlu0 %338 }
 0x31e   :  { %v343_v59 = vmul.f32 0.03125, %v339_v58 }
 0x320   :  { %v345_v60 = vadd.f32 1e-05, %v343_v59 }
 0x321   :  { %v342_v61 = vpop.xlane.xlu1 %341 }
 0x322   :  { %7096 = vrsqrt.f32 %v345_v60  ;;  %v344_v62 = vmul.f32 0.03125, %v342_v61 }
 0x324   :  { %v346_v63 = vadd.f32 1e-05, %v344_v62 }
 0x326   :  { %7098 = vrsqrt.f32 %v346_v63 }
 0x32c   :  { %v7097_v0 = vpop.eup %7096 }
 0x32d   :  { %v349_v2 = vmul.f32 %v7097_v0, %v333_v44 }
 0x32f   :  { %v357_v4 = vmul.f32 %v5605_v1, %v349_v2 }
 0x330   :  { %v7099_v5 = vpop.eup %7098 }
 0x331   :  { %v350_v6 = vmul.f32 %v7099_v5, %v334_v48  ;;  %v7749_v9 = vadd.f32 %v5606_v3, %v357_v4 }
 0x333   :  { %v358_v10 = vmul.f32 %v5605_v1, %v350_v6  ;;  %6115 = vmatprep.mubr.msk.f32.mxu0 %vm323_vm2, %v7749_v9 }
 0x335   :  { %v7753_v12 = vadd.f32 %v5606_v3, %v358_v10 }
 0x337   :  { %6116 = vmatmul.mubr.msk.f32.vlgmr.msra.gmra.mrb[2].mxu0 %vm323_vm2, %v7753_v12 }
 0x40a   :  { %v6117_v15 = vpop.f32.mrb[2].mxu0 }
 0x40b   :  { %v7758_v16 = vadd.f32 %v6117_v15, %v5607_v13  ;;  %v456_v18 = vpop.f32.mrb[3].mxu0 }
 0x40c   :  { %v7760_v19 = vadd.f32 %v5607_v13, %v456_v18 }
 0x40d   :  { %671 = vrot.lane.b32.xlu0 %v7758_v16, %s7470_s9 }
 0x40e   :  { %6122 = vmatprep.mubr.msk.f32.mxu0 %vm471_vm3, %v7760_v19  ;;  %v7768_v21 = vpack.i.bf16 %v7758_v16, %v7760_v19 }
 0x410   :  { %6947 = vrot.lane.b32.xlu1 %v7768_v21, %s7471_s13 }
 0x414   :  { %6952 = vrot.lane.b32.xlu1 %v7768_v21, %s7472_s25 }
 0x418   :  { %669 = vrot.lane.b32.xlu1 %v7760_v19, %s7470_s9 }
 0x41c   :  { %6957 = vrot.lane.b32.xlu1 %v7768_v21, %s7473_s3 }
 0x420   :  { %873 = vrot.lane.b32.xlu1 %v7760_v19, %s7474_s8 }
 0x424   :  { %875 = vrot.lane.b32.xlu1 %v7758_v16, %s7474_s8 }
 0x47f   :  { %v672_v39 = vpop.permute.xlu0 %671 }
 0x482   :  { %v6948_v22 = vpop.permute.xlu1 %6947 }
 0x483   :  { %v6950_v24 = vunpack.i.h.bf16 %v6948_v22  ;;  %v6949_v25 = vunpack.i.l.bf16 %v6948_v22 }
 0x485   :  { %v6576_v29 = vpack.c.bf16 %v6950_v24, %v6949_v25 }
 0x486   :  { %v6953_v30 = vpop.permute.xlu1 %6952 }
 0x487   :  { %v6955_v31 = vunpack.i.h.bf16 %v6953_v30  ;;  %v6954_v32 = vunpack.i.l.bf16 %v6953_v30  ;;  %6578 = vmatprep.subr.msk.bf16.mxu0 %vm7784_vm4, %v6576_v29 }
 0x488   :  { %6581 = vmatpush3.bf16.xpose.msk.msra.mxu0 %vm7784_vm4, %v6576_v29 }
 0x489   :  { %v6586_v33 = vpack.c.bf16 %v6955_v31, %v6954_v32 }
 0x48a   :  { %v670_v34 = vpop.permute.xlu1 %669 }
 0x48b   :  { %6588 = vmatprep.subr.msk.bf16.mxu0 %vm7784_vm4, %v6586_v33 }
 0x48e   :  { %v6958_v35 = vpop.permute.xlu1 %6957 }
 0x48f   :  { %v6960_v36 = vunpack.i.h.bf16 %v6958_v35  ;;  %v6959_v37 = vunpack.i.l.bf16 %v6958_v35  ;;  %6123 = vmatmul.mubr.msk.f32.vlgmr.msra.gmra.mrb[4].mxu0 %vm471_vm3, %v7758_v16 }
 0x490   :  { %6591 = vmatpush3.bf16.xpose.msk.msra.mxu0 %vm7784_vm4, %v6586_v33  ;;  %6136 = vmatprep.mubr.msk.f32.mxu0 %vm471_vm3, %v670_v34 }
 0x491   :  { %v6596_v38 = vpack.c.bf16 %v6960_v36, %v6959_v37 }
 0x492   :  { %v874_v40 = vpop.permute.xlu1 %873 }
 0x493   :  { %6598 = vmatprep.subr.msk.bf16.mxu0 %vm7784_vm4, %v6596_v38 }
 0x496   :  { %v876_v41 = vpop.permute.xlu1 %875 }
 0x497   :  { %6137 = vmatmul.mubr.msk.f32.vlgmr.msra.gmra.mrb[6].mxu0 %vm471_vm3, %v672_v39 }
 0x498   :  { %6601 = vmatpush3.bf16.xpose.msk.msra.mxu0 %vm7784_vm4, %v6596_v38  ;;  %6150 = vmatprep.mubr.msk.f32.mxu0 %vm471_vm3, %v874_v40 }
 0x49f   :  { %6151 = vmatmul.mubr.msk.f32.vlgmr.msra.gmra.mrb[8].mxu0 %vm471_vm3, %v876_v41 }
 0x562   :  { %v6124_v42 = vpop.f32.mrb[4].mxu0 }
 0x563   :  { %v556_v44 = vmul.f32 0.35355338, %v6124_v42  ;;  %v546_v45 = vpop.f32.mrb[5].mxu0 }
 0x564   :  { %v555_v47 = vmul.f32 0.35355338, %v546_v45 }
 0x565   :  { %v558_v48 = vadd.f32 %v556_v44, %v7807_v43 }
 0x566   :  { %v557_v49 = vadd.f32 %v555_v47, %v7810_v46 }
 0x567   :  { %v563_v50 = vsel %vm559_vm5, %v558_v48, -inf }
 0x568   :  { %564 = vmax.xlane.f32.xlu0 %v563_v50  ;;  %v560_v51 = vsel %vm559_vm5, %v557_v49, -inf }
 0x569   :  { %561 = vmax.xlane.f32.xlu1 %v560_v51 }
 0x56a   :  { %v6138_v52 = vpop.f32.mrb[6].mxu0 }
 0x56b   :  { %v761_v53 = vmul.f32 0.35355338, %v6138_v52  ;;  %v751_v54 = vpop.f32.mrb[7].mxu0 }
 0x56c   :  { %v760_v55 = vmul.f32 0.35355338, %v751_v54 }
 0x56d   :  { %v763_v56 = vadd.f32 %v761_v53, %v7807_v43 }
 0x56e   :  { %v762_v58 = vadd.f32 %v760_v55, %v7810_v46 }
 0x56f   :  { %v767_v57 = vsel %vm559_vm5, %v763_v56, -inf }
 0x570   :  { %768 = vmax.xlane.f32.xlu1 %v767_v57  ;;  %v764_v62 = vsel %vm559_vm5, %v762_v58, -inf }
 0x572   :  { %v6152_v59 = vpop.f32.mrb[8].mxu0 }
 0x573   :  { %v965_v60 = vmul.f32 0.35355338, %v6152_v59  ;;  %v955_v61 = vpop.f32.mrb[9].mxu0 }
 0x574   :  { %v964_v63 = vmul.f32 0.35355338, %v955_v61  ;;  %765 = vmax.xlane.f32.xlu1 %v764_v62 }
 0x575   :  { %v967_v0 = vadd.f32 %v965_v60, %v7807_v43 }
 0x576   :  { %v966_v1 = vadd.f32 %v964_v63, %v7810_v46 }
 0x577   :  { %v971_v2 = vsel %vm559_vm5, %v967_v0, -inf }
 0x578   :  { %972 = vmax.xlane.f32.xlu1 %v971_v2  ;;  %v968_v3 = vsel %vm559_vm5, %v966_v1, -inf }
 0x579   :  { %969 = vmax.xlane.f32.xlu0 %v968_v3 }
 0x589   :  { %6967 = vrot.lane.b32.xlu1 %v7768_v21, %s7475_s14 }
 0x58f   :  { %6962 = vrot.lane.b32.xlu0 %v7768_v21, %s7476_s27 }
 0x5f5   :  { %v565_v4 = vpop.xlane.xlu0 %564 }
 0x5f6   :  { %v567_v5 = vsub.f32 %v558_v48, %v565_v4  ;;  %v562_v6 = vpop.xlane.xlu1 %561 }
 0x5f7   :  { %v566_v10 = vsub.f32 %v557_v49, %v562_v6 }
 0x5f8   :  { %v570_v13 = vmul.f32 1.442695, %v567_v5 }
 0x5f9   :  { %v568_v15 = vmul.f32 1.442695, %v566_v10 }
 0x5fa   :  { %7100 = vpow2.f32 %v570_v13 }
 0x5fb   :  { %7102 = vpow2.f32 %v568_v15 }
 0x5fd   :  { %v769_v18 = vpop.xlane.xlu1 %768 }
 0x5fe   :  { %v771_v22 = vsub.f32 %v763_v56, %v769_v18 }
 0x600   :  { %v774_v24 = vmul.f32 1.442695, %v771_v22 }
 0x601   :  { %v766_v25 = vpop.xlane.xlu1 %765 }
 0x602   :  { %7104 = vpow2.f32 %v774_v24  ;;  %v770_v29 = vsub.f32 %v762_v58, %v766_v25 }
 0x604   :  { %v7101_v30 = vpop.eup %7100  ;;  %v772_v31 = vmul.f32 1.442695, %v770_v29 }
 0x605   :  { %v7103_v32 = vpop.eup %7102  ;;  %v973_v33 = vpop.xlane.xlu1 %972  ;;  %v575_v34 = vsel %vm559_vm5, %v7101_v30, 0.0 }
 0x606   :  { %7106 = vpow2.f32 %v772_v31  ;;  %v970_v35 = vpop.xlane.xlu0 %969  ;;  %576 = vadd.xlane.f32.xlu1 %v575_v34  ;;  %v572_v36 = vsel %vm559_vm5, %v7103_v32, 0.0  ;;  %v975_v55 = vsub.f32 %v967_v0, %v973_v33 }
 0x607   :  { %v974_v37 = vsub.f32 %v966_v1, %v970_v35  ;;  %573 = vadd.xlane.f32.xlu0 %v572_v36 }
 0x608   :  { %v978_v56 = vmul.f32 1.442695, %v975_v55 }
 0x609   :  { %v976_v38 = vmul.f32 1.442695, %v974_v37  ;;  %v6968_v39 = vpop.permute.xlu1 %6967 }
 0x60a   :  { %v6970_v40 = vunpack.i.h.bf16 %v6968_v39  ;;  %v6963_v41 = vpop.permute.xlu0 %6962  ;;  %v6969_v42 = vunpack.i.l.bf16 %v6968_v39 }
 0x60b   :  { %7108 = vpow2.f32 %v976_v38  ;;  %v6965_v44 = vunpack.i.h.bf16 %v6963_v41  ;;  %v6964_v45 = vunpack.i.l.bf16 %v6963_v41 }
 0x60c   :  { %v7105_v47 = vpop.eup %7104  ;;  %v6592_v50 = vpack.c.bf16 %v6970_v40, %v6969_v42  ;;  %7110 = vpow2.f32 %v978_v56 }
 0x60d   :  { %v779_v48 = vsel %vm559_vm5, %v7105_v47, 0.0  ;;  %v6582_v49 = vpack.c.bf16 %v6965_v44, %v6964_v45 }
 0x60e   :  { %780 = vadd.xlane.f32.xlu1 %v779_v48 }
 0x60f   :  { %6583 = vmatprep.subr.bf16.mxu1 %v6582_v49 }
 0x610   :  { %v7107_v51 = vpop.eup %7106  ;;  %6585 = vmatpush3.bf16.msra.mxu1 %v6582_v49 }
 0x611   :  { %6593 = vmatprep.subr.bf16.mxu1 %v6592_v50  ;;  %v776_v52 = vsel %vm559_vm5, %v7107_v51, 0.0 }
 0x612   :  { %777 = vadd.xlane.f32.xlu0 %v776_v52 }
 0x615   :  { %v7109_v53 = vpop.eup %7108 }
 0x616   :  { %v980_v54 = vsel %vm559_vm5, %v7109_v53, 0.0  ;;  %v7111_v57 = vpop.eup %7110 }
 0x617   :  { %981 = vadd.xlane.f32.xlu0 %v980_v54  ;;  %v983_v58 = vsel %vm559_vm5, %v7111_v57, 0.0 }
 0x61f   :  { %6972 = vrot.lane.b32.xlu1 %v7768_v21, %s7477_s23 }
 0x62d   :  { %6977 = vrot.lane.b32.xlu0 %v7768_v21, %s7478_s20 }
 0x631   :  { %1079 = vrot.lane.b32.xlu0 %v7758_v16, %s7479_s11 }
 0x643   :  { %984 = vadd.xlane.f32.xlu1 %v983_v58 }
 0x654   :  { %1077 = vrot.lane.b32.xlu1 %v7760_v19, %s7479_s11 }
 0x693   :  { %v577_v59 = vpop.xlane.xlu1 %576 }
 0x694   :  { %7112 = vrcp.f32 %v577_v59  ;;  %v574_v60 = vpop.xlane.xlu0 %573 }
 0x695   :  { %7114 = vrcp.f32 %v574_v60 }
 0x69b   :  { %v781_v61 = vpop.xlane.xlu1 %780 }
 0x69c   :  { %7116 = vrcp.f32 %v781_v61 }
 0x69e   :  { %v7113_v62 = vpop.eup %7112 }
 0x69f   :  { %v7115_v63 = vpop.eup %7114  ;;  %v778_v0 = vpop.xlane.xlu0 %777  ;;  %v581_v4 = vmul.f32 %v7113_v62, %v7101_v30 }
 0x6a0   :  { %v6973_v1 = vpop.permute.xlu1 %6972  ;;  %7118 = vrcp.f32 %v778_v0  ;;  %v579_v3 = vmul.f32 %v7115_v63, %v7103_v32 }
 0x6a1   :  { %v6975_v16 = vunpack.i.h.bf16 %v6973_v1  ;;  %v6974_v2 = vunpack.i.l.bf16 %v6973_v1 }
 0x6a2   :  { %6129 = vmatprep.mubr.msk.f32.mxu1 %vm559_vm5, %v579_v3 }
 0x6a3   :  { %v6602_v5 = vpack.c.bf16 %v6975_v16, %v6974_v2  ;;  %6130 = vmatmul.mubr.msk.f32.vlgmr.msra.gmra.mrb[0].mxu1 %vm559_vm5, %v581_v4  ;;  %v1312_v4 = vld [vmem:[%s7555_s30] sm:$0xff] }
 0x6a4   :  { %6595 = vmatpush3.bf16.msra.mxu1 %v6592_v50  ;;  %v982_v19 = vpop.xlane.xlu0 %981 }
 0x6a5   :  { %7120 = vrcp.f32 %v982_v19  ;;  %6603 = vmatprep.subr.bf16.mxu1 %v6602_v5  ;;  %v1314_v19 = vld [vmem:[%s7555_s30 + $0x10] sm:$0xff] }
 0x6a6   :  { %v7117_v10 = vpop.eup %7116 }
 0x6a7   :  { %v785_v24 = vmul.f32 %v7117_v10, %v7105_v47  ;;  %v1315_v10 = vld [vmem:[%s7555_s30 + $0x18] sm:$0xff] }
 0x6a8   :  { %v6978_v6 = vpop.permute.xlu0 %6977 }
 0x6a9   :  { %v6980_v15 = vunpack.i.h.bf16 %v6978_v6  ;;  %v6979_v18 = vunpack.i.l.bf16 %v6978_v6 }
 0x6aa   :  { %v7119_v13 = vpop.eup %7118 }
 0x6ab   :  { %v783_v22 = vmul.f32 %v7119_v13, %v7107_v51  ;;  %v6606_v25 = vpack.c.bf16 %v6980_v15, %v6979_v18  ;;  %v6620_v13 = vpack.c.bf16 %v1315_v10, %v1314_v19 }
 0x6ac   :  { %v1080_v35 = vpop.permute.xlu0 %1079 }
 0x6ad   :  { %6143 = vmatprep.mubr.msk.f32.mxu1 %vm559_vm5, %v783_v22 }
 0x6ae   :  { %6144 = vmatmul.mubr.msk.f32.vlgmr.msra.gmra.mrb[2].mxu1 %vm559_vm5, %v785_v24 }
 0x6af   :  { %v7121_v29 = vpop.eup %7120  ;;  %6605 = vmatpush3.bf16.msra.mxu1 %v6602_v5  ;;  %v1313_v5 = vld [vmem:[%s7555_s30 + $0x8] sm:$0xff] }
 0x6b0   :  { %6608 = vmatprep.subr.msk.bf16.mxu1 %vm7784_vm4, %v6606_v25  ;;  %v987_v30 = vmul.f32 %v7121_v29, %v7109_v53  ;;  %v6616_v6 = vpack.c.bf16 %v1313_v5, %v1312_v4 }
 0x6b2   :  { %6157 = vmatprep.mubr.msk.f32.mxu1 %vm559_vm5, %v987_v30 }
 0x6d0   :  { %v985_v31 = vpop.xlane.xlu1 %984 }
 0x6d1   :  { %7122 = vrcp.f32 %v985_v31 }
 0x6d4   :  { %v1078_v34 = vpop.permute.xlu1 %1077 }
 0x6db   :  { %v7123_v32 = vpop.eup %7122 }
 0x6dc   :  { %v989_v33 = vmul.f32 %v7123_v32, %v7111_v57 }
 0x6de   :  { %6158 = vmatmul.mubr.msk.f32.vlgmr.msra.gmra.mrb[4].mxu1 %vm559_vm5, %v989_v33 }
 0x6df   :  { %6611 = vmatpush3.bf16.xpose.msk.msra.mxu1 %vm7784_vm4, %v6606_v25  ;;  %6164 = vmatprep.mubr.msk.f32.mxu1 %vm471_vm3, %v1078_v34 }
 0x6e6   :  { %6165 = vmatmul.mubr.msk.f32.vlgmr.msra.gmra.mrb[6].mxu1 %vm471_vm3, %v1080_v35 }
 0x776   :  { %v7854_v36 = vpop.f32.mrb[0].mxu1 }
 0x777   :  { %v7856_v37 = vpop.f32.mrb[1].mxu1 }
 0x781   :  { %v6145_v38 = vpop.f32.mrb[2].mxu1 }
 0x782   :  { %v864_v39 = vpop.f32.mrb[3].mxu1 }
 0x7b1   :  { %v6159_v40 = vpop.f32.mrb[4].mxu1 }
 0x7b2   :  { %v1068_v41 = vpop.f32.mrb[5].mxu1 }
 0x7b9   :  { %v6166_v42 = vpop.f32.mrb[6].mxu1 }
 0x7ba   :  { %v1169_v44 = vmul.f32 0.35355338, %v6166_v42  ;;  %v1159_v45 = vpop.f32.mrb[7].mxu1 }
 0x7bb   :  { %v1168_v47 = vmul.f32 0.35355338, %v1159_v45 }
 0x7bc   :  { %v1171_v48 = vadd.f32 %v1169_v44, %v7807_v43 }
 0x7bd   :  { %v1170_v49 = vadd.f32 %v1168_v47, %v7810_v46 }
 0x7be   :  { %v1175_v50 = vsel %vm559_vm5, %v1171_v48, -inf }
 0x7bf   :  { %1176 = vmax.xlane.f32.xlu0 %v1175_v50  ;;  %v1172_v51 = vsel %vm559_vm5, %v1170_v49, -inf }
 0x7c0   :  { %1173 = vmax.xlane.f32.xlu1 %v1172_v51 }
 0x84c   :  { %v1177_v52 = vpop.xlane.xlu0 %1176 }
 0x84d   :  { %v1179_v53 = vsub.f32 %v1171_v48, %v1177_v52  ;;  %v1174_v54 = vpop.xlane.xlu1 %1173 }
 0x84e   :  { %v1178_v55 = vsub.f32 %v1170_v49, %v1174_v54 }
 0x84f   :  { %v1182_v56 = vmul.f32 1.442695, %v1179_v53 }
 0x850   :  { %v1180_v57 = vmul.f32 1.442695, %v1178_v55 }
 0x851   :  { %7124 = vpow2.f32 %v1182_v56 }
 0x852   :  { %7126 = vpow2.f32 %v1180_v57  ;;  %v1542_v57 = vld [vmem:[%s8472_s18] sm:$0xff] }
 0x85b   :  { %v7125_v58 = vpop.eup %7124 }
 0x85c   :  { %v7127_v59 = vpop.eup %7126  ;;  %v1187_v43 = vsel %vm559_vm5, %v7125_v58, 0.0 }
 0x85d   :  { %1188 = vadd.xlane.f32.xlu1 %v1187_v43  ;;  %v1184_v46 = vsel %vm559_vm5, %v7127_v59, 0.0  ;;  %v1544_v43 = vld [vmem:[%s8472_s18 + $0x10] sm:$0xff] }
 0x85e   :  { %1185 = vadd.xlane.f32.xlu0 %v1184_v46  ;;  %v1545_v46 = vld [vmem:[%s8472_s18 + $0x18] sm:$0xff] }
 0x86e   :  { %1283 = vrot.lane.b32.xlu1 %v864_v39, %s7480_s15 }
 0x872   :  { %1285 = vrot.lane.b32.xlu1 %v6145_v38, %s7480_s15 }
 0x874   :  { %6982 = vrot.lane.b32.xlu0 %v7768_v21, %s7481_s21 }
 0x876   :  { %1293 = vrot.lane.b32.xlu1 %v6159_v40, %s8455_s0  ;;  %v5634_v40 = vld [vmem:[%s7560_s6] ss:$0 sm:$0xff] }
 0x878   :  { %1291 = vrot.lane.b32.xlu0 %v1068_v41, %s8455_s0 }
 0x8ea   :  { %v1189_v60 = vpop.xlane.xlu1 %1188 }
 0x8eb   :  { %7128 = vrcp.f32 %v1189_v60  ;;  %v1186_v61 = vpop.xlane.xlu0 %1185  ;;  %v6636_v60 = vpack.c.bf16 %v1545_v46, %v1544_v43 }
 0x8ec   :  { %7130 = vrcp.f32 %v1186_v61  ;;  %v367_v61 = vld [vmem:[%s8473_s22] sm:$0xff] }
 0x8ee   :  { %v1284_v22 = vpop.permute.xlu1 %1283 }
 0x8ef   :  { %v6983_v62 = vpop.permute.xlu0 %6982  ;;  %v1305_v30 = vsel %vm471_vm3, %v7856_v37, %v1284_v22  ;;  %v5638_v22 = vld [vmem:[%s8476_s29] ss:$0 sm:$0xff] }
 0x8f0   :  { %v6985_v63 = vunpack.i.h.bf16 %v6983_v62  ;;  %v6984_v0 = vunpack.i.l.bf16 %v6983_v62  ;;  %v368_v62 = vld [vmem:[%s8473_s22 + $0x8] sm:$0xff] }
 0x8f2   :  { %v6612_v1 = vpack.c.bf16 %v6985_v63, %v6984_v0  ;;  %v1286_v24 = vpop.permute.xlu1 %1285  ;;  %v1450_v63 = vld [vmem:[%s8474_s26] sm:$0xff]  ;;  %v1451_v0 = vld [vmem:[%s8474_s26 + $0x8] sm:$0xff] }
 0x8f3   :  { %v1292_v29 = vpop.permute.xlu0 %1291  ;;  %v1306_v32 = vsel %vm471_vm3, %v7854_v36, %v1286_v24 }
 0x8f4   :  { %6613 = vmatprep.subr.bf16.mxu0 %v6612_v1  ;;  %v1307_v33 = vsel %vm559_vm5, %v1305_v30, %v1292_v29 }
 0x8f5   :  { %v7129_v16 = vpop.eup %7128  ;;  %6615 = vmatpush3.bf16.msra.mxu0 %v6612_v1  ;;  %v1452_v1 = vld [vmem:[%s8474_s26 + $0x10] sm:$0xff] }
 0x8f6   :  { %v7131_v21 = vpop.eup %7130  ;;  %v1193_v3 = vmul.f32 %v7129_v16, %v7125_v58  ;;  %6617 = vmatprep.subr.bf16.mxu0 %v6616_v6  ;;  %v1294_v25 = vpop.permute.xlu1 %1293  ;;  %v1543_v58 = vld [vmem:[%s8472_s18 + $0x8] sm:$0xff]  ;;  %v1453_v16 = vld [vmem:[%s8474_s26 + $0x18] sm:$0xff] }
 0x8f7   :  { %v1191_v2 = vmul.f32 %v7131_v21, %v7127_v59  ;;  %v1308_v35 = vsel %vm559_vm5, %v1306_v32, %v1294_v25  ;;  %v6632_v59 = vpack.c.bf16 %v1543_v58, %v1542_v57  ;;  %v6624_v21 = vpack.c.bf16 %v1451_v0, %v1450_v63 }
 0x8f9   :  { %6171 = vmatprep.mubr.msk.f32.mxu0 %vm559_vm5, %v1191_v2  ;;  %v6628_v2 = vpack.c.bf16 %v1453_v16, %v1452_v1  ;;  %6625 = vmatprep.subr.bf16.mxu1 %v6624_v21 }
 0x8fa   :  { %6172 = vmatmul.mubr.msk.f32.vlgmr.msra.gmra.mrb[10].mxu0 %vm559_vm5, %v1193_v3  ;;  %6627 = vmatpush3.bf16.msra.mxu1 %v6624_v21 }
 0x8fb   :  { %6619 = vmatpush3.bf16.msra.mxu0 %v6616_v6  ;;  %6629 = vmatprep.subr.bf16.mxu1 %v6628_v2 }
 0x8fc   :  { %6621 = vmatprep.subr.bf16.mxu0 %v6620_v13 }
 0x8fe   :  { %6631 = vmatpush3.bf16.msra.mxu1 %v6628_v2 }
 0x8ff   :  { %6623 = vmatpush3.bf16.msra.mxu0 %v6620_v13 }
 0x900   :  { %6633 = vmatprep.subr.bf16.mxu0 %v6632_v59 }
 0x9cd   :  { %v6173_v15 = vpop.f32.mrb[10].mxu0 }
 0x9ce   :  { %1301 = vrot.lane.b32.xlu1 %v6173_v15, %s8453_s16  ;;  %v1272_v18 = vpop.f32.mrb[11].mxu0  ;;  %v5637_v15 = vld [vmem:[%s8475_s28] ss:$0 sm:$0xff] }
 0x9cf   :  { %1299 = vrot.lane.b32.xlu0 %v1272_v18, %s8453_s16 }
 0xa40   :  { %v1302_v31 = vpop.permute.xlu1 %1301 }
 0xa41   :  { %v1300_v34 = vpop.permute.xlu0 %1299  ;;  %v1311_v39 = vsel %vm1309_vm6, %v1308_v35, %v1302_v31 }
 0xa42   :  { %v1310_v38 = vsel %vm1309_vm6, %v1307_v33, %v1300_v34  ;;  %v5642_v33 = vld [vmem:[#allocation8] ss:$0 sm:$0xff] }
 0xa43   :  { %6182 = vmatprep.mubr.msk.f32.mxu0 %vm323_vm2, %v1310_v38 }
 0xa44   :  { %6183 = vmatmul.mubr.msk.f32.vlgmr.msra.gmra.mrb[12].mxu0 %vm323_vm2, %v1311_v39 }
 0xa45   :  { %6635 = vmatpush3.bf16.msra.mxu0 %v6632_v59  ;;  %6204 = vmatprep.mubr.msk.f32.mxu0 %vm323_vm2, %v367_v61 }
 0xa46   :  { %6637 = vmatprep.subr.bf16.mxu0 %v6636_v60 }
 0xa49   :  { %6639 = vmatpush3.bf16.msra.mxu0 %v6636_v60 }
 0xa4c   :  { %6205 = vmatmul.mubr.msk.f32.vlgmr.msra.gmra.mrb[14].mxu0 %vm323_vm2, %v368_v62 }
 0xb17   :  { %v6184_v41 = vpop.f32.mrb[12].mxu0 }
 0xb18   :  { %v1401_v37 = vadd.f32 %v6184_v41, %v5634_v40  ;;  %v1395_v42 = vpop.f32.mrb[13].mxu0 }
 0xb19   :  { %v1396_v44 = vadd.f32 %v5634_v40, %v1395_v42 }
 0xb1a   :  { %v1405_v36 = vadd.f32 %v1401_v37, %v7753_v12 }
 0xb1b   :  { %v1404_v45 = vadd.f32 %v1396_v44, %v7749_v9 }
 0xb1c   :  { %v1411_v47 = vsel %vm323_vm2, %v1405_v36, 0.0 }
 0xb1d   :  { %1412 = vadd.xlane.f32.xlu1 %v1411_v47  ;;  %v1408_v48 = vsel %vm323_vm2, %v1404_v45, 0.0 }
 0xb1e   :  { %1409 = vadd.xlane.f32.xlu0 %v1408_v48 }
 0xb1f   :  { %v6206_v34 = vpop.f32.mrb[14].mxu0 }
 0xb20   :  { %v1631_v35 = vadd.f32 %v6206_v34, %v5642_v33  ;;  %v1625_v38 = vpop.f32.mrb[15].mxu0 }
 0xb21   :  { %v1626_v39 = vadd.f32 %v5642_v33, %v1625_v38 }
 0xb23   :  { %v7917_v40 = vpack.i.bf16 %v1631_v35, %v1626_v39  ;;  %v6640_v41 = vpack.c.bf16 %v1631_v35, %v1626_v39 }
 0xb25   :  { %6642 = vmatprep.subr.msk.bf16.mxu1 %vm7784_vm4, %v6640_v41 }
 0xb2e   :  { %6987 = vrot.lane.b32.xlu1 %v7917_v40, %s7470_s9 }
 0xbaa   :  { %v1413_v49 = vpop.xlane.xlu1 %1412 }
 0xbab   :  { %v1415_v50 = vmul.f32 0.03125, %v1413_v49  ;;  %v1410_v51 = vpop.xlane.xlu0 %1409 }
 0xbac   :  { %v1414_v52 = vmul.f32 0.03125, %v1410_v51 }
 0xbad   :  { %v1417_v53 = vsub.f32 %v1405_v36, %v1415_v50 }
 0xbae   :  { %v1416_v54 = vsub.f32 %v1404_v45, %v1414_v52  ;;  %v6988_v37 = vpop.permute.xlu1 %6987  ;;  %v5639_v45 = vld [vmem:[#allocation6] ss:$0 sm:$0xff] }
 0xbaf   :  { %v1419_v12 = vmul.f32 %v1417_v53, %v1417_v53  ;;  %v6990_v42 = vunpack.i.h.bf16 %v6988_v37  ;;  %v6989_v44 = vunpack.i.l.bf16 %v6988_v37 }
 0xbb0   :  { %v1418_v55 = vmul.f32 %v1416_v54, %v1416_v54 }
 0xbb1   :  { %v1423_v56 = vsel %vm323_vm2, %v1419_v12, 0.0  ;;  %v6650_v36 = vpack.c.bf16 %v6990_v42, %v6989_v44  ;;  %v7947_v12 = vld [vmem:[%s8477_s1] sm:$0xff] }
 0xbb2   :  { %v1420_v9 = vsel %vm323_vm2, %v1418_v55, 0.0 }
 0xbb3   :  { %1421 = vadd.xlane.f32.xlu0 %v1420_v9 }
 0xbb7   :  { %1424 = vadd.xlane.f32.xlu0 %v1423_v56 }
 0xc40   :  { %v1422_v3 = vpop.xlane.xlu0 %1421 }
 0xc41   :  { %v1426_v4 = vmul.f32 0.03125, %v1422_v3 }
 0xc43   :  { %v1428_v5 = vadd.f32 1e-05, %v1426_v4 }
 0xc44   :  { %v1425_v19 = vpop.xlane.xlu0 %1424 }
 0xc45   :  { %7132 = vrsqrt.f32 %v1428_v5  ;;  %v1427_v6 = vmul.f32 0.03125, %v1425_v19 }
 0xc47   :  { %v1429_v10 = vadd.f32 1e-05, %v1427_v6 }
 0xc49   :  { %7134 = vrsqrt.f32 %v1429_v10 }
 0xc4f   :  { %v7133_v13 = vpop.eup %7132 }
 0xc50   :  { %v1432_v18 = vmul.f32 %v7133_v13, %v1416_v54  ;;  %v7944_v54 = vld [vmem:[%s8477_s1 + $0x8] sm:$0xff] }
 0xc52   :  { %v1440_v24 = vmul.f32 %v5637_v15, %v1432_v18 }
 0xc53   :  { %v7135_v25 = vpop.eup %7134 }
 0xc54   :  { %v1433_v29 = vmul.f32 %v7135_v25, %v1417_v53  ;;  %v7909_v30 = vadd.f32 %v5638_v22, %v1440_v24 }
 0xc56   :  { %v1441_v31 = vmul.f32 %v5637_v15, %v1433_v29  ;;  %6193 = vmatprep.mubr.msk.f32.mxu1 %vm323_vm2, %v7909_v30 }
 0xc58   :  { %v7913_v32 = vadd.f32 %v5638_v22, %v1441_v31 }
 0xc5a   :  { %6194 = vmatmul.mubr.msk.f32.vlgmr.msra.gmra.mrb[8].mxu1 %vm323_vm2, %v7913_v32 }
 0xc5b   :  { %6645 = vmatpush3.bf16.xpose.msk.msra.mxu1 %vm7784_vm4, %v6640_v41 }
 0xc5c   :  { %6652 = vmatprep.subr.msk.bf16.mxu1 %vm7784_vm4, %v6650_v36 }
 0xd2d   :  { %v6195_v47 = vpop.f32.mrb[8].mxu1 }
 0xd2e   :  { %v7927_v48 = vadd.f32 %v6195_v47, %v5639_v45  ;;  %v1533_v49 = vpop.f32.mrb[9].mxu1 }
 0xd2f   :  { %v7929_v50 = vadd.f32 %v5639_v45, %v1533_v49 }
 0xd30   :  { %1836 = vrot.lane.b32.xlu1 %v7927_v48, %s7470_s9 }
 0xd31   :  { %1834 = vrot.lane.b32.xlu0 %v7929_v50, %s7470_s9  ;;  %6211 = vmatprep.mubr.msk.f32.mxu1 %vm471_vm3, %v7929_v50 }
 0xd32   :  { %6212 = vmatmul.mubr.msk.f32.vlgmr.msra.gmra.mrb[10].mxu1 %vm471_vm3, %v7927_v48 }
 0xd33   :  { %6655 = vmatpush3.bf16.xpose.msk.msra.mxu1 %vm7784_vm4, %v6650_v36 }
 0xda2   :  { %v1837_v52 = vpop.permute.xlu1 %1836 }
 0xda3   :  { %v1835_v51 = vpop.permute.xlu0 %1834 }
 0xda4   :  { %6225 = vmatprep.mubr.msk.f32.mxu1 %vm471_vm3, %v1835_v51 }
 0xda5   :  { %6226 = vmatmul.mubr.msk.f32.vlgmr.msra.gmra.mrb[12].mxu1 %vm471_vm3, %v1837_v52 }
 0xe05   :  { %v6213_v53 = vpop.f32.mrb[10].mxu1 }
 0xe06   :  { %v1722_v55 = vmul.f32 0.35355338, %v6213_v53  ;;  %v1712_v9 = vpop.f32.mrb[11].mxu1 }
 0xe07   :  { %v1721_v56 = vmul.f32 0.35355338, %v1712_v9 }
 0xe08   :  { %v1724_v57 = vadd.f32 %v1722_v55, %v7944_v54 }
 0xe09   :  { %v1723_v58 = vadd.f32 %v1721_v56, %v7947_v12 }
 0xe0a   :  { %v1728_v59 = vsel %vm559_vm5, %v1724_v57, -inf }
 0xe0b   :  { %1729 = vmax.xlane.f32.xlu0 %v1728_v59  ;;  %v1725_v43 = vsel %vm559_vm5, %v1723_v58, -inf }
 0xe0c   :  { %1726 = vmax.xlane.f32.xlu1 %v1725_v43 }
 0xe78   :  { %v6227_v46 = vpop.f32.mrb[12].mxu1 }
 0xe79   :  { %v1926_v60 = vmul.f32 0.35355338, %v6227_v46  ;;  %v1916_v61 = vpop.f32.mrb[13].mxu1 }
 0xe7a   :  { %v1925_v62 = vmul.f32 0.35355338, %v1916_v61 }
 0xe7b   :  { %v1928_v63 = vadd.f32 %v1926_v60, %v7944_v54 }
 0xe7c   :  { %v1927_v0 = vadd.f32 %v1925_v62, %v7947_v12 }
 0xe7d   :  { %v1932_v1 = vsel %vm559_vm5, %v1928_v63, -inf }
 0xe7e   :  { %1933 = vmax.xlane.f32.xlu1 %v1932_v1  ;;  %v1929_v16 = vsel %vm559_vm5, %v1927_v0, -inf }
 0xe7f   :  { %1930 = vmax.xlane.f32.xlu0 %v1929_v16 }
 0xe98   :  { %v1730_v21 = vpop.xlane.xlu0 %1729 }
 0xe99   :  { %v1732_v2 = vsub.f32 %v1724_v57, %v1730_v21  ;;  %v1727_v3 = vpop.xlane.xlu1 %1726 }
 0xe9a   :  { %v1731_v4 = vsub.f32 %v1723_v58, %v1727_v3 }
 0xe9b   :  { %v1735_v5 = vmul.f32 1.442695, %v1732_v2 }
 0xe9c   :  { %v1733_v19 = vmul.f32 1.442695, %v1731_v4 }
 0xe9d   :  { %7136 = vpow2.f32 %v1735_v5 }
 0xe9e   :  { %7138 = vpow2.f32 %v1733_v19 }
 0xea7   :  { %v7137_v6 = vpop.eup %7136 }
 0xea8   :  { %v7139_v10 = vpop.eup %7138  ;;  %v1740_v13 = vsel %vm559_vm5, %v7137_v6, 0.0 }
 0xea9   :  { %1741 = vadd.xlane.f32.xlu1 %v1740_v13  ;;  %v1737_v15 = vsel %vm559_vm5, %v7139_v10, 0.0 }
 0xeaa   :  { %1738 = vadd.xlane.f32.xlu0 %v1737_v15 }
 0xf0b   :  { %v1934_v18 = vpop.xlane.xlu1 %1933 }
 0xf0c   :  { %v1936_v22 = vsub.f32 %v1928_v63, %v1934_v18  ;;  %v1931_v24 = vpop.xlane.xlu0 %1930 }
 0xf0d   :  { %v1935_v25 = vsub.f32 %v1927_v0, %v1931_v24 }
 0xf0e   :  { %v1939_v29 = vmul.f32 1.442695, %v1936_v22 }
 0xf0f   :  { %v1937_v31 = vmul.f32 1.442695, %v1935_v25 }
 0xf10   :  { %7140 = vpow2.f32 %v1939_v29 }
 0xf11   :  { %7142 = vpow2.f32 %v1937_v31 }
 0xf1a   :  { %v7141_v33 = vpop.eup %7140 }
 0xf1b   :  { %v7143_v34 = vpop.eup %7142  ;;  %v1944_v35 = vsel %vm559_vm5, %v7141_v33, 0.0 }
 0xf1c   :  { %1945 = vadd.xlane.f32.xlu1 %v1944_v35  ;;  %v1941_v38 = vsel %vm559_vm5, %v7143_v34, 0.0 }
 0xf1d   :  { %1942 = vadd.xlane.f32.xlu0 %v1941_v38 }
 0xf2d   :  { %6997 = vrot.lane.b32.xlu1 %v7917_v40, %s7472_s25 }
 0xf31   :  { %7002 = vrot.lane.b32.xlu1 %v7917_v40, %s7474_s8 }
 0xf33   :  { %6992 = vrot.lane.b32.xlu0 %v7917_v40, %s7471_s13 }
 0xf35   :  { %2040 = vrot.lane.b32.xlu1 %v7927_v48, %s7474_s8 }
 0xf36   :  { %v1742_v42 = vpop.xlane.xlu1 %1741 }
 0xf37   :  { %2038 = vrot.lane.b32.xlu0 %v7929_v50, %s7474_s8  ;;  %v1739_v39 = vpop.xlane.xlu0 %1738 }
 0xf38   :  { %7144 = vrcp.f32 %v1739_v39 }
 0xf39   :  { %7146 = vrcp.f32 %v1742_v42 }
 0xf42   :  { %v7145_v41 = vpop.eup %7144 }
 0xf43   :  { %v1744_v37 = vmul.f32 %v7145_v41, %v7139_v10  ;;  %v7147_v56 = vpop.eup %7146 }
 0xf44   :  { %v1746_v46 = vmul.f32 %v7147_v56, %v7137_v6 }
 0xf45   :  { %6218 = vmatprep.mubr.msk.f32.mxu0 %vm559_vm5, %v1744_v37 }
 0xfa9   :  { %v1946_v44 = vpop.xlane.xlu1 %1945 }
 0xfaa   :  { %v1943_v36 = vpop.xlane.xlu0 %1942 }
 0xfab   :  { %7148 = vrcp.f32 %v1943_v36 }
 0xfac   :  { %7150 = vrcp.f32 %v1946_v44 }
 0xfad   :  { %v6998_v45 = vpop.permute.xlu1 %6997 }
 0xfae   :  { %v6993_v47 = vpop.permute.xlu0 %6992  ;;  %v7000_v49 = vunpack.i.h.bf16 %v6998_v45  ;;  %v6999_v51 = vunpack.i.l.bf16 %v6998_v45 }
 0xfaf   :  { %v6995_v52 = vunpack.i.h.bf16 %v6993_v47  ;;  %v6994_v53 = vunpack.i.l.bf16 %v6993_v47 }
 0xfb0   :  { %v6656_v59 = vpack.c.bf16 %v7000_v49, %v6999_v51 }
 0xfb1   :  { %v7003_v55 = vpop.permute.xlu1 %7002  ;;  %v6646_v9 = vpack.c.bf16 %v6995_v52, %v6994_v53 }
 0xfb2   :  { %v7005_v57 = vunpack.i.h.bf16 %v7003_v55  ;;  %v7004_v58 = vunpack.i.l.bf16 %v7003_v55  ;;  %v2039_v0 = vpop.permute.xlu0 %2038 }
 0xfb3   :  { %6647 = vmatprep.subr.bf16.mxu0 %v6646_v9 }
 0xfb4   :  { %6649 = vmatpush3.bf16.msra.mxu0 %v6646_v9  ;;  %v6660_v62 = vpack.c.bf16 %v7005_v57, %v7004_v58 }
 0xfb5   :  { %v7149_v43 = vpop.eup %7148  ;;  %6657 = vmatprep.subr.bf16.mxu0 %v6656_v59  ;;  %v2041_v1 = vpop.permute.xlu1 %2040 }
 0xfb6   :  { %v7151_v60 = vpop.eup %7150  ;;  %v1948_v61 = vmul.f32 %v7149_v43, %v7143_v34 }
 0xfb7   :  { %6219 = vmatmul.mubr.msk.f32.vlgmr.msra.gmra.mrb[16].mxu0 %vm559_vm5, %v1746_v46  ;;  %v1950_v63 = vmul.f32 %v7151_v60, %v7141_v33 }
 0xfb8   :  { %6659 = vmatpush3.bf16.msra.mxu0 %v6656_v59  ;;  %6232 = vmatprep.mubr.msk.f32.mxu0 %vm559_vm5, %v1948_v61 }
 0xfb9   :  { %6662 = vmatprep.subr.msk.bf16.mxu0 %vm7784_vm4, %v6660_v62 }
 0xfbb   :  { %6233 = vmatmul.mubr.msk.f32.vlgmr.msra.gmra.mrb[18].mxu0 %vm559_vm5, %v1950_v63 }
 0xfbc   :  { %6239 = vmatprep.mubr.msk.f32.mxu0 %vm471_vm3, %v2039_v0 }
 0xfc1   :  { %6665 = vmatpush3.bf16.xpose.msk.msra.mxu0 %vm7784_vm4, %v6660_v62 }
 0xfc8   :  { %6240 = vmatmul.mubr.msk.f32.vlgmr.msra.gmra.mrb[20].mxu0 %vm471_vm3, %v2041_v1 }
0x108a   :  { %v7981_v16 = vpop.f32.mrb[16].mxu0 }
0x108b   :  { %v7983_v21 = vpop.f32.mrb[17].mxu0 }
0x108e   :  { %v7985_v2 = vpop.f32.mrb[18].mxu0 }
0x108f   :  { %v7987_v3 = vpop.f32.mrb[19].mxu0 }
0x109b   :  { %v6241_v4 = vpop.f32.mrb[20].mxu0 }
0x109c   :  { %v2130_v5 = vmul.f32 0.35355338, %v6241_v4  ;;  %v2120_v19 = vpop.f32.mrb[21].mxu0 }
0x109d   :  { %v2129_v6 = vmul.f32 0.35355338, %v2120_v19 }
0x109e   :  { %v2132_v10 = vadd.f32 %v2130_v5, %v7944_v54 }
0x109f   :  { %v2131_v13 = vadd.f32 %v2129_v6, %v7947_v12 }
0x10a0   :  { %v2136_v15 = vsel %vm559_vm5, %v2132_v10, -inf }
0x10a1   :  { %2137 = vmax.xlane.f32.xlu1 %v2136_v15  ;;  %v2133_v18 = vsel %vm559_vm5, %v2131_v13, -inf }
0x10a2   :  { %2134 = vmax.xlane.f32.xlu0 %v2133_v18 }
0x10b2   :  { %7007 = vrot.lane.b32.xlu1 %v7917_v40, %s7473_s3 }
0x10b6   :  { %2242 = vrot.lane.b32.xlu1 %v7929_v50, %s7479_s11 }
0x10ba   :  { %2244 = vrot.lane.b32.xlu1 %v7927_v48, %s7479_s11 }
0x112e   :  { %v2138_v22 = vpop.xlane.xlu1 %2137 }
0x112f   :  { %v2140_v24 = vsub.f32 %v2132_v10, %v2138_v22  ;;  %v2135_v25 = vpop.xlane.xlu0 %2134 }
0x1130   :  { %v2139_v29 = vsub.f32 %v2131_v13, %v2135_v25 }
0x1131   :  { %v2143_v31 = vmul.f32 1.442695, %v2140_v24 }
0x1132   :  { %v2141_v33 = vmul.f32 1.442695, %v2139_v29  ;;  %v7008_v34 = vpop.permute.xlu1 %7007 }
0x1133   :  { %7152 = vpow2.f32 %v2143_v31  ;;  %v7010_v35 = vunpack.i.h.bf16 %v7008_v34  ;;  %v7009_v38 = vunpack.i.l.bf16 %v7008_v34 }
0x1134   :  { %7154 = vpow2.f32 %v2141_v33 }
0x1135   :  { %v6666_v39 = vpack.c.bf16 %v7010_v35, %v7009_v38  ;;  %v2476_v35 = vld [vmem:[%s8478_s4] sm:$0xff]  ;;  %v2477_v38 = vld [vmem:[%s8478_s4 + $0x8] sm:$0xff] }
0x1136   :  { %v2243_v9 = vpop.permute.xlu1 %2242 }
0x1137   :  { %6667 = vmatprep.subr.bf16.mxu1 %v6666_v39 }
0x1138   :  { %6669 = vmatpush3.bf16.msra.mxu1 %v6666_v39  ;;  %v2478_v39 = vld [vmem:[%s8478_s4 + $0x10] sm:$0xff] }
0x113a   :  { %v2245_v56 = vpop.permute.xlu1 %2244 }
0x113d   :  { %v7153_v41 = vpop.eup %7152 }
0x113e   :  { %v2148_v50 = vsel %vm559_vm5, %v7153_v41, 0.0  ;;  %v7155_v37 = vpop.eup %7154 }
0x113f   :  { %2149 = vadd.xlane.f32.xlu0 %v2148_v50  ;;  %v2145_v48 = vsel %vm559_vm5, %v7155_v37, 0.0 }
0x1143   :  { %2146 = vadd.xlane.f32.xlu0 %v2145_v48 }
0x1159   :  { %7012 = vrot.lane.b32.xlu0 %v7917_v40, %s7479_s11 }
0x11cc   :  { %v2150_v42 = vpop.xlane.xlu0 %2149 }
0x11cd   :  { %7156 = vrcp.f32 %v2150_v42 }
0x11d0   :  { %v2147_v44 = vpop.xlane.xlu0 %2146 }
0x11d1   :  { %7158 = vrcp.f32 %v2147_v44 }
0x11d4   :  { %v7013_v36 = vpop.permute.xlu0 %7012 }
0x11d5   :  { %v7015_v45 = vunpack.i.h.bf16 %v7013_v36  ;;  %v7014_v47 = vunpack.i.l.bf16 %v7013_v36 }
0x11d7   :  { %v6670_v49 = vpack.c.bf16 %v7015_v45, %v7014_v47  ;;  %v7157_v51 = vpop.eup %7156 }
0x11d8   :  { %v2154_v55 = vmul.f32 %v7157_v51, %v7153_v41  ;;  %v6680_v41 = vpack.c.bf16 %v2477_v38, %v2476_v35 }
0x11d9   :  { %6672 = vmatprep.subr.msk.bf16.mxu1 %vm7784_vm4, %v6670_v49 }
0x11db   :  { %v7159_v52 = vpop.eup %7158 }
0x11dc   :  { %v2152_v53 = vmul.f32 %v7159_v52, %v7155_v37 }
0x11de   :  { %6246 = vmatprep.mubr.msk.f32.mxu1 %vm559_vm5, %v2152_v53 }
0x11df   :  { %6247 = vmatmul.mubr.msk.f32.vlgmr.msra.gmra.mrb[14].mxu1 %vm559_vm5, %v2154_v55 }
0x11e0   :  { %6675 = vmatpush3.bf16.xpose.msk.msra.mxu1 %vm7784_vm4, %v6670_v49  ;;  %6253 = vmatprep.mubr.msk.f32.mxu1 %vm471_vm3, %v2243_v9 }
0x11e7   :  { %6254 = vmatmul.mubr.msk.f32.vlgmr.msra.gmra.mrb[16].mxu1 %vm471_vm3, %v2245_v56 }
0x12b2   :  { %v6248_v57 = vpop.f32.mrb[14].mxu1 }
0x12b3   :  { %v2233_v58 = vpop.f32.mrb[15].mxu1 }
0x12ba   :  { %v6255_v59 = vpop.f32.mrb[16].mxu1 }
0x12bb   :  { %v2334_v43 = vmul.f32 0.35355338, %v6255_v59  ;;  %v2324_v46 = vpop.f32.mrb[17].mxu1 }
0x12bc   :  { %v2333_v60 = vmul.f32 0.35355338, %v2324_v46 }
0x12bd   :  { %v2336_v61 = vadd.f32 %v2334_v43, %v7944_v54 }
0x12be   :  { %v2335_v62 = vadd.f32 %v2333_v60, %v7947_v12 }
0x12bf   :  { %v2340_v63 = vsel %vm559_vm5, %v2336_v61, -inf }
0x12c0   :  { %2341 = vmax.xlane.f32.xlu1 %v2340_v63  ;;  %v2337_v0 = vsel %vm559_vm5, %v2335_v62, -inf }
0x12c1   :  { %2338 = vmax.xlane.f32.xlu0 %v2337_v0 }
0x12d1   :  { %7017 = vrot.lane.b32.xlu1 %v7917_v40, %s7478_s20 }
0x12d5   :  { %2450 = vrot.lane.b32.xlu1 %v7985_v2, %s7480_s15 }
0x12d9   :  { %2456 = vrot.lane.b32.xlu1 %v2233_v58, %s8455_s0 }
0x134d   :  { %v2342_v1 = vpop.xlane.xlu1 %2341 }
0x134e   :  { %v2344_v4 = vsub.f32 %v2336_v61, %v2342_v1  ;;  %v2339_v5 = vpop.xlane.xlu0 %2338 }
0x134f   :  { %v2343_v54 = vsub.f32 %v2335_v62, %v2339_v5 }
0x1350   :  { %v2347_v19 = vmul.f32 1.442695, %v2344_v4 }
0x1351   :  { %v2345_v12 = vmul.f32 1.442695, %v2343_v54  ;;  %v7018_v6 = vpop.permute.xlu1 %7017 }
0x1352   :  { %v7020_v10 = vunpack.i.h.bf16 %v7018_v6  ;;  %v7019_v13 = vunpack.i.l.bf16 %v7018_v6  ;;  %v2615_v6 = vld [vmem:[%s8479_s2 + $0x8] sm:$0xff] }
0x1353   :  { %7160 = vpow2.f32 %v2345_v12  ;;  %v2614_v12 = vld [vmem:[%s8479_s2] sm:$0xff] }
0x1354   :  { %v6676_v15 = vpack.c.bf16 %v7020_v10, %v7019_v13  ;;  %7162 = vpow2.f32 %v2347_v19  ;;  %v6688_v10 = vpack.c.bf16 %v2615_v6, %v2614_v12  ;;  %v2616_v13 = vld [vmem:[%s8479_s2 + $0x10] sm:$0xff] }
0x1355   :  { %v2451_v44 = vpop.permute.xlu1 %2450 }
0x1356   :  { %6677 = vmatprep.subr.bf16.mxu0 %v6676_v15  ;;  %v2471_v51 = vsel %vm471_vm3, %v7981_v16, %v2451_v44  ;;  %6689 = vmatprep.subr.bf16.mxu1 %v6688_v10 }
0x1357   :  { %6679 = vmatpush3.bf16.msra.mxu0 %v6676_v15  ;;  %v2617_v15 = vld [vmem:[%s8479_s2 + $0x18] sm:$0xff]  ;;  %6691 = vmatpush3.bf16.msra.mxu1 %v6688_v10 }
0x1358   :  { %6681 = vmatprep.subr.bf16.mxu0 %v6680_v41 }
0x1359   :  { %v2457_v45 = vpop.permute.xlu1 %2456 }
0x135d   :  { %v7161_v40 = vpop.eup %7160 }
0x135e   :  { %v2349_v18 = vsel %vm559_vm5, %v7161_v40, 0.0  ;;  %v7163_v2 = vpop.eup %7162 }
0x135f   :  { %2350 = vadd.xlane.f32.xlu0 %v2349_v18  ;;  %v2352_v22 = vsel %vm559_vm5, %v7163_v2, 0.0 }
0x1363   :  { %2353 = vadd.xlane.f32.xlu0 %v2352_v22 }
0x1379   :  { %2448 = vrot.lane.b32.xlu0 %v7987_v3, %s7480_s15  ;;  %v2479_v3 = vld [vmem:[%s8478_s4 + $0x18] sm:$0xff] }
0x137a   :  { %v6684_v50 = vpack.c.bf16 %v2479_v3, %v2478_v39  ;;  %v5673_v39 = vld [vmem:[%s8481_s10] ss:$0 sm:$0xff] }
0x137d   :  { %2458 = vrot.lane.b32.xlu0 %v6248_v57, %s8455_s0  ;;  %v5669_v57 = vld [vmem:[#allocation9] ss:$0 sm:$0xff]  ;;  %s8483_s0 = sld [smem:[#allocation31_spill]] }
0x13ec   :  { %v2351_v24 = vpop.xlane.xlu0 %2350 }
0x13ed   :  { %7164 = vrcp.f32 %v2351_v24 }
0x13f0   :  { %v2354_v25 = vpop.xlane.xlu0 %2353 }
0x13f1   :  { %7166 = vrcp.f32 %v2354_v25 }
0x13f4   :  { %v2449_v42 = vpop.permute.xlu0 %2448 }
0x13f5   :  { %v2470_v47 = vsel %vm471_vm3, %v7983_v21, %v2449_v42  ;;  %v2725_v42 = vld [vmem:[%s7635_s12 + $0x8] sm:$0xff] }
0x13f6   :  { %v2472_v53 = vsel %vm559_vm5, %v2470_v47, %v2457_v45  ;;  %v2727_v45 = vld [vmem:[%s7635_s12 + $0x18] sm:$0xff] }
0x13f7   :  { %v7165_v29 = vpop.eup %7164 }
0x13f8   :  { %v2356_v31 = vmul.f32 %v7165_v29, %v7161_v40  ;;  %v2459_v36 = vpop.permute.xlu0 %2458  ;;  %v6692_v40 = vpack.c.bf16 %v2617_v15, %v2616_v13  ;;  %v5677_v13 = vld [vmem:[#allocation12] ss:$0 sm:$0xff] }
0x13f9   :  { %v2473_v55 = vsel %vm559_vm5, %v2471_v51, %v2459_v36  ;;  %v2726_v36 = vld [vmem:[%s7635_s12 + $0x10] sm:$0xff]  ;;  %v2729_v51 = vld [vmem:[%s7635_s12 + $0x28] sm:$0xff] }
0x13fa   :  { %6260 = vmatprep.mubr.msk.f32.mxu0 %vm559_vm5, %v2356_v31  ;;  %6693 = vmatprep.subr.bf16.mxu1 %v6692_v40  ;;  %v6700_v47 = vpack.c.bf16 %v2727_v45, %v2726_v36  ;;  %v5684_v36 = vld [vmem:[%s7545_s19 + $0x30] sm:$0xff]  ;;  %v5685_v45 = vld [vmem:[%s7545_s19 + $0x38] sm:$0xff] }
0x13fb   :  { %v7167_v33 = vpop.eup %7166  ;;  %6695 = vmatpush3.bf16.msra.mxu1 %v6692_v40 }
0x13fc   :  { %v2358_v34 = vmul.f32 %v7167_v33, %v7163_v2  ;;  %v5672_v33 = vld [vmem:[%s8480_s7] ss:$0 sm:$0xff] }
0x13fe   :  { %6261 = vmatmul.mubr.msk.f32.vlgmr.msra.gmra.mrb[22].mxu0 %vm559_vm5, %v2358_v34 }
0x13ff   :  { %6683 = vmatpush3.bf16.msra.mxu0 %v6680_v41 }
0x1400   :  { %6685 = vmatprep.subr.bf16.mxu0 %v6684_v50 }
0x1403   :  { %6687 = vmatpush3.bf16.msra.mxu0 %v6684_v50 }
0x14d1   :  { %v6262_v37 = vpop.f32.mrb[22].mxu0 }
0x14d2   :  { %2466 = vrot.lane.b32.xlu0 %v6262_v37, %s8453_s16  ;;  %v2437_v48 = vpop.f32.mrb[23].mxu0 }
0x14d3   :  { %2464 = vrot.lane.b32.xlu1 %v2437_v48, %s8453_s16  ;;  %v2724_v48 = vld [vmem:[%s7635_s12] sm:$0xff]  ;;  %s8482_s16 = sld [smem:[#allocation30_spill]] }
0x14d4   :  { %v6696_v44 = vpack.c.bf16 %v2725_v42, %v2724_v48  ;;  %v5682_v48 = vld [vmem:[%s7545_s19 + $0x20] sm:$0xff]  ;;  %v5683_v42 = vld [vmem:[%s7545_s19 + $0x28] sm:$0xff]  ;;  %s8485_s19 = smov 24  }
0x14d6   :  { %6697 = vmatprep.subr.bf16.mxu0 %v6696_v44 }
0x1544   :  { %v2467_v49 = vpop.permute.xlu0 %2466 }
0x1545   :  { %v2465_v52 = vpop.permute.xlu1 %2464  ;;  %v2475_v56 = vsel %vm1309_vm6, %v2473_v55, %v2467_v49  ;;  %v2728_v49 = vld [vmem:[%s7635_s12 + $0x20] sm:$0xff]  ;;  %v2731_v55 = vld [vmem:[%s7635_s12 + $0x38] sm:$0xff] }
0x1546   :  { %v2474_v9 = vsel %vm1309_vm6, %v2472_v53, %v2465_v52  ;;  %v6704_v52 = vpack.c.bf16 %v2729_v51, %v2728_v49  ;;  %v2730_v53 = vld [vmem:[%s7635_s12 + $0x30] sm:$0xff] }
0x1547   :  { %6271 = vmatprep.mubr.msk.f32.mxu0 %vm323_vm2, %v2474_v9  ;;  %v6708_v9 = vpack.c.bf16 %v2731_v55, %v2730_v53 }
0x1548   :  { %6272 = vmatmul.mubr.msk.f32.vlgmr.msra.gmra.mrb[24].mxu0 %vm323_vm2, %v2475_v56  ;;  %v5674_v56 = vld [vmem:[#allocation11] ss:$0 sm:$0xff] }
0x1549   :  { %6699 = vmatpush3.bf16.msra.mxu0 %v6696_v44  ;;  %v6712_v44 = vpack.c.bf16 %v5683_v42, %v5682_v48 }
0x154a   :  { %6701 = vmatprep.subr.bf16.mxu0 %v6700_v47 }
0x154b   :  { %6713 = vmatprep.subr.bf16.mxu1 %v6712_v44 }
0x154d   :  { %6703 = vmatpush3.bf16.msra.mxu0 %v6700_v47  ;;  %v6716_v47 = vpack.c.bf16 %v5685_v45, %v5684_v36 }
0x154e   :  { %6705 = vmatprep.subr.bf16.mxu0 %v6704_v52 }
0x1551   :  { %6707 = vmatpush3.bf16.msra.mxu0 %v6704_v52 }
0x1552   :  { %6709 = vmatprep.subr.bf16.mxu0 %v6708_v9 }
0x1555   :  { %6711 = vmatpush3.bf16.msra.mxu0 %v6708_v9 }
0x161b   :  { %v6273_v58 = vpop.f32.mrb[24].mxu0 }
0x161c   :  { %v2565_v21 = vadd.f32 %v6273_v58, %v5669_v57  ;;  %v2559_v59 = vpop.f32.mrb[25].mxu0 }
0x161d   :  { %v2560_v43 = vadd.f32 %v5669_v57, %v2559_v59 }
0x161e   :  { %v2569_v16 = vadd.f32 %v2565_v21, %v7913_v32 }
0x161f   :  { %v2568_v46 = vadd.f32 %v2560_v43, %v7909_v30 }
0x1620   :  { %v2575_v60 = vsel %vm323_vm2, %v2569_v16, 0.0 }
0x1621   :  { %2576 = vadd.xlane.f32.xlu0 %v2575_v60  ;;  %v2572_v61 = vsel %vm323_vm2, %v2568_v46, 0.0 }
0x1622   :  { %2573 = vadd.xlane.f32.xlu1 %v2572_v61 }
0x16ae   :  { %v2577_v62 = vpop.xlane.xlu0 %2576 }
0x16af   :  { %v2579_v63 = vmul.f32 0.03125, %v2577_v62  ;;  %v2574_v0 = vpop.xlane.xlu1 %2573 }
0x16b0   :  { %v2578_v1 = vmul.f32 0.03125, %v2574_v0 }
0x16b1   :  { %v2581_v4 = vsub.f32 %v2569_v16, %v2579_v63 }
0x16b2   :  { %v2580_v5 = vsub.f32 %v2568_v46, %v2578_v1 }
0x16b3   :  { %v2583_v54 = vmul.f32 %v2581_v4, %v2581_v4 }
0x16b4   :  { %v2582_v32 = vmul.f32 %v2580_v5, %v2580_v5 }
0x16b5   :  { %v2587_v30 = vsel %vm323_vm2, %v2583_v54, 0.0 }
0x16b6   :  { %2588 = vadd.xlane.f32.xlu1 %v2587_v30  ;;  %v2584_v19 = vsel %vm323_vm2, %v2582_v32, 0.0 }
0x16b7   :  { %2585 = vadd.xlane.f32.xlu0 %v2584_v19 }
0x1743   :  { %v2589_v18 = vpop.xlane.xlu1 %2588 }
0x1744   :  { %v2591_v2 = vmul.f32 0.03125, %v2589_v18  ;;  %v2586_v22 = vpop.xlane.xlu0 %2585 }
0x1745   :  { %v2590_v24 = vmul.f32 0.03125, %v2586_v22 }
0x1746   :  { %v2593_v25 = vadd.f32 1e-05, %v2591_v2 }
0x1747   :  { %v2592_v29 = vadd.f32 1e-05, %v2590_v24 }
0x1748   :  { %7168 = vrsqrt.f32 %v2593_v25 }
0x1749   :  { %7170 = vrsqrt.f32 %v2592_v29 }
0x1752   :  { %v7169_v31 = vpop.eup %7168 }
0x1753   :  { %v7171_v34 = vpop.eup %7170  ;;  %v2597_v35 = vmul.f32 %v7169_v31, %v2581_v4 }
0x1754   :  { %v2596_v38 = vmul.f32 %v7171_v34, %v2580_v5 }
0x1755   :  { %v2605_v41 = vmul.f32 %v5672_v33, %v2597_v35 }
0x1756   :  { %v2604_v3 = vmul.f32 %v5672_v33, %v2596_v38 }
0x1757   :  { %v2613_v37 = vadd.f32 %v5673_v39, %v2605_v41 }
0x1758   :  { %v2612_v50 = vadd.f32 %v5673_v39, %v2604_v3 }
0x175a   :  { %6282 = vmatprep.mubr.msk.f32.mxu1 %vm323_vm2, %v2612_v50 }
0x175b   :  { %6283 = vmatmul.mubr.msk.f32.vlgmr.msra.gmra.mrb[18].mxu1 %vm323_vm2, %v2613_v37 }
0x175c   :  { %6715 = vmatpush3.bf16.msra.mxu1 %v6712_v44 }
0x175d   :  { %6717 = vmatprep.subr.bf16.mxu1 %v6716_v47 }
0x1760   :  { %6719 = vmatpush3.bf16.msra.mxu1 %v6716_v47 }
0x182e   :  { %v6284_v57 = vpop.f32.mrb[18].mxu1 }
0x182f   :  { %v2703_v58 = vadd.f32 %v6284_v57, %v5674_v56  ;;  %v2697_v21 = vpop.f32.mrb[19].mxu1  ;;  %v5680_v57 = vld [vmem:[%s8482_s16] ss:$0 sm:$0xff] }
0x1830   :  { %v2698_v59 = vadd.f32 %v5674_v56, %v2697_v21 }
0x1831   :  { %v2707_v43 = vmul.f32 %v2703_v58, %v2703_v58 }
0x1832   :  { %v2706_v16 = vmul.f32 %v2698_v59, %v2698_v59 }
0x1833   :  { %v2709_v46 = vmul.f32 %v2707_v43, %v2703_v58  ;;  %v5681_v43 = vld [vmem:[%s8483_s0] ss:$0 sm:$0xff] }
0x1834   :  { %v2708_v60 = vmul.f32 %v2706_v16, %v2698_v59 }
0x1835   :  { %v2711_v61 = vmul.f32 0.044715, %v2709_v46 }
0x1836   :  { %v2710_v62 = vmul.f32 0.044715, %v2708_v60 }
0x1837   :  { %v2713_v63 = vadd.f32 %v2711_v61, %v2703_v58 }
0x1838   :  { %v2712_v0 = vadd.f32 %v2710_v62, %v2698_v59  ;;  %v5687_v62 = vld [vmem:[%s7550_s24 + $0x1] ss:$0 sm:$0xff]  ;;  %s8488_s24 = sld [smem:[#allocation20_spill]] }
0x1839   :  { %v2715_v1 = vmul.f32 0.7978846, %v2713_v63 }
0x183a   :  { %v2714_v4 = vmul.f32 0.7978846, %v2712_v0 }
0x183b   :  { %7172 = vtanh.f32 %v2715_v1 }
0x183c   :  { %7174 = vtanh.f32 %v2714_v4 }
0x1845   :  { %v7173_v5 = vpop.eup %7172 }
0x1846   :  { %v7175_v54 = vpop.eup %7174  ;;  %v2719_v32 = vadd.f32 1.0, %v7173_v5 }
0x1847   :  { %v2718_v30 = vadd.f32 1.0, %v7175_v54 }
0x1848   :  { %v2721_v19 = vmul.f32 0.5, %v2719_v32 }
0x1849   :  { %v2720_v12 = vmul.f32 0.5, %v2718_v30 }
0x184a   :  { %v2723_v10 = vmul.f32 %v2721_v19, %v2703_v58 }
0x184b   :  { %v2722_v6 = vmul.f32 %v2720_v12, %v2698_v59 }
0x184d   :  { %6301 = vmatprep.mubr.msk.f32.mxu0 %vm2739_vm7, %v2722_v6 }
0x184e   :  { %6302 = vmatmul.mubr.msk.f32.vlgmr.msra.gmra.mrb[26].mxu0 %vm2739_vm7, %v2723_v10 }
0x1921   :  { %v6303_v15 = vpop.f32.mrb[26].mxu0 }
0x1922   :  { %v2818_v40 = vadd.f32 %v6303_v15, %v5677_v13  ;;  %v2812_v18 = vpop.f32.mrb[27].mxu0 }
0x1923   :  { %v2813_v2 = vadd.f32 %v5677_v13, %v2812_v18 }
0x1924   :  { %v2822_v22 = vadd.f32 %v2818_v40, %v2613_v37 }
0x1925   :  { %v2821_v24 = vadd.f32 %v2813_v2, %v2612_v50 }
0x1926   :  { %v2828_v25 = vsel %vm323_vm2, %v2822_v22, 0.0 }
0x1927   :  { %2829 = vadd.xlane.f32.xlu1 %v2828_v25  ;;  %v2825_v29 = vsel %vm323_vm2, %v2821_v24, 0.0  ;;  %v8117_v25 = vld [vmem:[%s7510_s17 + $0x8] sm:$0xff] }
0x1928   :  { %2826 = vadd.xlane.f32.xlu0 %v2825_v29 }
0x19b4   :  { %v2830_v31 = vpop.xlane.xlu1 %2829 }
0x19b5   :  { %v2832_v33 = vmul.f32 0.03125, %v2830_v31  ;;  %v2827_v34 = vpop.xlane.xlu0 %2826  ;;  %v8121_v31 = vld [vmem:[%s7510_s17] sm:$0xff]  ;;  %s8484_s17 = smov 16  }
0x19b6   :  { %v2831_v35 = vmul.f32 0.03125, %v2827_v34 }
0x19b7   :  { %v2834_v38 = vsub.f32 %v2822_v22, %v2832_v33 }
0x19b8   :  { %v2833_v39 = vsub.f32 %v2821_v24, %v2831_v35 }
0x19b9   :  { %v2836_v41 = vmul.f32 %v2834_v38, %v2834_v38 }
0x19ba   :  { %v2835_v3 = vmul.f32 %v2833_v39, %v2833_v39 }
0x19bb   :  { %v2840_v50 = vsel %vm323_vm2, %v2836_v41, 0.0 }
0x19bc   :  { %2841 = vadd.xlane.f32.xlu1 %v2840_v50  ;;  %v2837_v37 = vsel %vm323_vm2, %v2835_v3, 0.0 }
0x19bd   :  { %2838 = vadd.xlane.f32.xlu0 %v2837_v37 }
0x1a49   :  { %v2842_v49 = vpop.xlane.xlu1 %2841 }
0x1a4a   :  { %v2844_v51 = vmul.f32 0.03125, %v2842_v49  ;;  %v2839_v52 = vpop.xlane.xlu0 %2838 }
0x1a4b   :  { %v2843_v53 = vmul.f32 0.03125, %v2839_v52 }
0x1a4c   :  { %v2846_v55 = vadd.f32 1e-05, %v2844_v51 }
0x1a4d   :  { %v2845_v9 = vadd.f32 1e-05, %v2843_v53 }
0x1a4e   :  { %7176 = vrsqrt.f32 %v2846_v55 }
0x1a4f   :  { %7178 = vrsqrt.f32 %v2845_v9 }
0x1a58   :  { %v7177_v56 = vpop.eup %7176 }
0x1a59   :  { %v7179_v58 = vpop.eup %7178  ;;  %v2850_v21 = vmul.f32 %v7177_v56, %v2834_v38 }
0x1a5a   :  { %v2849_v59 = vmul.f32 %v7179_v58, %v2833_v39 }
0x1a5b   :  { %v2858_v16 = vmul.f32 %v5680_v57, %v2850_v21 }
0x1a5c   :  { %v2857_v46 = vmul.f32 %v5680_v57, %v2849_v59 }
0x1a5d   :  { %v8079_v61 = vadd.f32 %v5681_v43, %v2858_v16 }
0x1a5e   :  { %v8077_v60 = vadd.f32 %v5681_v43, %v2857_v46 }
0x1a60   :  { %6312 = vmatprep.mubr.msk.f32.mxu1 %vm323_vm2, %v8077_v60 }
0x1a61   :  { %6313 = vmatmul.mubr.msk.f32.vlgmr.msra.gmra.mrb[20].mxu1 %vm323_vm2, %v8079_v61 }
0x1b34   :  { %v6314_v63 = vpop.f32.mrb[20].mxu1 }
0x1b35   :  { %v8086_v0 = vadd.f32 %v6314_v63, %v5687_v62  ;;  %v2952_v1 = vpop.f32.mrb[21].mxu1 }
0x1b36   :  { %v8088_v4 = vadd.f32 %v5687_v62, %v2952_v1 }
0x1b38   :  { %6319 = vmatprep.mubr.msk.f32.mxu1 %vm471_vm3, %v8088_v4  ;;  %v8094_v5 = vpack.i.bf16 %v8086_v0, %v8088_v4 }
0x1b3a   :  { %7027 = vrot.lane.b32.xlu1 %v8094_v5, %s7472_s25  ;;  %7022 = vrot.lane.b32.xlu0 %v8094_v5, %s7471_s13 }
0x1b3e   :  { %3163 = vrot.lane.b32.xlu1 %v8088_v4, %s7470_s9  ;;  %3165 = vrot.lane.b32.xlu0 %v8086_v0, %s7470_s9 }
0x1bac   :  { %v7028_v54 = vpop.permute.xlu1 %7027  ;;  %v7023_v32 = vpop.permute.xlu0 %7022 }
0x1bad   :  { %v7030_v30 = vunpack.i.h.bf16 %v7028_v54  ;;  %v7029_v19 = vunpack.i.l.bf16 %v7028_v54  ;;  %v7025_v12 = vunpack.i.h.bf16 %v7023_v32  ;;  %v7024_v6 = vunpack.i.l.bf16 %v7023_v32 }
0x1baf   :  { %v6720_v10 = vpack.c.bf16 %v7025_v12, %v7024_v6  ;;  %v6730_v13 = vpack.c.bf16 %v7030_v30, %v7029_v19 }
0x1bb0   :  { %v3164_v15 = vpop.permute.xlu1 %3163  ;;  %v3166_v40 = vpop.permute.xlu0 %3165 }
0x1bb1   :  { %6722 = vmatprep.subr.msk.bf16.mxu1 %vm7784_vm4, %v6720_v10 }
0x1bb2   :  { %6725 = vmatpush3.bf16.xpose.msk.msra.mxu1 %vm7784_vm4, %v6720_v10 }
0x1bb3   :  { %6732 = vmatprep.subr.msk.bf16.mxu1 %vm7784_vm4, %v6730_v13 }
0x1bb9   :  { %6320 = vmatmul.mubr.msk.f32.vlgmr.msra.gmra.mrb[22].mxu1 %vm471_vm3, %v8086_v0 }
0x1bba   :  { %6735 = vmatpush3.bf16.xpose.msk.msra.mxu1 %vm7784_vm4, %v6730_v13  ;;  %6333 = vmatprep.mubr.msk.f32.mxu1 %vm471_vm3, %v3164_v15 }
0x1bc1   :  { %6334 = vmatmul.mubr.msk.f32.vlgmr.msra.gmra.mrb[24].mxu1 %vm471_vm3, %v3166_v40 }
0x1c8c   :  { %v6321_v18 = vpop.f32.mrb[22].mxu1 }
0x1c8d   :  { %v3051_v2 = vmul.f32 0.35355338, %v6321_v18  ;;  %v3041_v22 = vpop.f32.mrb[23].mxu1 }
0x1c8e   :  { %v3050_v24 = vmul.f32 0.35355338, %v3041_v22 }
0x1c8f   :  { %v3053_v29 = vadd.f32 %v8117_v25, %v3051_v2 }
0x1c90   :  { %v3052_v33 = vadd.f32 %v8121_v31, %v3050_v24 }
0x1c91   :  { %v3057_v34 = vsel %vm559_vm5, %v3053_v29, -inf }
0x1c92   :  { %3058 = vmax.xlane.f32.xlu0 %v3057_v34  ;;  %v3054_v35 = vsel %vm559_vm5, %v3052_v33, -inf }
0x1c93   :  { %3055 = vmax.xlane.f32.xlu1 %v3054_v35 }
0x1c94   :  { %v6335_v38 = vpop.f32.mrb[24].mxu1 }
0x1c95   :  { %v3255_v39 = vmul.f32 0.35355338, %v6335_v38  ;;  %v3245_v41 = vpop.f32.mrb[25].mxu1 }
0x1c96   :  { %v3254_v3 = vmul.f32 0.35355338, %v3245_v41 }
0x1c97   :  { %v3257_v50 = vadd.f32 %v8117_v25, %v3255_v39 }
0x1c98   :  { %v3256_v37 = vadd.f32 %v8121_v31, %v3254_v3 }
0x1c99   :  { %v3261_v48 = vsel %vm559_vm5, %v3257_v50, -inf }
0x1c9a   :  { %3262 = vmax.xlane.f32.xlu1 %v3261_v48  ;;  %v3258_v42 = vsel %vm559_vm5, %v3256_v37, -inf }
0x1c9b   :  { %3259 = vmax.xlane.f32.xlu0 %v3258_v42 }
0x1d1f   :  { %v3059_v44 = vpop.xlane.xlu0 %3058 }
0x1d20   :  { %v3061_v36 = vsub.f32 %v3053_v29, %v3059_v44  ;;  %v3056_v45 = vpop.xlane.xlu1 %3055 }
0x1d21   :  { %v3060_v47 = vsub.f32 %v3052_v33, %v3056_v45 }
0x1d22   :  { %v3064_v49 = vmul.f32 1.442695, %v3061_v36 }
0x1d23   :  { %v3062_v51 = vmul.f32 1.442695, %v3060_v47 }
0x1d24   :  { %7180 = vpow2.f32 %v3064_v49 }
0x1d25   :  { %7182 = vpow2.f32 %v3062_v51 }
0x1d27   :  { %v3263_v52 = vpop.xlane.xlu1 %3262 }
0x1d28   :  { %v3265_v53 = vsub.f32 %v3257_v50, %v3263_v52  ;;  %v3260_v55 = vpop.xlane.xlu0 %3259 }
0x1d29   :  { %v3264_v9 = vsub.f32 %v3256_v37, %v3260_v55 }
0x1d2a   :  { %v3268_v56 = vmul.f32 1.442695, %v3265_v53 }
0x1d2b   :  { %v3266_v57 = vmul.f32 1.442695, %v3264_v9 }
0x1d2c   :  { %7184 = vpow2.f32 %v3268_v56 }
0x1d2d   :  { %7186 = vpow2.f32 %v3266_v57 }
0x1d2e   :  { %v7181_v58 = vpop.eup %7180 }
0x1d2f   :  { %v7183_v21 = vpop.eup %7182  ;;  %v3069_v59 = vsel %vm559_vm5, %v7181_v58, 0.0 }
0x1d30   :  { %3070 = vadd.xlane.f32.xlu1 %v3069_v59  ;;  %v3066_v43 = vsel %vm559_vm5, %v7183_v21, 0.0 }
0x1d31   :  { %3067 = vadd.xlane.f32.xlu0 %v3066_v43 }
0x1d36   :  { %v7185_v16 = vpop.eup %7184 }
0x1d37   :  { %v7187_v46 = vpop.eup %7186  ;;  %v3273_v62 = vsel %vm559_vm5, %v7185_v16, 0.0 }
0x1d38   :  { %3274 = vadd.xlane.f32.xlu1 %v3273_v62  ;;  %v3270_v63 = vsel %vm559_vm5, %v7187_v46, 0.0 }
0x1d39   :  { %3271 = vadd.xlane.f32.xlu0 %v3270_v63 }
0x1d49   :  { %7037 = vrot.lane.b32.xlu1 %v8094_v5, %s7475_s14 }
0x1d4d   :  { %7042 = vrot.lane.b32.xlu1 %v8094_v5, %s7473_s3 }
0x1d4f   :  { %7032 = vrot.lane.b32.xlu0 %v8094_v5, %s7476_s27 }
0x1d51   :  { %3369 = vrot.lane.b32.xlu1 %v8086_v0, %s7474_s8 }
0x1d53   :  { %3367 = vrot.lane.b32.xlu0 %v8088_v4, %s7474_s8 }
0x1dbd   :  { %v3071_v54 = vpop.xlane.xlu1 %3070 }
0x1dbe   :  { %v3068_v1 = vpop.xlane.xlu0 %3067 }
0x1dbf   :  { %7188 = vrcp.f32 %v3068_v1 }
0x1dc0   :  { %7190 = vrcp.f32 %v3071_v54 }
0x1dc5   :  { %v3275_v32 = vpop.xlane.xlu1 %3274 }
0x1dc6   :  { %v3272_v30 = vpop.xlane.xlu0 %3271 }
0x1dc7   :  { %7192 = vrcp.f32 %v3272_v30 }
0x1dc8   :  { %7194 = vrcp.f32 %v3275_v32 }
0x1dc9   :  { %v7189_v19 = vpop.eup %7188  ;;  %v7038_v12 = vpop.permute.xlu1 %7037 }
0x1dca   :  { %v7033_v6 = vpop.permute.xlu0 %7032  ;;  %v3073_v10 = vmul.f32 %v7189_v19, %v7183_v21  ;;  %v7040_v13 = vunpack.i.h.bf16 %v7038_v12  ;;  %v7039_v15 = vunpack.i.l.bf16 %v7038_v12  ;;  %v7191_v24 = vpop.eup %7190 }
0x1dcb   :  { %v7035_v40 = vunpack.i.h.bf16 %v7033_v6  ;;  %v7034_v18 = vunpack.i.l.bf16 %v7033_v6  ;;  %v3075_v38 = vmul.f32 %v7191_v24, %v7181_v58 }
0x1dcc   :  { %6326 = vmatprep.mubr.msk.f32.mxu0 %vm559_vm5, %v3073_v10  ;;  %v6736_v29 = vpack.c.bf16 %v7040_v13, %v7039_v15 }
0x1dcd   :  { %v6726_v2 = vpack.c.bf16 %v7035_v40, %v7034_v18  ;;  %v7043_v22 = vpop.permute.xlu1 %7042 }
0x1dce   :  { %v7045_v33 = vunpack.i.h.bf16 %v7043_v22  ;;  %v7044_v34 = vunpack.i.l.bf16 %v7043_v22  ;;  %v3368_v37 = vpop.permute.xlu0 %3367 }
0x1dcf   :  { %6727 = vmatprep.subr.bf16.mxu0 %v6726_v2 }
0x1dd0   :  { %6729 = vmatpush3.bf16.msra.mxu0 %v6726_v2  ;;  %v6740_v3 = vpack.c.bf16 %v7045_v33, %v7044_v34 }
0x1dd1   :  { %v7193_v35 = vpop.eup %7192  ;;  %6737 = vmatprep.subr.bf16.mxu0 %v6736_v29  ;;  %v3370_v48 = vpop.permute.xlu1 %3369 }
0x1dd2   :  { %v7195_v39 = vpop.eup %7194  ;;  %v3277_v41 = vmul.f32 %v7193_v35, %v7187_v46 }
0x1dd3   :  { %6327 = vmatmul.mubr.msk.f32.vlgmr.msra.gmra.mrb[28].mxu0 %vm559_vm5, %v3075_v38  ;;  %v3279_v50 = vmul.f32 %v7195_v39, %v7185_v16 }
0x1dd4   :  { %6739 = vmatpush3.bf16.msra.mxu0 %v6736_v29  ;;  %6340 = vmatprep.mubr.msk.f32.mxu0 %vm559_vm5, %v3277_v41 }
0x1dd5   :  { %6742 = vmatprep.subr.msk.bf16.mxu0 %vm7784_vm4, %v6740_v3 }
0x1dd7   :  { %6341 = vmatmul.mubr.msk.f32.vlgmr.msra.gmra.mrb[30].mxu0 %vm559_vm5, %v3279_v50 }
0x1dd8   :  { %6347 = vmatprep.mubr.msk.f32.mxu0 %vm471_vm3, %v3368_v37 }
0x1ddd   :  { %6745 = vmatpush3.bf16.xpose.msk.msra.mxu0 %vm7784_vm4, %v6740_v3 }
0x1de4   :  { %6348 = vmatmul.mubr.msk.f32.vlgmr.msra.gmra.mrb[32].mxu0 %vm471_vm3, %v3370_v48 }
0x1ea6   :  { %v8154_v42 = vpop.f32.mrb[28].mxu0 }
0x1ea7   :  { %v8156_v44 = vpop.f32.mrb[29].mxu0 }
0x1eaa   :  { %v8158_v36 = vpop.f32.mrb[30].mxu0 }
0x1eab   :  { %v8160_v45 = vpop.f32.mrb[31].mxu0 }
0x1eb7   :  { %v6349_v47 = vpop.f32.mrb[32].mxu0 }
0x1eb8   :  { %v3459_v49 = vmul.f32 0.35355338, %v6349_v47  ;;  %v3449_v51 = vpop.f32.mrb[33].mxu0 }
0x1eb9   :  { %v3458_v52 = vmul.f32 0.35355338, %v3449_v51 }
0x1eba   :  { %v3461_v53 = vadd.f32 %v8117_v25, %v3459_v49 }
0x1ebb   :  { %v3460_v55 = vadd.f32 %v8121_v31, %v3458_v52 }
0x1ebc   :  { %v3465_v9 = vsel %vm559_vm5, %v3461_v53, -inf }
0x1ebd   :  { %3466 = vmax.xlane.f32.xlu1 %v3465_v9  ;;  %v3462_v56 = vsel %vm559_vm5, %v3460_v55, -inf }
0x1ebe   :  { %3463 = vmax.xlane.f32.xlu0 %v3462_v56 }
0x1ece   :  { %7047 = vrot.lane.b32.xlu1 %v8094_v5, %s7477_s23 }
0x1ed2   :  { %3571 = vrot.lane.b32.xlu1 %v8088_v4, %s7479_s11 }
0x1ed6   :  { %3573 = vrot.lane.b32.xlu1 %v8086_v0, %s7479_s11 }
0x1f4a   :  { %v3467_v57 = vpop.xlane.xlu1 %3466 }
0x1f4b   :  { %v3469_v58 = vsub.f32 %v3461_v53, %v3467_v57  ;;  %v3464_v21 = vpop.xlane.xlu0 %3463 }
0x1f4c   :  { %v3468_v59 = vsub.f32 %v3460_v55, %v3464_v21 }
0x1f4d   :  { %v3472_v43 = vmul.f32 1.442695, %v3469_v58 }
0x1f4e   :  { %v3470_v16 = vmul.f32 1.442695, %v3468_v59  ;;  %v7048_v46 = vpop.permute.xlu1 %7047 }
0x1f4f   :  { %7196 = vpow2.f32 %v3472_v43  ;;  %v7050_v62 = vunpack.i.h.bf16 %v7048_v46  ;;  %v7049_v63 = vunpack.i.l.bf16 %v7048_v46 }
0x1f50   :  { %7198 = vpow2.f32 %v3470_v16 }
0x1f51   :  { %v6746_v1 = vpack.c.bf16 %v7050_v62, %v7049_v63  ;;  %v5714_v62 = vld [vmem:[%s7555_s30 + $0x20] sm:$0xff]  ;;  %v5715_v63 = vld [vmem:[%s7555_s30 + $0x28] sm:$0xff] }
0x1f52   :  { %v3572_v22 = vpop.permute.xlu1 %3571 }
0x1f53   :  { %6747 = vmatprep.subr.bf16.mxu1 %v6746_v1 }
0x1f54   :  { %6749 = vmatpush3.bf16.msra.mxu1 %v6746_v1  ;;  %v5716_v1 = vld [vmem:[%s7555_s30 + $0x30] sm:$0xff] }
0x1f56   :  { %v3574_v24 = vpop.permute.xlu1 %3573 }
0x1f59   :  { %v7197_v54 = vpop.eup %7196 }
0x1f5a   :  { %v3477_v4 = vsel %vm559_vm5, %v7197_v54, 0.0  ;;  %v7199_v32 = vpop.eup %7198 }
0x1f5b   :  { %3478 = vadd.xlane.f32.xlu0 %v3477_v4  ;;  %v3474_v0 = vsel %vm559_vm5, %v7199_v32, 0.0 }
0x1f5f   :  { %3475 = vadd.xlane.f32.xlu0 %v3474_v0 }
0x1f75   :  { %7052 = vrot.lane.b32.xlu0 %v8094_v5, %s7478_s20 }
0x1fe8   :  { %v3479_v30 = vpop.xlane.xlu0 %3478 }
0x1fe9   :  { %7200 = vrcp.f32 %v3479_v30 }
0x1fec   :  { %v3476_v19 = vpop.xlane.xlu0 %3475 }
0x1fed   :  { %7202 = vrcp.f32 %v3476_v19 }
0x1ff0   :  { %v7053_v12 = vpop.permute.xlu0 %7052 }
0x1ff1   :  { %v7055_v6 = vunpack.i.h.bf16 %v7053_v12  ;;  %v7054_v10 = vunpack.i.l.bf16 %v7053_v12 }
0x1ff3   :  { %v6750_v13 = vpack.c.bf16 %v7055_v6, %v7054_v10  ;;  %v7201_v15 = vpop.eup %7200 }
0x1ff4   :  { %v3483_v2 = vmul.f32 %v7201_v15, %v7197_v54  ;;  %v6760_v54 = vpack.c.bf16 %v5715_v63, %v5714_v62 }
0x1ff5   :  { %6752 = vmatprep.subr.msk.bf16.mxu1 %vm7784_vm4, %v6750_v13 }
0x1ff7   :  { %v7203_v40 = vpop.eup %7202 }
0x1ff8   :  { %v3481_v18 = vmul.f32 %v7203_v40, %v7199_v32 }
0x1ffa   :  { %6354 = vmatprep.mubr.msk.f32.mxu1 %vm559_vm5, %v3481_v18 }
0x1ffb   :  { %6355 = vmatmul.mubr.msk.f32.vlgmr.msra.gmra.mrb[26].mxu1 %vm559_vm5, %v3483_v2 }
0x1ffc   :  { %6755 = vmatpush3.bf16.xpose.msk.msra.mxu1 %vm7784_vm4, %v6750_v13  ;;  %6361 = vmatprep.mubr.msk.f32.mxu1 %vm471_vm3, %v3572_v22 }
0x2003   :  { %6362 = vmatmul.mubr.msk.f32.vlgmr.msra.gmra.mrb[28].mxu1 %vm471_vm3, %v3574_v24 }
0x20ce   :  { %v6356_v29 = vpop.f32.mrb[26].mxu1 }
0x20cf   :  { %v3562_v33 = vpop.f32.mrb[27].mxu1 }
0x20d6   :  { %v6363_v34 = vpop.f32.mrb[28].mxu1 }
0x20d7   :  { %v3663_v35 = vmul.f32 0.35355338, %v6363_v34  ;;  %v3653_v38 = vpop.f32.mrb[29].mxu1 }
0x20d8   :  { %v3662_v39 = vmul.f32 0.35355338, %v3653_v38 }
0x20d9   :  { %v3665_v41 = vadd.f32 %v8117_v25, %v3663_v35 }
0x20da   :  { %v3664_v3 = vadd.f32 %v8121_v31, %v3662_v39 }
0x20db   :  { %v3669_v50 = vsel %vm559_vm5, %v3665_v41, -inf }
0x20dc   :  { %3670 = vmax.xlane.f32.xlu1 %v3669_v50  ;;  %v3666_v37 = vsel %vm559_vm5, %v3664_v3, -inf }
0x20dd   :  { %3667 = vmax.xlane.f32.xlu0 %v3666_v37 }
0x20ed   :  { %7057 = vrot.lane.b32.xlu1 %v8094_v5, %s7481_s21 }
0x20f1   :  { %3779 = vrot.lane.b32.xlu1 %v8158_v36, %s7480_s15 }
0x20f5   :  { %3785 = vrot.lane.b32.xlu1 %v3562_v33, %s8484_s17 }
0x2169   :  { %v3671_v48 = vpop.xlane.xlu1 %3670 }
0x216a   :  { %v3673_v47 = vsub.f32 %v3665_v41, %v3671_v48  ;;  %v3668_v49 = vpop.xlane.xlu0 %3667 }
0x216b   :  { %v3672_v25 = vsub.f32 %v3664_v3, %v3668_v49 }
0x216c   :  { %v3676_v51 = vmul.f32 1.442695, %v3673_v47 }
0x216d   :  { %v3674_v31 = vmul.f32 1.442695, %v3672_v25  ;;  %v7058_v52 = vpop.permute.xlu1 %7057 }
0x216e   :  { %v7060_v53 = vunpack.i.h.bf16 %v7058_v52  ;;  %v7059_v55 = vunpack.i.l.bf16 %v7058_v52  ;;  %v5733_v52 = vld [vmem:[%s8472_s18 + $0x20] sm:$0xff] }
0x216f   :  { %7204 = vpow2.f32 %v3674_v31 }
0x2170   :  { %v6756_v9 = vpack.c.bf16 %v7060_v53, %v7059_v55  ;;  %7206 = vpow2.f32 %v3676_v51  ;;  %v5734_v53 = vld [vmem:[%s8472_s18 + $0x28] sm:$0xff] }
0x2171   :  { %v3780_v19 = vpop.permute.xlu1 %3779  ;;  %v6776_v55 = vpack.c.bf16 %v5734_v53, %v5733_v52 }
0x2172   :  { %6757 = vmatprep.subr.bf16.mxu0 %v6756_v9  ;;  %v3800_v15 = vsel %vm471_vm3, %v8154_v42, %v3780_v19 }
0x2173   :  { %6759 = vmatpush3.bf16.msra.mxu0 %v6756_v9  ;;  %v5735_v9 = vld [vmem:[%s8472_s18 + $0x30] sm:$0xff] }
0x2174   :  { %6761 = vmatprep.subr.bf16.mxu0 %v6760_v54 }
0x2175   :  { %v3786_v6 = vpop.permute.xlu1 %3785 }
0x2179   :  { %v7205_v5 = vpop.eup %7204 }
0x217a   :  { %v3678_v56 = vsel %vm559_vm5, %v7205_v5, 0.0  ;;  %v7207_v36 = vpop.eup %7206 }
0x217b   :  { %3679 = vadd.xlane.f32.xlu0 %v3678_v56  ;;  %v3681_v57 = vsel %vm559_vm5, %v7207_v36, 0.0 }
0x217f   :  { %3682 = vadd.xlane.f32.xlu0 %v3681_v57  ;;  %v5726_v57 = vld [vmem:[%s8474_s26 + $0x20] sm:$0xff] }
0x2195   :  { %3777 = vrot.lane.b32.xlu0 %v8160_v45, %s7480_s15  ;;  %v5717_v45 = vld [vmem:[%s7555_s30 + $0x38] sm:$0xff]  ;;  %s7486_s30 = smov [#allocation14]  }
0x2196   :  { %v6764_v4 = vpack.c.bf16 %v5717_v45, %v5716_v1 }
0x2199   :  { %3787 = vrot.lane.b32.xlu0 %v6356_v29, %s8484_s17  ;;  %v7262_v29 = vld [vmem:[%s8473_s22] sm:$0xff] }
0x2208   :  { %v3680_v58 = vpop.xlane.xlu0 %3679 }
0x2209   :  { %7208 = vrcp.f32 %v3680_v58  ;;  %v5727_v58 = vld [vmem:[%s8474_s26 + $0x28] sm:$0xff] }
0x220c   :  { %v3683_v21 = vpop.xlane.xlu0 %3682 }
0x220d   :  { %7210 = vrcp.f32 %v3683_v21  ;;  %v6768_v21 = vpack.c.bf16 %v5727_v58, %v5726_v57 }
0x220f   :  { %6769 = vmatprep.subr.bf16.mxu1 %v6768_v21 }
0x2210   :  { %v3778_v30 = vpop.permute.xlu0 %3777  ;;  %6771 = vmatpush3.bf16.msra.mxu1 %v6768_v21 }
0x2211   :  { %v3799_v10 = vsel %vm471_vm3, %v8156_v44, %v3778_v30  ;;  %v5719_v44 = vld [vmem:[%s7560_s6 + $0x1] ss:$0 sm:$0xff]  ;;  %s5559_s6 = sshll.u32 %s7486_s30, 4  ;;  %s5560_s6 = int_to_ptr.vmem [resolvable:$true] %s5559_s6 }
0x2212   :  { %v3801_v18 = vsel %vm559_vm5, %v3799_v10, %v3786_v6  ;;  %p7403_p7 = scmp.lt.s32.totalorder %s5560_s6, %s5560_s6 }
0x2213   :  { %v7209_v59 = vpop.eup %7208 }
0x2214   :  { %v3685_v43 = vmul.f32 %v7209_v59, %v7205_v5  ;;  %v3788_v12 = vpop.permute.xlu0 %3787  ;;  %v5736_v5 = vld [vmem:[%s8472_s18 + $0x38] sm:$0xff]  ;;  %v5728_v59 = vld [vmem:[%s8474_s26 + $0x30] sm:$0xff] }
0x2215   :  { %v3802_v2 = vsel %vm559_vm5, %v3800_v15, %v3788_v12  ;;  %v6780_v56 = vpack.c.bf16 %v5736_v5, %v5735_v9  ;;  %v5725_v12 = vld [vmem:[%s8476_s29 + $0x1] ss:$0 sm:$0xff] }
0x2216   :  { %6368 = vmatprep.mubr.msk.f32.mxu0 %vm559_vm5, %v3685_v43  ;;  %v5729_v43 = vld [vmem:[%s8474_s26 + $0x38] sm:$0xff] }
0x2217   :  { %v7211_v16 = vpop.eup %7210 }
0x2218   :  { %v3687_v46 = vmul.f32 %v7211_v16, %v7207_v36  ;;  %v7263_v36 = vld [vmem:[%s8473_s22 + $0x8] sm:$0xff]  ;;  %v6772_v16 = vpack.c.bf16 %v5729_v43, %v5728_v59 }
0x221a   :  { %6369 = vmatmul.mubr.msk.f32.vlgmr.msra.gmra.mrb[34].mxu0 %vm559_vm5, %v3687_v46  ;;  %6773 = vmatprep.subr.bf16.mxu1 %v6772_v16 }
0x221b   :  { %6763 = vmatpush3.bf16.msra.mxu0 %v6760_v54  ;;  %6775 = vmatpush3.bf16.msra.mxu1 %v6772_v16 }
0x221c   :  { %6765 = vmatprep.subr.bf16.mxu0 %v6764_v4 }
0x221f   :  { %6767 = vmatpush3.bf16.msra.mxu0 %v6764_v4 }
0x2220   :  { %6777 = vmatprep.subr.bf16.mxu0 %v6776_v55 }
0x22ed   :  { %v6370_v32 = vpop.f32.mrb[34].mxu0 }
0x22ee   :  { %3795 = vrot.lane.b32.xlu0 %v6370_v32, %s8485_s19  ;;  %v3766_v0 = vpop.f32.mrb[35].mxu0  ;;  %v5724_v32 = vld [vmem:[%s8475_s28 + $0x1] ss:$0 sm:$0xff] }
0x22ef   :  { %3793 = vrot.lane.b32.xlu1 %v3766_v0, %s8485_s19 }
0x2360   :  { %v3796_v13 = vpop.permute.xlu0 %3795 }
0x2361   :  { %v3794_v40 = vpop.permute.xlu1 %3793  ;;  %v3804_v24 = vsel %vm1309_vm6, %v3802_v2, %v3796_v13 }
0x2362   :  { %v3803_v22 = vsel %vm1309_vm6, %v3801_v18, %v3794_v40  ;;  %v5737_v40 = vld [vmem:[#allocation8 + $0x1] ss:$0 sm:$0xff] }
0x2363   :  { %6379 = vmatprep.mubr.msk.f32.mxu0 %vm323_vm2, %v3803_v22 }
0x2364   :  { %6380 = vmatmul.mubr.msk.f32.vlgmr.msra.gmra.mrb[36].mxu0 %vm323_vm2, %v3804_v24 }
0x2365   :  { %6401 = vmatprep.mubr.msk.f32.mxu0 %vm323_vm2, %v7262_v29  ;;  %6779 = vmatpush3.bf16.msra.mxu0 %v6776_v55 }
0x2366   :  { %6781 = vmatprep.subr.bf16.mxu0 %v6780_v56 }
0x2369   :  { %6783 = vmatpush3.bf16.msra.mxu0 %v6780_v56 }
0x236c   :  { %6402 = vmatmul.mubr.msk.f32.vlgmr.msra.gmra.mrb[38].mxu0 %vm323_vm2, %v7263_v36 }
0x2437   :  { %v6381_v33 = vpop.f32.mrb[36].mxu0 }
0x2438   :  { %v3896_v34 = vadd.f32 %v6381_v33, %v5719_v44  ;;  %v3890_v42 = vpop.f32.mrb[37].mxu0 }
0x2439   :  { %v3891_v35 = vadd.f32 %v5719_v44, %v3890_v42 }
0x243a   :  { %v3900_v38 = vadd.f32 %v3896_v34, %v8079_v61 }
0x243b   :  { %v3899_v39 = vadd.f32 %v3891_v35, %v8077_v60 }
0x243c   :  { %v3908_v41 = vsel %vm323_vm2, %v3900_v38, 0.0 }
0x243d   :  { %3909 = vadd.xlane.f32.xlu0 %v3908_v41  ;;  %v3905_v3 = vsel %vm323_vm2, %v3899_v39, 0.0 }
0x243e   :  { %3906 = vadd.xlane.f32.xlu1 %v3905_v3 }
0x243f   :  { %v6403_v18 = vpop.f32.mrb[38].mxu0 }
0x2440   :  { %v4126_v2 = vadd.f32 %v6403_v18, %v5737_v40  ;;  %v4120_v22 = vpop.f32.mrb[39].mxu0 }
0x2441   :  { %v4121_v24 = vadd.f32 %v5737_v40, %v4120_v22 }
0x2443   :  { %v6784_v29 = vpack.c.bf16 %v4126_v2, %v4121_v24  ;;  %v8245_v44 = vpack.i.bf16 %v4126_v2, %v4121_v24 }
0x2445   :  { %6786 = vmatprep.subr.msk.bf16.mxu1 %vm7784_vm4, %v6784_v29 }
0x24ca   :  { %v3910_v50 = vpop.xlane.xlu0 %3909 }
0x24cb   :  { %v3912_v37 = vmul.f32 0.03125, %v3910_v50  ;;  %v3907_v48 = vpop.xlane.xlu1 %3906 }
0x24cc   :  { %v3911_v47 = vmul.f32 0.03125, %v3907_v48 }
0x24cd   :  { %v3914_v49 = vsub.f32 %v3900_v38, %v3912_v37  ;;  %v5730_v38 = vld [vmem:[#allocation6 + $0x1] ss:$0 sm:$0xff] }
0x24ce   :  { %v3913_v25 = vsub.f32 %v3899_v39, %v3911_v47 }
0x24cf   :  { %v3916_v51 = vmul.f32 %v3914_v49, %v3914_v49 }
0x24d0   :  { %v3915_v61 = vmul.f32 %v3913_v25, %v3913_v25 }
0x24d1   :  { %v3920_v60 = vsel %vm323_vm2, %v3916_v51, 0.0 }
0x24d2   :  { %3921 = vadd.xlane.f32.xlu1 %v3920_v60  ;;  %v3917_v31 = vsel %vm323_vm2, %v3915_v61, 0.0  ;;  %v8272_v61 = vld [vmem:[%s8477_s1 + $0x8] sm:$0xff] }
0x24d3   :  { %3918 = vadd.xlane.f32.xlu0 %v3917_v31  ;;  %v8276_v31 = vld [vmem:[%s8477_s1] sm:$0xff] }
0x24e9   :  { %7062 = vrot.lane.b32.xlu0 %v8245_v44, %s7470_s9 }
0x255f   :  { %v3922_v46 = vpop.xlane.xlu1 %3921 }
0x2560   :  { %v3924_v62 = vmul.f32 0.03125, %v3922_v46  ;;  %v3919_v63 = vpop.xlane.xlu0 %3918 }
0x2561   :  { %v3923_v1 = vmul.f32 0.03125, %v3919_v63 }
0x2562   :  { %v3926_v54 = vadd.f32 1e-05, %v3924_v62 }
0x2563   :  { %v3925_v45 = vadd.f32 1e-05, %v3923_v1 }
0x2564   :  { %7212 = vrsqrt.f32 %v3926_v54  ;;  %v7063_v33 = vpop.permute.xlu0 %7062 }
0x2565   :  { %7214 = vrsqrt.f32 %v3925_v45  ;;  %v7065_v34 = vunpack.i.h.bf16 %v7063_v33  ;;  %v7064_v42 = vunpack.i.l.bf16 %v7063_v33 }
0x2567   :  { %v6794_v35 = vpack.c.bf16 %v7065_v34, %v7064_v42 }
0x256e   :  { %v7213_v4 = vpop.eup %7212 }
0x256f   :  { %v7215_v0 = vpop.eup %7214  ;;  %v3930_v30 = vmul.f32 %v7213_v4, %v3914_v49 }
0x2570   :  { %v3929_v19 = vmul.f32 %v7215_v0, %v3913_v25 }
0x2571   :  { %v3938_v6 = vmul.f32 %v5724_v32, %v3930_v30 }
0x2572   :  { %v3937_v10 = vmul.f32 %v5724_v32, %v3929_v19 }
0x2573   :  { %v8239_v15 = vadd.f32 %v5725_v12, %v3938_v6 }
0x2574   :  { %v8237_v13 = vadd.f32 %v5725_v12, %v3937_v10 }
0x2576   :  { %6390 = vmatprep.mubr.msk.f32.mxu1 %vm323_vm2, %v8237_v13 }
0x2577   :  { %6391 = vmatmul.mubr.msk.f32.vlgmr.msra.gmra.mrb[30].mxu1 %vm323_vm2, %v8239_v15 }
0x2578   :  { %6789 = vmatpush3.bf16.xpose.msk.msra.mxu1 %vm7784_vm4, %v6784_v29 }
0x2579   :  { %6796 = vmatprep.subr.msk.bf16.mxu1 %vm7784_vm4, %v6794_v35 }
0x264a   :  { %v6392_v39 = vpop.f32.mrb[30].mxu1 }
0x264b   :  { %v4032_v41 = vpop.f32.mrb[31].mxu1  ;;  %v8257_v50 = vadd.f32 %v6392_v39, %v5730_v38 }
0x264c   :  { %v8255_v3 = vadd.f32 %v5730_v38, %v4032_v41 }
0x264e   :  { %4329 = vrot.lane.b32.xlu1 %v8255_v3, %s7470_s9  ;;  %6408 = vmatprep.mubr.msk.f32.mxu1 %vm471_vm3, %v8255_v3 }
0x264f   :  { %6409 = vmatmul.mubr.msk.f32.vlgmr.msra.gmra.mrb[32].mxu1 %vm471_vm3, %v8257_v50 }
0x2650   :  { %6799 = vmatpush3.bf16.xpose.msk.msra.mxu1 %vm7784_vm4, %v6794_v35 }
0x2652   :  { %4331 = vrot.lane.b32.xlu1 %v8257_v50, %s7470_s9 }
0x26c0   :  { %v4330_v37 = vpop.permute.xlu1 %4329 }
0x26c1   :  { %6422 = vmatprep.mubr.msk.f32.mxu1 %vm471_vm3, %v4330_v37 }
0x26c4   :  { %v4332_v48 = vpop.permute.xlu1 %4331 }
0x26c5   :  { %6423 = vmatmul.mubr.msk.f32.vlgmr.msra.gmra.mrb[34].mxu1 %vm471_vm3, %v4332_v48 }
0x2722   :  { %v6410_v47 = vpop.f32.mrb[32].mxu1 }
0x2723   :  { %v4217_v49 = vmul.f32 0.35355338, %v6410_v47  ;;  %v4207_v25 = vpop.f32.mrb[33].mxu1 }
0x2724   :  { %v4216_v51 = vmul.f32 0.35355338, %v4207_v25 }
0x2725   :  { %v4219_v60 = vadd.f32 %v8272_v61, %v4217_v49 }
0x2726   :  { %v4218_v52 = vadd.f32 %v8276_v31, %v4216_v51 }
0x2727   :  { %v4223_v53 = vsel %vm559_vm5, %v4219_v60, -inf }
0x2728   :  { %4224 = vmax.xlane.f32.xlu1 %v4223_v53  ;;  %v4220_v55 = vsel %vm559_vm5, %v4218_v52, -inf }
0x2729   :  { %4221 = vmax.xlane.f32.xlu0 %v4220_v55 }
0x2739   :  { %7067 = vrot.lane.b32.xlu1 %v8245_v44, %s7471_s13 }
0x2798   :  { %v6424_v9 = vpop.f32.mrb[34].mxu1 }
0x2799   :  { %v4411_v5 = vpop.f32.mrb[35].mxu1  ;;  %v4421_v56 = vmul.f32 0.35355338, %v6424_v9 }
0x279a   :  { %v4420_v36 = vmul.f32 0.35355338, %v4411_v5 }
0x279b   :  { %v4423_v58 = vadd.f32 %v8272_v61, %v4421_v56 }
0x279c   :  { %v4422_v57 = vadd.f32 %v8276_v31, %v4420_v36 }
0x279d   :  { %v4427_v59 = vsel %vm559_vm5, %v4423_v58, -inf }
0x279e   :  { %v4424_v21 = vsel %vm559_vm5, %v4422_v57, -inf }
0x279f   :  { %4425 = vmax.xlane.f32.xlu0 %v4424_v21 }
0x27a3   :  { %4428 = vmax.xlane.f32.xlu0 %v4427_v59 }
0x27b5   :  { %v4225_v43 = vpop.xlane.xlu1 %4224 }
0x27b6   :  { %v4227_v16 = vsub.f32 %v4219_v60, %v4225_v43  ;;  %v4222_v46 = vpop.xlane.xlu0 %4221 }
0x27b7   :  { %v4226_v62 = vsub.f32 %v4218_v52, %v4222_v46 }
0x27b8   :  { %v4230_v63 = vmul.f32 1.442695, %v4227_v16 }
0x27b9   :  { %v4228_v1 = vmul.f32 1.442695, %v4226_v62  ;;  %v7068_v54 = vpop.permute.xlu1 %7067 }
0x27ba   :  { %7216 = vpow2.f32 %v4230_v63  ;;  %v7070_v45 = vunpack.i.h.bf16 %v7068_v54  ;;  %v7069_v4 = vunpack.i.l.bf16 %v7068_v54 }
0x27bb   :  { %7218 = vpow2.f32 %v4228_v1 }
0x27bc   :  { %v6790_v32 = vpack.c.bf16 %v7070_v45, %v7069_v4 }
0x27be   :  { %6791 = vmatprep.subr.bf16.mxu0 %v6790_v32 }
0x27bf   :  { %6793 = vmatpush3.bf16.msra.mxu0 %v6790_v32 }
0x27c4   :  { %v7217_v0 = vpop.eup %7216 }
0x27c5   :  { %v7219_v30 = vpop.eup %7218  ;;  %v4235_v19 = vsel %vm559_vm5, %v7217_v0, 0.0 }
0x27c6   :  { %4236 = vadd.xlane.f32.xlu0 %v4235_v19  ;;  %v4232_v12 = vsel %vm559_vm5, %v7219_v30, 0.0 }
0x27c7   :  { %4233 = vadd.xlane.f32.xlu1 %v4232_v12 }
0x27d8   :  { %7077 = vrot.lane.b32.xlu1 %v8245_v44, %s7474_s8 }
0x282c   :  { %v4426_v6 = vpop.xlane.xlu0 %4425 }
0x282d   :  { %v4430_v10 = vsub.f32 %v4422_v57, %v4426_v6 }
0x282f   :  { %v4432_v40 = vmul.f32 1.442695, %v4430_v10 }
0x2830   :  { %v4429_v18 = vpop.xlane.xlu0 %4428 }
0x2831   :  { %7220 = vpow2.f32 %v4432_v40  ;;  %v4431_v2 = vsub.f32 %v4423_v58, %v4429_v18 }
0x2833   :  { %v4434_v22 = vmul.f32 1.442695, %v4431_v2 }
0x2835   :  { %7222 = vpow2.f32 %v4434_v22 }
0x283b   :  { %v7221_v24 = vpop.eup %7220 }
0x283c   :  { %v4436_v29 = vsel %vm559_vm5, %v7221_v24, 0.0 }
0x283d   :  { %4437 = vadd.xlane.f32.xlu1 %v4436_v29 }
0x283f   :  { %v7223_v33 = vpop.eup %7222 }
0x2840   :  { %v4439_v34 = vsel %vm559_vm5, %v7223_v33, 0.0 }
0x2841   :  { %4440 = vadd.xlane.f32.xlu0 %v4439_v34 }
0x284e   :  { %4533 = vrot.lane.b32.xlu1 %v8255_v3, %s7474_s8 }
0x2853   :  { %v4237_v42 = vpop.xlane.xlu0 %4236 }
0x2854   :  { %7224 = vrcp.f32 %v4237_v42  ;;  %v4234_v35 = vpop.xlane.xlu1 %4233 }
0x2855   :  { %7226 = vrcp.f32 %v4234_v35 }
0x2857   :  { %7072 = vrot.lane.b32.xlu0 %v8245_v44, %s7472_s25 }
0x2858   :  { %v7078_v48 = vpop.permute.xlu1 %7077 }
0x2859   :  { %v7080_v51 = vunpack.i.h.bf16 %v7078_v48  ;;  %v7079_v60 = vunpack.i.l.bf16 %v7078_v48 }
0x285b   :  { %4535 = vrot.lane.b32.xlu0 %v8257_v50, %s7474_s8  ;;  %v6804_v56 = vpack.c.bf16 %v7080_v51, %v7079_v60 }
0x285e   :  { %v7225_v38 = vpop.eup %7224 }
0x285f   :  { %v7227_v39 = vpop.eup %7226  ;;  %v4241_v37 = vmul.f32 %v7225_v38, %v7217_v0 }
0x2860   :  { %v4239_v41 = vmul.f32 %v7227_v39, %v7219_v30 }
0x2862   :  { %6415 = vmatprep.mubr.msk.f32.mxu0 %vm559_vm5, %v4239_v41 }
0x2863   :  { %6416 = vmatmul.mubr.msk.f32.vlgmr.msra.gmra.mrb[40].mxu0 %vm559_vm5, %v4241_v37 }
0x28ca   :  { %v4438_v47 = vpop.xlane.xlu1 %4437 }
0x28cb   :  { %7228 = vrcp.f32 %v4438_v47 }
0x28ce   :  { %v4441_v49 = vpop.xlane.xlu0 %4440  ;;  %v4534_v58 = vpop.permute.xlu1 %4533 }
0x28cf   :  { %7230 = vrcp.f32 %v4441_v49 }
0x28d2   :  { %v7073_v25 = vpop.permute.xlu0 %7072 }
0x28d3   :  { %v7075_v52 = vunpack.i.h.bf16 %v7073_v25  ;;  %v7074_v53 = vunpack.i.l.bf16 %v7073_v25 }
0x28d5   :  { %v7229_v55 = vpop.eup %7228  ;;  %v6800_v9 = vpack.c.bf16 %v7075_v52, %v7074_v53 }
0x28d6   :  { %v4443_v5 = vmul.f32 %v7229_v55, %v7221_v24  ;;  %v4536_v21 = vpop.permute.xlu0 %4535 }
0x28d7   :  { %6801 = vmatprep.subr.bf16.mxu0 %v6800_v9 }
0x28d8   :  { %6803 = vmatpush3.bf16.msra.mxu0 %v6800_v9  ;;  %6429 = vmatprep.mubr.msk.f32.mxu0 %vm559_vm5, %v4443_v5 }
0x28d9   :  { %v7231_v36 = vpop.eup %7230  ;;  %6806 = vmatprep.subr.msk.bf16.mxu0 %vm7784_vm4, %v6804_v56 }
0x28da   :  { %v4445_v57 = vmul.f32 %v7231_v36, %v7223_v33 }
0x28dc   :  { %6430 = vmatmul.mubr.msk.f32.vlgmr.msra.gmra.mrb[42].mxu0 %vm559_vm5, %v4445_v57 }
0x28dd   :  { %6436 = vmatprep.mubr.msk.f32.mxu0 %vm471_vm3, %v4534_v58 }
0x28e1   :  { %6809 = vmatpush3.bf16.xpose.msk.msra.mxu0 %vm7784_vm4, %v6804_v56 }
0x28e8   :  { %6437 = vmatmul.mubr.msk.f32.vlgmr.msra.gmra.mrb[44].mxu0 %vm471_vm3, %v4536_v21 }
0x2936   :  { %v8309_v59 = vpop.f32.mrb[40].mxu0 }
0x2937   :  { %v8311_v43 = vpop.f32.mrb[41].mxu0 }
0x29af   :  { %v8313_v16 = vpop.f32.mrb[42].mxu0 }
0x29b0   :  { %v8315_v46 = vpop.f32.mrb[43].mxu0 }
0x29bb   :  { %v6438_v62 = vpop.f32.mrb[44].mxu0 }
0x29bc   :  { %v4625_v63 = vmul.f32 0.35355338, %v6438_v62  ;;  %v4615_v1 = vpop.f32.mrb[45].mxu0 }
0x29bd   :  { %v4624_v54 = vmul.f32 0.35355338, %v4615_v1 }
0x29be   :  { %v4627_v45 = vadd.f32 %v8272_v61, %v4625_v63 }
0x29bf   :  { %v4626_v4 = vadd.f32 %v8276_v31, %v4624_v54 }
0x29c0   :  { %v4631_v32 = vsel %vm559_vm5, %v4627_v45, -inf }
0x29c1   :  { %4632 = vmax.xlane.f32.xlu0 %v4631_v32  ;;  %v4628_v0 = vsel %vm559_vm5, %v4626_v4, -inf }
0x29c2   :  { %4629 = vmax.xlane.f32.xlu1 %v4628_v0 }
0x2a4e   :  { %v4633_v30 = vpop.xlane.xlu0 %4632 }
0x2a4f   :  { %v4635_v19 = vsub.f32 %v4627_v45, %v4633_v30  ;;  %v4630_v12 = vpop.xlane.xlu1 %4629 }
0x2a50   :  { %v4634_v6 = vsub.f32 %v4626_v4, %v4630_v12 }
0x2a51   :  { %v4638_v10 = vmul.f32 1.442695, %v4635_v19 }
0x2a52   :  { %v4636_v40 = vmul.f32 1.442695, %v4634_v6 }
0x2a53   :  { %7232 = vpow2.f32 %v4638_v10 }
0x2a54   :  { %7234 = vpow2.f32 %v4636_v40  ;;  %v5764_v40 = vld [vmem:[%s8478_s4 + $0x20] sm:$0xff] }
0x2a5d   :  { %v7233_v18 = vpop.eup %7232 }
0x2a5e   :  { %v7235_v2 = vpop.eup %7234  ;;  %v4643_v22 = vsel %vm559_vm5, %v7233_v18, 0.0 }
0x2a5f   :  { %4644 = vadd.xlane.f32.xlu1 %v4643_v22  ;;  %v4640_v24 = vsel %vm559_vm5, %v7235_v2, 0.0 }
0x2a60   :  { %4641 = vadd.xlane.f32.xlu0 %v4640_v24  ;;  %v5767_v24 = vld [vmem:[%s8478_s4 + $0x38] sm:$0xff] }
0x2a70   :  { %7087 = vrot.lane.b32.xlu1 %v8245_v44, %s7479_s11 }
0x2a74   :  { %4737 = vrot.lane.b32.xlu1 %v8255_v3, %s7479_s11 }
0x2a76   :  { %7082 = vrot.lane.b32.xlu0 %v8245_v44, %s7473_s3 }
0x2a7a   :  { %4739 = vrot.lane.b32.xlu0 %v8257_v50, %s7479_s11 }
0x2aec   :  { %v4645_v29 = vpop.xlane.xlu1 %4644 }
0x2aed   :  { %7236 = vrcp.f32 %v4645_v29  ;;  %v4642_v33 = vpop.xlane.xlu0 %4641 }
0x2aee   :  { %7238 = vrcp.f32 %v4642_v33 }
0x2af0   :  { %v7088_v34 = vpop.permute.xlu1 %7087 }
0x2af1   :  { %v7083_v42 = vpop.permute.xlu0 %7082  ;;  %v7090_v35 = vunpack.i.h.bf16 %v7088_v34  ;;  %v7089_v38 = vunpack.i.l.bf16 %v7088_v34 }
0x2af2   :  { %v7085_v39 = vunpack.i.h.bf16 %v7083_v42  ;;  %v7084_v41 = vunpack.i.l.bf16 %v7083_v42 }
0x2af3   :  { %v6814_v48 = vpack.c.bf16 %v7090_v35, %v7089_v38 }
0x2af4   :  { %v6810_v37 = vpack.c.bf16 %v7085_v39, %v7084_v41  ;;  %v4738_v25 = vpop.permute.xlu1 %4737 }
0x2af5   :  { %v4740_v51 = vpop.permute.xlu0 %4739 }
0x2af6   :  { %6811 = vmatprep.subr.bf16.mxu1 %v6810_v37 }
0x2af7   :  { %v7237_v3 = vpop.eup %7236  ;;  %6813 = vmatpush3.bf16.msra.mxu1 %v6810_v37 }
0x2af8   :  { %v7239_v47 = vpop.eup %7238  ;;  %6816 = vmatprep.subr.msk.bf16.mxu1 %vm7784_vm4, %v6814_v48  ;;  %v4649_v49 = vmul.f32 %v7237_v3, %v7233_v18  ;;  %v5765_v18 = vld [vmem:[%s8478_s4 + $0x28] sm:$0xff] }
0x2af9   :  { %v4647_v50 = vmul.f32 %v7239_v47, %v7235_v2  ;;  %v5766_v2 = vld [vmem:[%s8478_s4 + $0x30] sm:$0xff]  ;;  %v6824_v22 = vpack.c.bf16 %v5765_v18, %v5764_v40 }
0x2afa   :  { %v6828_v29 = vpack.c.bf16 %v5767_v24, %v5766_v2 }
0x2afb   :  { %6443 = vmatprep.mubr.msk.f32.mxu1 %vm559_vm5, %v4647_v50 }
0x2afc   :  { %6444 = vmatmul.mubr.msk.f32.vlgmr.msra.gmra.mrb[36].mxu1 %vm559_vm5, %v4649_v49 }
0x2afd   :  { %6450 = vmatprep.mubr.msk.f32.mxu1 %vm471_vm3, %v4738_v25 }
0x2b00   :  { %6819 = vmatpush3.bf16.xpose.msk.msra.mxu1 %vm7784_vm4, %v6814_v48 }
0x2b07   :  { %6451 = vmatmul.mubr.msk.f32.vlgmr.msra.gmra.mrb[38].mxu1 %vm471_vm3, %v4740_v51  ;;  %v5768_v51 = vld [vmem:[#allocation9 + $0x1] ss:$0 sm:$0xff] }
0x2bcf   :  { %v6445_v60 = vpop.f32.mrb[36].mxu1 }
0x2bd0   :  { %v4728_v52 = vpop.f32.mrb[37].mxu1 }
0x2bda   :  { %v6452_v53 = vpop.f32.mrb[38].mxu1 }
0x2bdb   :  { %v4829_v55 = vmul.f32 0.35355338, %v6452_v53  ;;  %v4819_v9 = vpop.f32.mrb[39].mxu1 }
0x2bdc   :  { %v4828_v5 = vmul.f32 0.35355338, %v4819_v9 }
0x2bdd   :  { %v4831_v56 = vadd.f32 %v8272_v61, %v4829_v55 }
0x2bde   :  { %v4830_v36 = vadd.f32 %v8276_v31, %v4828_v5 }
0x2bdf   :  { %v4835_v57 = vsel %vm559_vm5, %v4831_v56, -inf }
0x2be0   :  { %4836 = vmax.xlane.f32.xlu0 %v4835_v57  ;;  %v4832_v58 = vsel %vm559_vm5, %v4830_v36, -inf }
0x2be1   :  { %4833 = vmax.xlane.f32.xlu1 %v4832_v58 }
0x2c6d   :  { %v4837_v28 = vpop.xlane.xlu0 %4836 }
0x2c6e   :  { %v4839_v21 = vsub.f32 %v4831_v56, %v4837_v28  ;;  %v4834_v62 = vpop.xlane.xlu1 %4833 }
0x2c6f   :  { %v4838_v63 = vsub.f32 %v4830_v36, %v4834_v62 }
0x2c70   :  { %v4842_v1 = vmul.f32 1.442695, %v4839_v21 }
0x2c71   :  { %v4840_v54 = vmul.f32 1.442695, %v4838_v63 }
0x2c72   :  { %7240 = vpow2.f32 %v4842_v1  ;;  %v5775_v1 = vld [vmem:[%s8479_s2 + $0x20] sm:$0xff] }
0x2c73   :  { %7242 = vpow2.f32 %v4840_v54  ;;  %v5776_v54 = vld [vmem:[%s8479_s2 + $0x28] sm:$0xff] }
0x2c7c   :  { %v7241_v45 = vpop.eup %7240 }
0x2c7d   :  { %v7243_v4 = vpop.eup %7242  ;;  %v4847_v61 = vsel %vm559_vm5, %v7241_v45, 0.0 }
0x2c7e   :  { %4848 = vadd.xlane.f32.xlu1 %v4847_v61  ;;  %v4844_v31 = vsel %vm559_vm5, %v7243_v4, 0.0  ;;  %v5778_v61 = vld [vmem:[%s8479_s2 + $0x38] sm:$0xff] }
0x2c7f   :  { %4845 = vadd.xlane.f32.xlu0 %v4844_v31 }
0x2c8f   :  { %4943 = vrot.lane.b32.xlu1 %v8315_v46, %s7480_s15 }
0x2c93   :  { %4945 = vrot.lane.b32.xlu1 %v8313_v16, %s7480_s15 }
0x2c95   :  { %7092 = vrot.lane.b32.xlu0 %v8245_v44, %s7478_s20 }
0x2c97   :  { %4953 = vrot.lane.b32.xlu1 %v6445_v60, %s8484_s17 }
0x2c99   :  { %4951 = vrot.lane.b32.xlu0 %v4728_v52, %s8484_s17 }
0x2d0b   :  { %v4849_v32 = vpop.xlane.xlu1 %4848 }
0x2d0c   :  { %7244 = vrcp.f32 %v4849_v32  ;;  %v4846_v0 = vpop.xlane.xlu0 %4845 }
0x2d0d   :  { %7246 = vrcp.f32 %v4846_v0 }
0x2d0f   :  { %v4944_v42 = vpop.permute.xlu1 %4943 }
0x2d10   :  { %v7093_v30 = vpop.permute.xlu0 %7092  ;;  %v4965_v41 = vsel %vm471_vm3, %v8311_v43, %v4944_v42 }
0x2d11   :  { %v7095_v46 = vunpack.i.h.bf16 %v7093_v30  ;;  %v7094_v19 = vunpack.i.l.bf16 %v7093_v30 }
0x2d13   :  { %v6820_v12 = vpack.c.bf16 %v7095_v46, %v7094_v19  ;;  %v4946_v35 = vpop.permute.xlu1 %4945 }
0x2d14   :  { %v4952_v39 = vpop.permute.xlu0 %4951  ;;  %v4966_v48 = vsel %vm471_vm3, %v8309_v59, %v4946_v35  ;;  %v5784_v35 = vld [vmem:[%s7635_s12 + $0x50] sm:$0xff] }
0x2d15   :  { %6821 = vmatprep.subr.bf16.mxu0 %v6820_v12  ;;  %v4967_v3 = vsel %vm559_vm5, %v4965_v41, %v4952_v39  ;;  %v5786_v41 = vld [vmem:[%s7635_s12 + $0x60] sm:$0xff] }
0x2d16   :  { %v7245_v16 = vpop.eup %7244  ;;  %6823 = vmatpush3.bf16.msra.mxu0 %v6820_v12 }
0x2d17   :  { %v7247_v44 = vpop.eup %7246  ;;  %v4853_v10 = vmul.f32 %v7245_v16, %v7241_v45  ;;  %6825 = vmatprep.subr.bf16.mxu0 %v6824_v22  ;;  %v4954_v38 = vpop.permute.xlu1 %4953  ;;  %v6832_v45 = vpack.c.bf16 %v5776_v54, %v5775_v1 }
0x2d18   :  { %v4851_v6 = vmul.f32 %v7247_v44, %v7243_v4  ;;  %v4968_v50 = vsel %vm559_vm5, %v4966_v48, %v4954_v38  ;;  %v5777_v4 = vld [vmem:[%s8479_s2 + $0x30] sm:$0xff]  ;;  %v5773_v44 = vld [vmem:[%s8480_s7 + $0x1] ss:$0 sm:$0xff]  ;;  %v5785_v38 = vld [vmem:[%s7635_s12 + $0x58] sm:$0xff] }
0x2d19   :  { %6833 = vmatprep.subr.bf16.mxu1 %v6832_v45  ;;  %v6836_v31 = vpack.c.bf16 %v5778_v61, %v5777_v4  ;;  %v6844_v39 = vpack.c.bf16 %v5785_v38, %v5784_v35 }
0x2d1a   :  { %6457 = vmatprep.mubr.msk.f32.mxu0 %vm559_vm5, %v4851_v6  ;;  %6835 = vmatpush3.bf16.msra.mxu1 %v6832_v45  ;;  %v5790_v45 = vld [vmem:[#allocation12 + $0x1] ss:$0 sm:$0xff] }
0x2d1b   :  { %6458 = vmatmul.mubr.msk.f32.vlgmr.msra.gmra.mrb[46].mxu0 %vm559_vm5, %v4853_v10  ;;  %6837 = vmatprep.subr.bf16.mxu1 %v6836_v31  ;;  %v5774_v10 = vld [vmem:[%s8481_s10 + $0x1] ss:$0 sm:$0xff] }
0x2d1c   :  { %6827 = vmatpush3.bf16.msra.mxu0 %v6824_v22 }
0x2d1d   :  { %6829 = vmatprep.subr.bf16.mxu0 %v6828_v29 }
0x2d1e   :  { %6839 = vmatpush3.bf16.msra.mxu1 %v6836_v31 }
0x2d20   :  { %6831 = vmatpush3.bf16.msra.mxu0 %v6828_v29 }
0x2dee   :  { %v6459_v33 = vpop.f32.mrb[46].mxu0 }
0x2def   :  { %4961 = vrot.lane.b32.xlu1 %v6459_v33, %s8485_s19  ;;  %v4932_v34 = vpop.f32.mrb[47].mxu0  ;;  %v5782_v33 = vld [vmem:[%s7635_s12 + $0x40] sm:$0xff] }
0x2df0   :  { %4959 = vrot.lane.b32.xlu0 %v4932_v34, %s8485_s19  ;;  %v5783_v34 = vld [vmem:[%s7635_s12 + $0x48] sm:$0xff] }
0x2df1   :  { %v6840_v42 = vpack.c.bf16 %v5783_v34, %v5782_v33 }
0x2df3   :  { %6841 = vmatprep.subr.bf16.mxu0 %v6840_v42 }
0x2e61   :  { %v4962_v37 = vpop.permute.xlu1 %4961 }
0x2e62   :  { %v4960_v47 = vpop.permute.xlu0 %4959  ;;  %v4970_v25 = vsel %vm1309_vm6, %v4968_v50, %v4962_v37  ;;  %v5787_v37 = vld [vmem:[%s7635_s12 + $0x68] sm:$0xff] }
0x2e63   :  { %v4969_v49 = vsel %vm1309_vm6, %v4967_v3, %v4960_v47  ;;  %v6848_v48 = vpack.c.bf16 %v5787_v37, %v5786_v41  ;;  %v5788_v3 = vld [vmem:[%s7635_s12 + $0x70] sm:$0xff]  ;;  %v5789_v47 = vld [vmem:[%s7635_s12 + $0x78] sm:$0xff]  ;;  %v5795_v37 = vld [vmem:[%s8482_s16 + $0x1] ss:$0 sm:$0xff]  ;;  %s7398_s12 = scalar_lea.vmem %s5560_s6, 32 }
0x2e64   :  { %6468 = vmatprep.mubr.msk.f32.mxu0 %vm323_vm2, %v4969_v49  ;;  %v6852_v50 = vpack.c.bf16 %v5789_v47, %v5788_v3  ;;  %v5779_v49 = vld [vmem:[#allocation11 + $0x1] ss:$0 sm:$0xff]  ;;  %p7399_p6 = scmp.ne.s32.totalorder %s5560_s6, %s7398_s12  ;;  %p7404_p8 = scmp.lt.s32.totalorder %s7398_s12, %s7398_s12 }
0x2e65   :  { %6469 = vmatmul.mubr.msk.f32.vlgmr.msra.gmra.mrb[48].mxu0 %vm323_vm2, %v4970_v25 }
0x2e66   :  { %6843 = vmatpush3.bf16.msra.mxu0 %v6840_v42  ;;  %p7405_p9 = por %p7404_p8, %p7403_p7 }
0x2e67   :  { %6845 = vmatprep.subr.bf16.mxu0 %v6844_v39 }
0x2e68   :  { %p7406_p10 = pnand %p7405_p9, %p7399_p6 }
0x2e6a   :  { %6847 = vmatpush3.bf16.msra.mxu0 %v6844_v39 }
0x2e6b   :  { %6849 = vmatprep.subr.bf16.mxu0 %v6848_v48 }
0x2e6e   :  { %6851 = vmatpush3.bf16.msra.mxu0 %v6848_v48 }
0x2e6f   :  { %6853 = vmatprep.subr.bf16.mxu0 %v6852_v50 }
0x2e72   :  { %6855 = vmatpush3.bf16.msra.mxu0 %v6852_v50  ;;  %v5796_v50 = vld [vmem:[%s8483_s0 + $0x1] ss:$0 sm:$0xff] }
0x2f38   :  { %v6470_v60 = vpop.f32.mrb[48].mxu0 }
0x2f39   :  { %v5062_v43 = vadd.f32 %v6470_v60, %v5768_v51  ;;  %v5056_v52 = vpop.f32.mrb[49].mxu0 }
0x2f3a   :  { %v5057_v53 = vadd.f32 %v5768_v51, %v5056_v52 }
0x2f3b   :  { %v5066_v59 = vadd.f32 %v5062_v43, %v8239_v15 }
0x2f3c   :  { %v5065_v55 = vadd.f32 %v5057_v53, %v8237_v13 }
0x2f3d   :  { %v5074_v9 = vsel %vm323_vm2, %v5066_v59, 0.0 }
0x2f3e   :  { %5075 = vadd.xlane.f32.xlu1 %v5074_v9  ;;  %v5071_v5 = vsel %vm323_vm2, %v5065_v55, 0.0 }
0x2f3f   :  { %5072 = vadd.xlane.f32.xlu0 %v5071_v5 }
0x2fcb   :  { %v5076_v56 = vpop.xlane.xlu1 %5075 }
0x2fcc   :  { %v5078_v36 = vmul.f32 0.03125, %v5076_v56  ;;  %v5073_v57 = vpop.xlane.xlu0 %5072 }
0x2fcd   :  { %v5077_v58 = vmul.f32 0.03125, %v5073_v57 }
0x2fce   :  { %v5080_v28 = vsub.f32 %v5066_v59, %v5078_v36 }
0x2fcf   :  { %v5079_v21 = vsub.f32 %v5065_v55, %v5077_v58 }
0x2fd0   :  { %v5082_v13 = vmul.f32 %v5080_v28, %v5080_v28 }
0x2fd1   :  { %v5081_v62 = vmul.f32 %v5079_v21, %v5079_v21 }
0x2fd2   :  { %v5086_v63 = vsel %vm323_vm2, %v5082_v13, 0.0 }
0x2fd3   :  { %v5083_v15 = vsel %vm323_vm2, %v5081_v62, 0.0 }
0x2fd4   :  { %5084 = vadd.xlane.f32.xlu0 %v5083_v15 }
0x2fd8   :  { %5087 = vadd.xlane.f32.xlu0 %v5086_v63 }
0x3061   :  { %v5085_v32 = vpop.xlane.xlu0 %5084 }
0x3062   :  { %v5089_v0 = vmul.f32 0.03125, %v5085_v32 }
0x3064   :  { %v5091_v30 = vadd.f32 1e-05, %v5089_v0 }
0x3065   :  { %v5088_v46 = vpop.xlane.xlu0 %5087 }
0x3066   :  { %7248 = vrsqrt.f32 %v5091_v30  ;;  %v5090_v19 = vmul.f32 0.03125, %v5088_v46 }
0x3068   :  { %v5092_v12 = vadd.f32 1e-05, %v5090_v19 }
0x306a   :  { %7250 = vrsqrt.f32 %v5092_v12 }
0x3070   :  { %v7249_v16 = vpop.eup %7248 }
0x3071   :  { %v5095_v6 = vmul.f32 %v7249_v16, %v5079_v21  ;;  %v7483_v16 = vmov 0.0|0.0  }
0x3072   :  { %6856 = vmatprep.subr.bf16.mxu1 %v7483_v16 }
0x3073   :  { %v5103_v40 = vmul.f32 %v5773_v44, %v5095_v6 }
0x3074   :  { %v7251_v18 = vpop.eup %7250 }
0x3075   :  { %v5096_v2 = vmul.f32 %v7251_v18, %v5080_v28  ;;  %v5111_v22 = vadd.f32 %v5774_v10, %v5103_v40 }
0x3077   :  { %v5104_v24 = vmul.f32 %v5773_v44, %v5096_v2  ;;  %6479 = vmatprep.mubr.msk.f32.mxu1 %vm323_vm2, %v5111_v22 }
0x3079   :  { %v5112_v29 = vadd.f32 %v5774_v10, %v5104_v24  ;;  %v7484_v24 = vmov 0.0  }
0x307b   :  { %6480 = vmatmul.mubr.msk.f32.vlgmr.msra.gmra.mrb[40].mxu1 %vm323_vm2, %v5112_v29 }
0x307c   :  { %6859 = vmatpush3.bf16.xpose.msk.msra.mxu1 %vm8399_vm8, %v7692_v7  ;;  %6533 = vmatprep.mubr.msk.f32.mxu1 %vm7485_vm11, %v7484_v24 }
0x307d   :  { %6860 = vmatprep.subr.bf16.mxu1 %v7483_v16 }
0x3084   :  { %6863 = vmatpush3.bf16.xpose.msk.msra.mxu1 %vm8399_vm8, %v7694_v8 }
0x3085   :  { %6864 = vmatprep.subr.bf16.mxu1 %v7483_v16 }
0x308c   :  { %6867 = vmatpush3.bf16.xpose.msk.msra.mxu1 %vm8399_vm8, %v7701_v11 }
0x308d   :  { %6868 = vmatprep.subr.bf16.mxu1 %v7483_v16 }
0x3094   :  { %6871 = vmatpush3.bf16.xpose.msk.msra.mxu1 %vm8399_vm8, %v7707_v14 }
0x3095   :  { %6872 = vmatprep.subr.bf16.mxu1 %v7483_v16 }
0x309c   :  { %6875 = vmatpush3.bf16.xpose.msk.msra.mxu1 %vm8399_vm8, %v7713_v17 }
0x309d   :  { %6876 = vmatprep.subr.bf16.mxu1 %v7483_v16 }
0x30a4   :  { %6879 = vmatpush3.bf16.xpose.msk.msra.mxu1 %vm8399_vm8, %v7719_v20 }
0x30a5   :  { %6880 = vmatprep.subr.bf16.mxu1 %v7483_v16 }
0x30ac   :  { %6883 = vmatpush3.bf16.xpose.msk.msra.mxu1 %vm8399_vm8, %v7725_v23  ;;  %v5373_v23 = vshrl.u32 %v210_v27, 7 }
0x30ad   :  { %6884 = vmatprep.subr.bf16.mxu1 %v7483_v16 }
0x30ae   :  { %v5374_v18 = vadd.s32 8, %v5373_v23  ;;  %v5379_v2 = vand.u32 7, %v5373_v23 }
0x30b4   :  { %6887 = vmatpush3.bf16.xpose.msk.msra.mxu1 %vm8399_vm8, %v7731_v26  ;;  %v5386_v26 = vand.u32 7, %v5374_v18 }
0x314e   :  { %v6481_v25 = vpop.f32.mrb[40].mxu1 }
0x314f   :  { %v5204_v51 = vadd.f32 %v6481_v25, %v5779_v49  ;;  %v5198_v60 = vpop.f32.mrb[41].mxu1 }
0x3150   :  { %v5199_v43 = vadd.f32 %v5779_v49, %v5198_v60 }
0x3151   :  { %v5208_v52 = vmul.f32 %v5204_v51, %v5204_v51 }
0x3152   :  { %v5207_v53 = vmul.f32 %v5199_v43, %v5199_v43 }
0x3153   :  { %v5210_v59 = vmul.f32 %v5208_v52, %v5204_v51 }
0x3154   :  { %v5209_v55 = vmul.f32 %v5207_v53, %v5199_v43 }
0x3155   :  { %v5212_v9 = vmul.f32 0.044715, %v5210_v59 }
0x3156   :  { %v5211_v5 = vmul.f32 0.044715, %v5209_v55 }
0x3157   :  { %v5214_v56 = vadd.f32 %v5212_v9, %v5204_v51 }
0x3158   :  { %v5213_v36 = vadd.f32 %v5211_v5, %v5199_v43 }
0x3159   :  { %v5216_v57 = vmul.f32 0.7978846, %v5214_v56 }
0x315a   :  { %v5215_v58 = vmul.f32 0.7978846, %v5213_v36 }
0x315b   :  { %7252 = vtanh.f32 %v5216_v57 }
0x315c   :  { %7254 = vtanh.f32 %v5215_v58 }
0x3165   :  { %v7253_v28 = vpop.eup %7252 }
0x3166   :  { %v7255_v21 = vpop.eup %7254  ;;  %v5220_v62 = vadd.f32 1.0, %v7253_v28 }
0x3167   :  { %v5219_v15 = vadd.f32 1.0, %v7255_v21 }
0x3168   :  { %v5222_v13 = vmul.f32 0.5, %v5220_v62 }
0x3169   :  { %v5221_v63 = vmul.f32 0.5, %v5219_v15 }
0x316a   :  { %v5224_v54 = vmul.f32 %v5222_v13, %v5204_v51 }
0x316b   :  { %v5223_v1 = vmul.f32 %v5221_v63, %v5199_v43 }
0x316d   :  { %6498 = vmatprep.mubr.msk.f32.mxu0 %vm2739_vm7, %v5223_v1  ;;  %v5799_v1 = vld [vmem:[#allocation3] ss:$0 sm:$0xff] }
0x316e   :  { %6499 = vmatmul.mubr.msk.f32.vlgmr.msra.gmra.mrb[50].mxu0 %vm2739_vm7, %v5224_v54 }
0x3241   :  { %v6500_v4 = vpop.f32.mrb[50].mxu0 }
0x3242   :  { %v5320_v61 = vadd.f32 %v6500_v4, %v5790_v45  ;;  %v5314_v31 = vpop.f32.mrb[51].mxu0 }
0x3243   :  { %v5315_v32 = vadd.f32 %v5790_v45, %v5314_v31 }
0x3244   :  { %v5324_v0 = vadd.f32 %v5320_v61, %v5112_v29 }
0x3245   :  { %v5323_v30 = vadd.f32 %v5315_v32, %v5111_v22  ;;  %v5399_v22 = vstv %s8488_s24 }
0x3246   :  { %v5332_v46 = vsel %vm323_vm2, %v5324_v0, 0.0  ;;  %vm5401_vm9 = vcmp.eq.s32.totalorder %v5386_v26, %v5399_v22  ;;  %vm5400_vm10 = vcmp.eq.s32.totalorder %v5379_v2, %v5399_v22 }
0x3247   :  { %5333 = vadd.xlane.f32.xlu0 %v5332_v46  ;;  %v5329_v19 = vsel %vm323_vm2, %v5323_v30, 0.0  ;;  %v5798_v29 = vsel %vm5401_vm9, 1.0, %v7484_v24  ;;  %v5797_v33 = vsel %vm5400_vm10, 1.0, %v7484_v24 }
0x3248   :  { %5330 = vadd.xlane.f32.xlu1 %v5329_v19 }
0x32d4   :  { %v5334_v7 = vpop.xlane.xlu0 %5333 }
0x32d5   :  { %v5336_v8 = vmul.f32 0.03125, %v5334_v7  ;;  %v5331_v11 = vpop.xlane.xlu1 %5330 }
0x32d6   :  { %v5335_v14 = vmul.f32 0.03125, %v5331_v11 }
0x32d7   :  { %v5338_v17 = vsub.f32 %v5324_v0, %v5336_v8 }
0x32d8   :  { %v5337_v44 = vsub.f32 %v5323_v30, %v5335_v14 }
0x32d9   :  { %v5340_v6 = vmul.f32 %v5338_v17, %v5338_v17 }
0x32da   :  { %v5339_v10 = vmul.f32 %v5337_v44, %v5337_v44 }
0x32db   :  { %v5344_v20 = vsel %vm323_vm2, %v5340_v6, 0.0 }
0x32dc   :  { %5345 = vadd.xlane.f32.xlu0 %v5344_v20  ;;  %v5341_v40 = vsel %vm323_vm2, %v5339_v10, 0.0 }
0x32dd   :  { %5342 = vadd.xlane.f32.xlu1 %v5341_v40 }
0x3369   :  { %v5346_v34 = vpop.xlane.xlu0 %5345 }
0x336a   :  { %v5348_v42 = vmul.f32 0.03125, %v5346_v34  ;;  %v5343_v35 = vpop.xlane.xlu1 %5342 }
0x336b   :  { %v5347_v38 = vmul.f32 0.03125, %v5343_v35 }
0x336c   :  { %v5350_v39 = vadd.f32 1e-05, %v5348_v42 }
0x336d   :  { %v5349_v41 = vadd.f32 1e-05, %v5347_v38 }
0x336e   :  { %7256 = vrsqrt.f32 %v5350_v39 }
0x336f   :  { %7258 = vrsqrt.f32 %v5349_v41 }
0x3378   :  { %v7257_v27 = vpop.eup %7256 }
0x3379   :  { %v7259_v48 = vpop.eup %7258  ;;  %v5354_v3 = vmul.f32 %v7257_v27, %v5338_v17 }
0x337a   :  { %v5353_v47 = vmul.f32 %v7259_v48, %v5337_v44 }
0x337b   :  { %v5362_v49 = vmul.f32 %v5795_v37, %v5354_v3 }
0x337c   :  { %v5361_v25 = vmul.f32 %v5795_v37, %v5353_v47 }
0x337d   :  { %v5370_v51 = vadd.f32 %v5796_v50, %v5362_v49 }
0x337e   :  { %v5369_v60 = vadd.f32 %v5796_v50, %v5361_v25 }
0x337f   :  { %v5407_v43 = vmul.f32 %v5798_v29, %v5370_v51 }
0x3380   :  { %v5406_v52 = vmul.f32 %v5797_v33, %v5369_v60 }
0x3381   :  { %v5415_v53 = vsel %vm323_vm2, %v5407_v43, 0.0 }
0x3382   :  { %v5408_v59 = vsel %vm323_vm2, %v5406_v52, 0.0  ;;  %v5416_v55 = vrot.slane %v5415_v53, 4 }
0x3383   :  { %v5409_v9 = vrot.slane %v5408_v59, 4 }
0x3384   :  { %v5417_v5 = vadd.f32 %v5416_v55, %v5415_v53 }
0x3385   :  { %v5410_v56 = vadd.f32 %v5409_v9, %v5408_v59 }
0x3386   :  { %v5418_v36 = vrot.slane %v5417_v5, 2 }
0x3387   :  { %v5411_v57 = vrot.slane %v5410_v56, 2 }
0x3388   :  { %v5419_v58 = vadd.f32 %v5418_v36, %v5417_v5 }
0x3389   :  { %v5412_v28 = vadd.f32 %v5411_v57, %v5410_v56 }
0x338a   :  { %v5420_v21 = vrot.slane %v5419_v58, 1 }
0x338b   :  { %v5413_v62 = vrot.slane %v5412_v28, 1 }
0x338c   :  { %v5421_v15 = vadd.f32 %v5420_v21, %v5419_v58 }
0x338d   :  { %v5414_v13 = vadd.f32 %v5413_v62, %v5412_v28 }
0x338f   :  { %v5423_v63 = vsel %vm5422_vm12, %v5414_v13, %v5421_v15 }
0x3390   :  { %6534 = vmatmul.mubr.msk.f32.vlgmr.msra.gmra.mrb[42].mxu1 %vm323_vm2, %v5423_v63 }
0x3463   :  { %v5548_v54 = vpop.f32.mrb[42].mxu1 }
0x3464   :  { %v5549_v45 = vadd.f32 %v5799_v1, %v5548_v54  ;;  %v6535_v4 = vpop.f32.mrb[43].mxu1 }
0x3466   :  { %5552 = vst [vmem:[#allocation14] sm:$0x3] %v5549_v45 }
0x3467   :  { %7409 = shalt.err (!%p7406_p10)
}
0x3468   :  { %s7410_s0 = scalar_lea.hbm %s7645_s5, 32 }
0x3469   :  { %p7411_p11 = scmp.ne.s32.totalorder %s7645_s5, %s7410_s0  ;;  %p7414_p12 = scmp.lt.u32.totalorder %s7410_s0, %s7645_s5 }
0x346b   :  { %p7416_p13 = pnand %p7414_p12, %p7411_p11 }
0x346d   :  { %7419 = shalt.err (!%p7416_p13)
}
0x346e   :  { %5562 = dma.vmem_to_hbm [thread:$0]  %s5560_s6, 32, %s7645_s5, [#allocation5]  }
0x346f   :  { %7428 = dma.done.wait [#allocation5], 32  }
0x3470   :  { %7429 = vsyncadd [#allocation5], 4294967264 }
0x3471   :  { %5566 = vsyncpa [#allocation4], 1 }
0x3472   :  { %5567 = vsyncpa [#allocation7], 1 }
0x3473   :  { %5568 = vsyncpa [#allocation10], 1 }
0x3474   :  { %5569 = vsyncpa [#allocation13], 1 }
0x3475   :  { %5570 = vsyncpa [#allocation5], 1 }

</bundles_post_ra>
